<compile_context>
chip_gen: v7x
topology: tpu7x:2x2x1
jax: 0.10.0
libtpu: 0.0.40
codegen_flags: <defaults>
</compile_context>

<pallas_src>
import math
import functools

import jax
import jax.numpy as jnp
from jax.experimental import pallas as pl
from jax.experimental.pallas import tpu as pltpu

LN_EPS = 1e-5          # PyTorch nn.LayerNorm default
PER_LAYER_REFS = 6     # wqkv_heads, bqkv_heads, wo, w1, w2, vec_pack


def _layer_norm(x, gamma, beta):
    mean = jnp.mean(x, axis=-1, keepdims=True)
    var = jnp.mean((x - mean) ** 2, axis=-1, keepdims=True)
    return (x - mean) * jax.lax.rsqrt(var + LN_EPS) * gamma + beta


# ------------------------------ fused kernel -------------------------------

def transformer_kernel(*refs, num_heads, nlayers, embed_size, ff_size,
                       seq_len, batch):
    """Fused forward.  refs layout:
         [x2d, pe2d, nlayers * 6 layer params, final_pack, out, attn_scratch]
       x2d / pe2d are [B*S, E], batch-major rows (row = b*S + s)."""
    x_ref, pe_ref = refs[0], refs[1]
    layer_refs = [refs[2 + l * PER_LAYER_REFS: 2 + (l + 1) * PER_LAYER_REFS]
                  for l in range(nlayers)]
    base = 2 + nlayers * PER_LAYER_REFS
    final_ref = refs[base]
    o_ref = refs[base + 1]
    attn_scr = refs[base + 2]

    E, F = embed_size, ff_size
    S, B, H = seq_len, batch, num_heads
    Dh = E // H

    # PositionalEncoding: x + pe (dropout = identity in eval mode).  pe is
    # pre-tiled to [B*S, E] in the wrapper -> pure single-pass elementwise add.
    x = x_ref[...] + pe_ref[...]

    for l in range(nlayers):
        (wqkv_ref, bqkv_ref, wo_ref, w1_ref, w2_ref, vec_ref) = layer_refs[l]

        bqkv = bqkv_ref[...]            # [3H, Dh] (q-bias rows pre-scaled)
        wo = wo_ref[...]                # [E, E]   (= Wo^T, [in, out])
        w1 = w1_ref[...]                # [E, F]
        w2 = w2_ref[...]                # [F, E]
        vp = vec_ref[...]               # [7, max(E, F)] packed row params
        bo  = vp[0:1, 0:E]
        g1  = vp[1:2, 0:E]
        be1 = vp[2:3, 0:E]
        b1  = vp[3:4, 0:F]
        b2  = vp[4:5, 0:E]
        g2  = vp[5:6, 0:E]
        be2 = vp[6:7, 0:E]

        # --- multi-head self-attention ---
        # Per-head projections from pre-split [E, Dh] weight slabs (leading-dim
        # static index -> no lane-offset extracts); 1/sqrt(Dh) folded into q.
        for h in range(H):              # static loops; tiny trip counts here
            wq_h = wqkv_ref[h]          # [E, Dh]
            wk_h = wqkv_ref[H + h]
            wv_h = wqkv_ref[2 * H + h]
            qh = jnp.dot(x, wq_h, preferred_element_type=jnp.float32) \
                 + bqkv[h:h + 1, :]
            kh = jnp.dot(x, wk_h, preferred_element_type=jnp.float32) \
                 + bqkv[H + h:H + h + 1, :]
            vh = jnp.dot(x, wv_h, preferred_element_type=jnp.float32) \
                 + bqkv[2 * H + h:2 * H + h + 1, :]
            for b in range(B):
                r0 = b * S              # sublane-aligned row block
                qb = qh[r0:r0 + S, :]
                kb = kh[r0:r0 + S, :]
                vb = vh[r0:r0 + S, :]
                # q @ k^T without an explicit transpose (contract last dims).
                sc = jax.lax.dot_general(
                    qb, kb, (((1,), (1,)), ((), ())),
                    preferred_element_type=jnp.float32)        # [S, S]
                m = jnp.max(sc, axis=-1, keepdims=True)
                e = jnp.exp(sc - m)
                inv = pl.reciprocal(jnp.sum(e, axis=-1, keepdims=True),
                                    approx=True)               # EUP vrcp
                ctx = jnp.dot(e * inv, vb,
                              preferred_element_type=jnp.float32)   # [S, Dh]
                # Write this head's context into its lane block; the output
                # projection is then a single fat K=E matmul over all rows.
                attn_scr[r0:r0 + S, h * Dh:(h + 1) * Dh] = ctx

        attn = jnp.dot(attn_scr[...], wo,
                       preferred_element_type=jnp.float32) + bo

        # --- residual + LN1, FFN, residual + LN2 (all B*S rows at once) ---
        y = _layer_norm(x + attn, g1, be1)
        hid = jnp.maximum(
            jnp.dot(y, w1, preferred_element_type=jnp.float32) + b1, 0.0)
        ff = jnp.dot(hid, w2, preferred_element_type=jnp.float32) + b2
        x = _layer_norm(y + ff, g2, be2)

    # final LayerNorm of nn.TransformerEncoder(norm=...) - one full-block store
    fp = final_ref[...]                 # [2, E] = (gamma, beta)
    o_ref[...] = _layer_norm(x, fp[0:1, :], fp[1:2, :]).astype(o_ref.dtype)


# ------------------------------- parameters --------------------------------

def positional_encoding_table(embed_size, max_len):
    position = jnp.arange(max_len, dtype=jnp.float32)[:, None]
    div_term = jnp.exp(jnp.arange(0, embed_size, 2, dtype=jnp.float32)
                       * (-math.log(10000.0) / embed_size))
    angles = position * div_term                              # [max_len, E//2]
    pe = jnp.zeros((max_len, 1, embed_size), jnp.float32)
    pe = pe.at[:, 0, 0::2].set(jnp.sin(angles))
    pe = pe.at[:, 0, 1::2].set(jnp.cos(angles))
    return pe


def init_params(key, nlayers, embed_size, ff_hidden_size, max_len):
    """PyTorch-convention parameters ([out_features, in_features] weights)."""
    E, F = embed_size, ff_hidden_size
    layers = []
    for _ in range(nlayers):
        key, k0, k1, k2, k3 = jax.random.split(key, 5)
        layers.append(dict(
            wqkv=0.05 * jax.random.normal(k0, (3 * E, E), jnp.float32),
            bqkv=0.05 * jax.random.normal(key, (3 * E,), jnp.float32),
            wo=0.05 * jax.random.normal(k1, (E, E), jnp.float32),
            bo=jnp.zeros((E,), jnp.float32),
            g1=jnp.ones((E,), jnp.float32), be1=jnp.zeros((E,), jnp.float32),
            w1=0.05 * jax.random.normal(k2, (F, E), jnp.float32),
            b1=jnp.zeros((F,), jnp.float32),
            w2=0.05 * jax.random.normal(k3, (E, F), jnp.float32),
            b2=jnp.zeros((E,), jnp.float32),
            g2=jnp.ones((E,), jnp.float32), be2=jnp.zeros((E,), jnp.float32),
        ))
    return dict(
        pe=positional_encoding_table(E, max_len),
        layers=layers,
        final_g=jnp.ones((E,), jnp.float32),
        final_b=jnp.zeros((E,), jnp.float32),
    )


def prepare_kernel_params(params, num_heads):
    """One-time layout plumbing (hoisted out of the per-call path):
       split packed QKV per head, transpose weights to [in, out], fold the
       1/sqrt(Dh) scale into q, and pack all 1-row parameters."""
    E = params["layers"][0]["wqkv"].shape[1]
    F = params["layers"][0]["w1"].shape[0]
    H = num_heads
    Dh = E // H
    W = max(E, F)
    scale = 1.0 / math.sqrt(Dh)

    def pad_row(v):
        v = v.reshape(1, -1)
        return jnp.pad(v, ((0, 0), (0, W - v.shape[1])))

    def split_heads(w_t):                      # [E_in, E_out] -> [H, E_in, Dh]
        return w_t.reshape(E, H, Dh).transpose(1, 0, 2)

    flat = []
    for lp in params["layers"]:
        wqkv, bqkv = lp["wqkv"], lp["bqkv"]                    # [3E, E], [3E]
        wq, wk, wv = wqkv[:E], wqkv[E:2 * E], wqkv[2 * E:]
        bq, bk, bv = bqkv[:E], bqkv[E:2 * E], bqkv[2 * E:]
        wqkv_heads = jnp.concatenate(
            [split_heads(wq.T * scale), split_heads(wk.T), split_heads(wv.T)],
            axis=0)                                            # [3H, E, Dh]
        bqkv_heads = jnp.concatenate(
            [(bq * scale).reshape(H, Dh), bk.reshape(H, Dh), bv.reshape(H, Dh)],
            axis=0)                                            # [3H, Dh]
        vec_pack = jnp.concatenate(
            [pad_row(lp["bo"]), pad_row(lp["g1"]), pad_row(lp["be1"]),
             pad_row(lp["b1"]), pad_row(lp["b2"]), pad_row(lp["g2"]),
             pad_row(lp["be2"])], axis=0)                      # [7, W]
        flat += [wqkv_heads, bqkv_heads, lp["wo"].T, lp["w1"].T, lp["w2"].T,
                 vec_pack]
    final_pack = jnp.stack([params["final_g"], params["final_b"]], axis=0)
    return dict(pe=params["pe"], flat=flat, final_pack=final_pack)


# -------------------------------- wrapper -----------------------------------

@functools.partial(jax.jit, static_argnums=(2,))
def transformer_layer_forward(x, kparams, num_heads):
    S, B, E = x.shape
    flat = kparams["flat"]
    nlayers = len(flat) // PER_LAYER_REFS
    F = flat[3].shape[1]                                   # w1 is [E, F]

    # Batch-major flatten so each batch's sequence is a contiguous sublane
    # block inside the kernel (row = b*S + s).
    x2d = x.transpose(1, 0, 2).reshape(B * S, E)
    # PE pre-tiled to [B*S, E] (constant-folds under jit).
    pe2d = jnp.tile(kparams["pe"][:S, 0, :], (B, 1))

    n_inputs = 2 + nlayers * PER_LAYER_REFS + 1
    kernel = functools.partial(
        transformer_kernel, num_heads=num_heads, nlayers=nlayers,
        embed_size=E, ff_size=F, seq_len=S, batch=B)

    out2d = pl.pallas_call(
        kernel,
        out_shape=jax.ShapeDtypeStruct((B * S, E), x.dtype),
        in_specs=[pl.BlockSpec(memory_space=pltpu.MemorySpace.VMEM)] * n_inputs,
        out_specs=pl.BlockSpec(memory_space=pltpu.MemorySpace.VMEM),
        scratch_shapes=[pltpu.VMEM((B * S, E), jnp.float32)],
    )(x2d, pe2d, *flat, kparams["final_pack"])

    return out2d.reshape(B, S, E).transpose(1, 0, 2)       # back to [S, B, E]


# --------------------------- pure-JAX reference ------------------------------

def reference_forward(x, params, num_heads):
    S, B, E = x.shape
    H = num_heads
    Dh = E // H
    scale = 1.0 / math.sqrt(Dh)
    h = (x + params["pe"][:S, 0, :][:, None, :]).transpose(1, 0, 2)   # [B,S,E]
    for lp in params["layers"]:
        qkv = jnp.einsum("bse,fe->bsf", h, lp["wqkv"]) + lp["bqkv"]
        q, k, v = qkv[..., :E], qkv[..., E:2 * E], qkv[..., 2 * E:]
        split = lambda t: t.reshape(B, S, H, Dh).transpose(0, 2, 1, 3)
        q, k, v = split(q) * scale, split(k), split(v)
        p = jax.nn.softmax(jnp.einsum("bhqd,bhkd->bhqk", q, k), axis=-1)
        ctx = jnp.einsum("bhqk,bhkd->bhqd", p, v)
        ctx = ctx.transpose(0, 2, 1, 3).reshape(B, S, E)
        attn = jnp.einsum("bse,fe->bsf", ctx, lp["wo"]) + lp["bo"]
        y = _layer_norm(h + attn, lp["g1"], lp["be1"])
        hid = jax.nn.relu(jnp.einsum("bse,fe->bsf", y, lp["w1"]) + lp["b1"])
        ff = jnp.einsum("bsf,ef->bse", hid, lp["w2"]) + lp["b2"]
        h = _layer_norm(y + ff, lp["g2"], lp["be2"])
    h = _layer_norm(h, params["final_g"], params["final_b"])
    return h.transpose(1, 0, 2)


# ----------------------------------- main ------------------------------------

if __name__ == "__main__":
    nlayers = 2
    embed_size = 32
    num_heads = 4
    ff_hidden_size = 64
    max_len = 128
    seq_len, batch = 8, 2

    key = jax.random.PRNGKey(0)
    k_param, k_x = jax.random.split(key)

    params = init_params(k_param, nlayers, embed_size, ff_hidden_size, max_len)
    kparams = prepare_kernel_params(params, num_heads)   # one-time layout pass
    x = jax.random.normal(k_x, (seq_len, batch, embed_size), jnp.float32)

    out = transformer_layer_forward(x, kparams, num_heads)
    out = jax.block_until_ready(out)

    assert out.shape == (seq_len, batch, embed_size)
    assert jnp.all(jnp.isfinite(out))

    # Reference tolerance check (approx reciprocal in softmax -> ~1e-3 rel).
    ref = reference_forward(x, params, num_heads)
    max_err = float(jnp.max(jnp.abs(out - ref)))
    assert max_err < 5e-2, f"max abs error vs reference: {max_err}"

    print("KERNEL_OK")
</pallas_src>

<mosaic_0001>
module attributes {stable_mosaic.version = 11 : i64} {
  func.func @transformer_kernel(%arg0: memref<16x32xf32, #tpu.memory_space<vmem>>, %arg1: memref<16x32xf32, #tpu.memory_space<vmem>>, %arg2: memref<12x32x8xf32, #tpu.memory_space<vmem>>, %arg3: memref<12x8xf32, #tpu.memory_space<vmem>>, %arg4: memref<32x32xf32, #tpu.memory_space<vmem>>, %arg5: memref<32x64xf32, #tpu.memory_space<vmem>>, %arg6: memref<64x32xf32, #tpu.memory_space<vmem>>, %arg7: memref<7x64xf32, #tpu.memory_space<vmem>>, %arg8: memref<12x32x8xf32, #tpu.memory_space<vmem>>, %arg9: memref<12x8xf32, #tpu.memory_space<vmem>>, %arg10: memref<32x32xf32, #tpu.memory_space<vmem>>, %arg11: memref<32x64xf32, #tpu.memory_space<vmem>>, %arg12: memref<64x32xf32, #tpu.memory_space<vmem>>, %arg13: memref<7x64xf32, #tpu.memory_space<vmem>>, %arg14: memref<2x32xf32, #tpu.memory_space<vmem>>, %arg15: memref<16x32xf32, #tpu.memory_space<vmem>>, %arg16: memref<16x32xf32, #tpu.memory_space<vmem>>) attributes {dimension_semantics = [], scalar_prefetch = 0 : i64, scratch_operands = 1 : i64, tpu.core_type = #tpu.core_type<tc>} {
    %c0 = arith.constant 0 : index
    %c0_0 = arith.constant 0 : index
    %0 = vector.load %arg0[%c0, %c0_0] : memref<16x32xf32, #tpu.memory_space<vmem>>, vector<16x32xf32>
    %c0_1 = arith.constant 0 : index
    %c0_2 = arith.constant 0 : index
    %1 = vector.load %arg1[%c0_1, %c0_2] : memref<16x32xf32, #tpu.memory_space<vmem>>, vector<16x32xf32>
    %2 = arith.addf %0, %1 : vector<16x32xf32>
    %c0_3 = arith.constant 0 : index
    %c0_4 = arith.constant 0 : index
    %3 = vector.load %arg3[%c0_3, %c0_4] : memref<12x8xf32, #tpu.memory_space<vmem>>, vector<12x8xf32>
    %c0_5 = arith.constant 0 : index
    %c0_6 = arith.constant 0 : index
    %4 = vector.load %arg4[%c0_5, %c0_6] : memref<32x32xf32, #tpu.memory_space<vmem>>, vector<32x32xf32>
    %c0_7 = arith.constant 0 : index
    %c0_8 = arith.constant 0 : index
    %5 = vector.load %arg5[%c0_7, %c0_8] : memref<32x64xf32, #tpu.memory_space<vmem>>, vector<32x64xf32>
    %c0_9 = arith.constant 0 : index
    %c0_10 = arith.constant 0 : index
    %6 = vector.load %arg6[%c0_9, %c0_10] : memref<64x32xf32, #tpu.memory_space<vmem>>, vector<64x32xf32>
    %c0_11 = arith.constant 0 : index
    %c0_12 = arith.constant 0 : index
    %7 = vector.load %arg7[%c0_11, %c0_12] : memref<7x64xf32, #tpu.memory_space<vmem>>, vector<7x64xf32>
    %8 = vector.extract_strided_slice %7 {offsets = [0, 0], sizes = [1, 32], strides = [1, 1]} : vector<7x64xf32> to vector<1x32xf32>
    %9 = vector.extract_strided_slice %7 {offsets = [1, 0], sizes = [1, 32], strides = [1, 1]} : vector<7x64xf32> to vector<1x32xf32>
    %10 = vector.extract_strided_slice %7 {offsets = [2, 0], sizes = [1, 32], strides = [1, 1]} : vector<7x64xf32> to vector<1x32xf32>
    %11 = vector.extract_strided_slice %7 {offsets = [3, 0], sizes = [1, 64], strides = [1, 1]} : vector<7x64xf32> to vector<1x64xf32>
    %12 = vector.extract_strided_slice %7 {offsets = [4, 0], sizes = [1, 32], strides = [1, 1]} : vector<7x64xf32> to vector<1x32xf32>
    %13 = vector.extract_strided_slice %7 {offsets = [5, 0], sizes = [1, 32], strides = [1, 1]} : vector<7x64xf32> to vector<1x32xf32>
    %14 = vector.extract_strided_slice %7 {offsets = [6, 0], sizes = [1, 32], strides = [1, 1]} : vector<7x64xf32> to vector<1x32xf32>
    %c0_13 = arith.constant 0 : index
    %c0_14 = arith.constant 0 : index
    %c0_15 = arith.constant 0 : index
    %15 = vector.load %arg2[%c0_13, %c0_14, %c0_15] : memref<12x32x8xf32, #tpu.memory_space<vmem>>, vector<1x32x8xf32>
    %16 = vector.shape_cast %15 : vector<1x32x8xf32> to vector<32x8xf32>
    %c4 = arith.constant 4 : index
    %c0_16 = arith.constant 0 : index
    %c0_17 = arith.constant 0 : index
    %17 = vector.load %arg2[%c4, %c0_16, %c0_17] : memref<12x32x8xf32, #tpu.memory_space<vmem>>, vector<1x32x8xf32>
    %18 = vector.shape_cast %17 : vector<1x32x8xf32> to vector<32x8xf32>
    %c8 = arith.constant 8 : index
    %c0_18 = arith.constant 0 : index
    %c0_19 = arith.constant 0 : index
    %19 = vector.load %arg2[%c8, %c0_18, %c0_19] : memref<12x32x8xf32, #tpu.memory_space<vmem>>, vector<1x32x8xf32>
    %20 = vector.shape_cast %19 : vector<1x32x8xf32> to vector<32x8xf32>
    %cst = arith.constant dense<0.000000e+00> : vector<16x8xf32>
    %21 = tpu.matmul %2, %16, %cst {dimension_numbers = #tpu.dot_dimension_numbers<[1], [0], [0], [1], [0, 0, 1, 1], [], []>} : vector<16x32xf32>, vector<32x8xf32>, vector<16x8xf32> -> vector<16x8xf32>
    %22 = vector.extract_strided_slice %3 {offsets = [0, 0], sizes = [1, 8], strides = [1, 1]} : vector<12x8xf32> to vector<1x8xf32>
    %23 = vector.broadcast %22 : vector<1x8xf32> to vector<16x8xf32>
    %24 = arith.addf %21, %23 : vector<16x8xf32>
    %cst_20 = arith.constant dense<0.000000e+00> : vector<16x8xf32>
    %25 = tpu.matmul %2, %18, %cst_20 {dimension_numbers = #tpu.dot_dimension_numbers<[1], [0], [0], [1], [0, 0, 1, 1], [], []>} : vector<16x32xf32>, vector<32x8xf32>, vector<16x8xf32> -> vector<16x8xf32>
    %26 = vector.extract_strided_slice %3 {offsets = [4, 0], sizes = [1, 8], strides = [1, 1]} : vector<12x8xf32> to vector<1x8xf32>
    %27 = vector.broadcast %26 : vector<1x8xf32> to vector<16x8xf32>
    %28 = arith.addf %25, %27 : vector<16x8xf32>
    %cst_21 = arith.constant dense<0.000000e+00> : vector<16x8xf32>
    %29 = tpu.matmul %2, %20, %cst_21 {dimension_numbers = #tpu.dot_dimension_numbers<[1], [0], [0], [1], [0, 0, 1, 1], [], []>} : vector<16x32xf32>, vector<32x8xf32>, vector<16x8xf32> -> vector<16x8xf32>
    %30 = vector.extract_strided_slice %3 {offsets = [8, 0], sizes = [1, 8], strides = [1, 1]} : vector<12x8xf32> to vector<1x8xf32>
    %31 = vector.broadcast %30 : vector<1x8xf32> to vector<16x8xf32>
    %32 = arith.addf %29, %31 : vector<16x8xf32>
    %33 = vector.extract_strided_slice %24 {offsets = [0, 0], sizes = [8, 8], strides = [1, 1]} : vector<16x8xf32> to vector<8x8xf32>
    %34 = vector.extract_strided_slice %28 {offsets = [0, 0], sizes = [8, 8], strides = [1, 1]} : vector<16x8xf32> to vector<8x8xf32>
    %35 = vector.extract_strided_slice %32 {offsets = [0, 0], sizes = [8, 8], strides = [1, 1]} : vector<16x8xf32> to vector<8x8xf32>
    %cst_22 = arith.constant dense<0.000000e+00> : vector<8x8xf32>
    %36 = tpu.matmul %33, %34, %cst_22 {dimension_numbers = #tpu.dot_dimension_numbers<[1], [1], [0], [0], [0, 0, 1, 0], [], []>} : vector<8x8xf32>, vector<8x8xf32>, vector<8x8xf32> -> vector<8x8xf32>
    %cst_23 = arith.constant dense<0xFF800000> : vector<8xf32>
    %37 = vector.multi_reduction <maximumf>, %36, %cst_23 [1] : vector<8x8xf32> to vector<8xf32>
    %38 = vector.shape_cast %37 : vector<8xf32> to vector<8x1xf32>
    %39 = vector.broadcast %38 : vector<8x1xf32> to vector<8x8xf32>
    %40 = arith.subf %36, %39 : vector<8x8xf32>
    %41 = math.exp %40 : vector<8x8xf32>
    %cst_24 = arith.constant dense<0.000000e+00> : vector<8xf32>
    %42 = vector.multi_reduction <add>, %41, %cst_24 [1] : vector<8x8xf32> to vector<8xf32>
    %43 = vector.shape_cast %42 : vector<8xf32> to vector<8x1xf32>
    %44 = tpu.reciprocal %43 {approx = true} : vector<8x1xf32> -> vector<8x1xf32>
    %45 = vector.broadcast %44 : vector<8x1xf32> to vector<8x8xf32>
    %46 = arith.mulf %41, %45 : vector<8x8xf32>
    %cst_25 = arith.constant dense<0.000000e+00> : vector<8x8xf32>
    %47 = tpu.matmul %46, %35, %cst_25 {dimension_numbers = #tpu.dot_dimension_numbers<[1], [0], [0], [1], [0, 0, 1, 1], [], []>} : vector<8x8xf32>, vector<8x8xf32>, vector<8x8xf32> -> vector<8x8xf32>
    %c0_26 = arith.constant 0 : index
    %c0_27 = arith.constant 0 : index
    %48 = vector.load %arg16[%c0_26, %c0_27] : memref<16x32xf32, #tpu.memory_space<vmem>>, vector<8x8xf32>
    tpu.vector_store %arg16[%c0_26, %c0_27], %47 {strides = array<i32>} : memref<16x32xf32, #tpu.memory_space<vmem>>, vector<8x8xf32>,
    %49 = vector.extract_strided_slice %24 {offsets = [8, 0], sizes = [8, 8], strides = [1, 1]} : vector<16x8xf32> to vector<8x8xf32>
    %50 = vector.extract_strided_slice %28 {offsets = [8, 0], sizes = [8, 8], strides = [1, 1]} : vector<16x8xf32> to vector<8x8xf32>
    %51 = vector.extract_strided_slice %32 {offsets = [8, 0], sizes = [8, 8], strides = [1, 1]} : vector<16x8xf32> to vector<8x8xf32>
    %cst_28 = arith.constant dense<0.000000e+00> : vector<8x8xf32>
    %52 = tpu.matmul %49, %50, %cst_28 {dimension_numbers = #tpu.dot_dimension_numbers<[1], [1], [0], [0], [0, 0, 1, 0], [], []>} : vector<8x8xf32>, vector<8x8xf32>, vector<8x8xf32> -> vector<8x8xf32>
    %cst_29 = arith.constant dense<0xFF800000> : vector<8xf32>
    %53 = vector.multi_reduction <maximumf>, %52, %cst_29 [1] : vector<8x8xf32> to vector<8xf32>
    %54 = vector.shape_cast %53 : vector<8xf32> to vector<8x1xf32>
    %55 = vector.broadcast %54 : vector<8x1xf32> to vector<8x8xf32>
    %56 = arith.subf %52, %55 : vector<8x8xf32>
    %57 = math.exp %56 : vector<8x8xf32>
    %cst_30 = arith.constant dense<0.000000e+00> : vector<8xf32>
    %58 = vector.multi_reduction <add>, %57, %cst_30 [1] : vector<8x8xf32> to vector<8xf32>
    %59 = vector.shape_cast %58 : vector<8xf32> to vector<8x1xf32>
    %60 = tpu.reciprocal %59 {approx = true} : vector<8x1xf32> -> vector<8x1xf32>
    %61 = vector.broadcast %60 : vector<8x1xf32> to vector<8x8xf32>
    %62 = arith.mulf %57, %61 : vector<8x8xf32>
    %cst_31 = arith.constant dense<0.000000e+00> : vector<8x8xf32>
    %63 = tpu.matmul %62, %51, %cst_31 {dimension_numbers = #tpu.dot_dimension_numbers<[1], [0], [0], [1], [0, 0, 1, 1], [], []>} : vector<8x8xf32>, vector<8x8xf32>, vector<8x8xf32> -> vector<8x8xf32>
    %c8_32 = arith.constant 8 : index
    %c0_33 = arith.constant 0 : index
    %64 = vector.load %arg16[%c8_32, %c0_33] : memref<16x32xf32, #tpu.memory_space<vmem>>, vector<8x8xf32>
    tpu.vector_store %arg16[%c8_32, %c0_33], %63 {strides = array<i32>} : memref<16x32xf32, #tpu.memory_space<vmem>>, vector<8x8xf32>,
    %c1 = arith.constant 1 : index
    %c0_34 = arith.constant 0 : index
    %c0_35 = arith.constant 0 : index
    %65 = vector.load %arg2[%c1, %c0_34, %c0_35] : memref<12x32x8xf32, #tpu.memory_space<vmem>>, vector<1x32x8xf32>
    %66 = vector.shape_cast %65 : vector<1x32x8xf32> to vector<32x8xf32>
    %c5 = arith.constant 5 : index
    %c0_36 = arith.constant 0 : index
    %c0_37 = arith.constant 0 : index
    %67 = vector.load %arg2[%c5, %c0_36, %c0_37] : memref<12x32x8xf32, #tpu.memory_space<vmem>>, vector<1x32x8xf32>
    %68 = vector.shape_cast %67 : vector<1x32x8xf32> to vector<32x8xf32>
    %c9 = arith.constant 9 : index
    %c0_38 = arith.constant 0 : index
    %c0_39 = arith.constant 0 : index
    %69 = vector.load %arg2[%c9, %c0_38, %c0_39] : memref<12x32x8xf32, #tpu.memory_space<vmem>>, vector<1x32x8xf32>
    %70 = vector.shape_cast %69 : vector<1x32x8xf32> to vector<32x8xf32>
    %cst_40 = arith.constant dense<0.000000e+00> : vector<16x8xf32>
    %71 = tpu.matmul %2, %66, %cst_40 {dimension_numbers = #tpu.dot_dimension_numbers<[1], [0], [0], [1], [0, 0, 1, 1], [], []>} : vector<16x32xf32>, vector<32x8xf32>, vector<16x8xf32> -> vector<16x8xf32>
    %72 = vector.extract_strided_slice %3 {offsets = [1, 0], sizes = [1, 8], strides = [1, 1]} : vector<12x8xf32> to vector<1x8xf32>
    %73 = vector.broadcast %72 : vector<1x8xf32> to vector<16x8xf32>
    %74 = arith.addf %71, %73 : vector<16x8xf32>
    %cst_41 = arith.constant dense<0.000000e+00> : vector<16x8xf32>
    %75 = tpu.matmul %2, %68, %cst_41 {dimension_numbers = #tpu.dot_dimension_numbers<[1], [0], [0], [1], [0, 0, 1, 1], [], []>} : vector<16x32xf32>, vector<32x8xf32>, vector<16x8xf32> -> vector<16x8xf32>
    %76 = vector.extract_strided_slice %3 {offsets = [5, 0], sizes = [1, 8], strides = [1, 1]} : vector<12x8xf32> to vector<1x8xf32>
    %77 = vector.broadcast %76 : vector<1x8xf32> to vector<16x8xf32>
    %78 = arith.addf %75, %77 : vector<16x8xf32>
    %cst_42 = arith.constant dense<0.000000e+00> : vector<16x8xf32>
    %79 = tpu.matmul %2, %70, %cst_42 {dimension_numbers = #tpu.dot_dimension_numbers<[1], [0], [0], [1], [0, 0, 1, 1], [], []>} : vector<16x32xf32>, vector<32x8xf32>, vector<16x8xf32> -> vector<16x8xf32>
    %80 = vector.extract_strided_slice %3 {offsets = [9, 0], sizes = [1, 8], strides = [1, 1]} : vector<12x8xf32> to vector<1x8xf32>
    %81 = vector.broadcast %80 : vector<1x8xf32> to vector<16x8xf32>
    %82 = arith.addf %79, %81 : vector<16x8xf32>
    %83 = vector.extract_strided_slice %74 {offsets = [0, 0], sizes = [8, 8], strides = [1, 1]} : vector<16x8xf32> to vector<8x8xf32>
    %84 = vector.extract_strided_slice %78 {offsets = [0, 0], sizes = [8, 8], strides = [1, 1]} : vector<16x8xf32> to vector<8x8xf32>
    %85 = vector.extract_strided_slice %82 {offsets = [0, 0], sizes = [8, 8], strides = [1, 1]} : vector<16x8xf32> to vector<8x8xf32>
    %cst_43 = arith.constant dense<0.000000e+00> : vector<8x8xf32>
    %86 = tpu.matmul %83, %84, %cst_43 {dimension_numbers = #tpu.dot_dimension_numbers<[1], [1], [0], [0], [0, 0, 1, 0], [], []>} : vector<8x8xf32>, vector<8x8xf32>, vector<8x8xf32> -> vector<8x8xf32>
    %cst_44 = arith.constant dense<0xFF800000> : vector<8xf32>
    %87 = vector.multi_reduction <maximumf>, %86, %cst_44 [1] : vector<8x8xf32> to vector<8xf32>
    %88 = vector.shape_cast %87 : vector<8xf32> to vector<8x1xf32>
    %89 = vector.broadcast %88 : vector<8x1xf32> to vector<8x8xf32>
    %90 = arith.subf %86, %89 : vector<8x8xf32>
    %91 = math.exp %90 : vector<8x8xf32>
    %cst_45 = arith.constant dense<0.000000e+00> : vector<8xf32>
    %92 = vector.multi_reduction <add>, %91, %cst_45 [1] : vector<8x8xf32> to vector<8xf32>
    %93 = vector.shape_cast %92 : vector<8xf32> to vector<8x1xf32>
    %94 = tpu.reciprocal %93 {approx = true} : vector<8x1xf32> -> vector<8x1xf32>
    %95 = vector.broadcast %94 : vector<8x1xf32> to vector<8x8xf32>
    %96 = arith.mulf %91, %95 : vector<8x8xf32>
    %cst_46 = arith.constant dense<0.000000e+00> : vector<8x8xf32>
    %97 = tpu.matmul %96, %85, %cst_46 {dimension_numbers = #tpu.dot_dimension_numbers<[1], [0], [0], [1], [0, 0, 1, 1], [], []>} : vector<8x8xf32>, vector<8x8xf32>, vector<8x8xf32> -> vector<8x8xf32>
    %c0_47 = arith.constant 0 : index
    %c8_48 = arith.constant 8 : index
    %98 = vector.load %arg16[%c0_47, %c8_48] : memref<16x32xf32, #tpu.memory_space<vmem>>, vector<8x8xf32>
    tpu.vector_store %arg16[%c0_47, %c8_48], %97 {strides = array<i32>} : memref<16x32xf32, #tpu.memory_space<vmem>>, vector<8x8xf32>,
    %99 = vector.extract_strided_slice %74 {offsets = [8, 0], sizes = [8, 8], strides = [1, 1]} : vector<16x8xf32> to vector<8x8xf32>
    %100 = vector.extract_strided_slice %78 {offsets = [8, 0], sizes = [8, 8], strides = [1, 1]} : vector<16x8xf32> to vector<8x8xf32>
    %101 = vector.extract_strided_slice %82 {offsets = [8, 0], sizes = [8, 8], strides = [1, 1]} : vector<16x8xf32> to vector<8x8xf32>
    %cst_49 = arith.constant dense<0.000000e+00> : vector<8x8xf32>
    %102 = tpu.matmul %99, %100, %cst_49 {dimension_numbers = #tpu.dot_dimension_numbers<[1], [1], [0], [0], [0, 0, 1, 0], [], []>} : vector<8x8xf32>, vector<8x8xf32>, vector<8x8xf32> -> vector<8x8xf32>
    %cst_50 = arith.constant dense<0xFF800000> : vector<8xf32>
    %103 = vector.multi_reduction <maximumf>, %102, %cst_50 [1] : vector<8x8xf32> to vector<8xf32>
    %104 = vector.shape_cast %103 : vector<8xf32> to vector<8x1xf32>
    %105 = vector.broadcast %104 : vector<8x1xf32> to vector<8x8xf32>
    %106 = arith.subf %102, %105 : vector<8x8xf32>
    %107 = math.exp %106 : vector<8x8xf32>
    %cst_51 = arith.constant dense<0.000000e+00> : vector<8xf32>
    %108 = vector.multi_reduction <add>, %107, %cst_51 [1] : vector<8x8xf32> to vector<8xf32>
    %109 = vector.shape_cast %108 : vector<8xf32> to vector<8x1xf32>
    %110 = tpu.reciprocal %109 {approx = true} : vector<8x1xf32> -> vector<8x1xf32>
    %111 = vector.broadcast %110 : vector<8x1xf32> to vector<8x8xf32>
    %112 = arith.mulf %107, %111 : vector<8x8xf32>
    %cst_52 = arith.constant dense<0.000000e+00> : vector<8x8xf32>
    %113 = tpu.matmul %112, %101, %cst_52 {dimension_numbers = #tpu.dot_dimension_numbers<[1], [0], [0], [1], [0, 0, 1, 1], [], []>} : vector<8x8xf32>, vector<8x8xf32>, vector<8x8xf32> -> vector<8x8xf32>
    %c8_53 = arith.constant 8 : index
    %c8_54 = arith.constant 8 : index
    %114 = vector.load %arg16[%c8_53, %c8_54] : memref<16x32xf32, #tpu.memory_space<vmem>>, vector<8x8xf32>
    tpu.vector_store %arg16[%c8_53, %c8_54], %113 {strides = array<i32>} : memref<16x32xf32, #tpu.memory_space<vmem>>, vector<8x8xf32>,
    %c2 = arith.constant 2 : index
    %c0_55 = arith.constant 0 : index
    %c0_56 = arith.constant 0 : index
    %115 = vector.load %arg2[%c2, %c0_55, %c0_56] : memref<12x32x8xf32, #tpu.memory_space<vmem>>, vector<1x32x8xf32>
    %116 = vector.shape_cast %115 : vector<1x32x8xf32> to vector<32x8xf32>
    %c6 = arith.constant 6 : index
    %c0_57 = arith.constant 0 : index
    %c0_58 = arith.constant 0 : index
    %117 = vector.load %arg2[%c6, %c0_57, %c0_58] : memref<12x32x8xf32, #tpu.memory_space<vmem>>, vector<1x32x8xf32>
    %118 = vector.shape_cast %117 : vector<1x32x8xf32> to vector<32x8xf32>
    %c10 = arith.constant 10 : index
    %c0_59 = arith.constant 0 : index
    %c0_60 = arith.constant 0 : index
    %119 = vector.load %arg2[%c10, %c0_59, %c0_60] : memref<12x32x8xf32, #tpu.memory_space<vmem>>, vector<1x32x8xf32>
    %120 = vector.shape_cast %119 : vector<1x32x8xf32> to vector<32x8xf32>
    %cst_61 = arith.constant dense<0.000000e+00> : vector<16x8xf32>
    %121 = tpu.matmul %2, %116, %cst_61 {dimension_numbers = #tpu.dot_dimension_numbers<[1], [0], [0], [1], [0, 0, 1, 1], [], []>} : vector<16x32xf32>, vector<32x8xf32>, vector<16x8xf32> -> vector<16x8xf32>
    %122 = vector.extract_strided_slice %3 {offsets = [2, 0], sizes = [1, 8], strides = [1, 1]} : vector<12x8xf32> to vector<1x8xf32>
    %123 = vector.broadcast %122 : vector<1x8xf32> to vector<16x8xf32>
    %124 = arith.addf %121, %123 : vector<16x8xf32>
    %cst_62 = arith.constant dense<0.000000e+00> : vector<16x8xf32>
    %125 = tpu.matmul %2, %118, %cst_62 {dimension_numbers = #tpu.dot_dimension_numbers<[1], [0], [0], [1], [0, 0, 1, 1], [], []>} : vector<16x32xf32>, vector<32x8xf32>, vector<16x8xf32> -> vector<16x8xf32>
    %126 = vector.extract_strided_slice %3 {offsets = [6, 0], sizes = [1, 8], strides = [1, 1]} : vector<12x8xf32> to vector<1x8xf32>
    %127 = vector.broadcast %126 : vector<1x8xf32> to vector<16x8xf32>
    %128 = arith.addf %125, %127 : vector<16x8xf32>
    %cst_63 = arith.constant dense<0.000000e+00> : vector<16x8xf32>
    %129 = tpu.matmul %2, %120, %cst_63 {dimension_numbers = #tpu.dot_dimension_numbers<[1], [0], [0], [1], [0, 0, 1, 1], [], []>} : vector<16x32xf32>, vector<32x8xf32>, vector<16x8xf32> -> vector<16x8xf32>
    %130 = vector.extract_strided_slice %3 {offsets = [10, 0], sizes = [1, 8], strides = [1, 1]} : vector<12x8xf32> to vector<1x8xf32>
    %131 = vector.broadcast %130 : vector<1x8xf32> to vector<16x8xf32>
    %132 = arith.addf %129, %131 : vector<16x8xf32>
    %133 = vector.extract_strided_slice %124 {offsets = [0, 0], sizes = [8, 8], strides = [1, 1]} : vector<16x8xf32> to vector<8x8xf32>
    %134 = vector.extract_strided_slice %128 {offsets = [0, 0], sizes = [8, 8], strides = [1, 1]} : vector<16x8xf32> to vector<8x8xf32>
    %135 = vector.extract_strided_slice %132 {offsets = [0, 0], sizes = [8, 8], strides = [1, 1]} : vector<16x8xf32> to vector<8x8xf32>
    %cst_64 = arith.constant dense<0.000000e+00> : vector<8x8xf32>
    %136 = tpu.matmul %133, %134, %cst_64 {dimension_numbers = #tpu.dot_dimension_numbers<[1], [1], [0], [0], [0, 0, 1, 0], [], []>} : vector<8x8xf32>, vector<8x8xf32>, vector<8x8xf32> -> vector<8x8xf32>
    %cst_65 = arith.constant dense<0xFF800000> : vector<8xf32>
    %137 = vector.multi_reduction <maximumf>, %136, %cst_65 [1] : vector<8x8xf32> to vector<8xf32>
    %138 = vector.shape_cast %137 : vector<8xf32> to vector<8x1xf32>
    %139 = vector.broadcast %138 : vector<8x1xf32> to vector<8x8xf32>
    %140 = arith.subf %136, %139 : vector<8x8xf32>
    %141 = math.exp %140 : vector<8x8xf32>
    %cst_66 = arith.constant dense<0.000000e+00> : vector<8xf32>
    %142 = vector.multi_reduction <add>, %141, %cst_66 [1] : vector<8x8xf32> to vector<8xf32>
    %143 = vector.shape_cast %142 : vector<8xf32> to vector<8x1xf32>
    %144 = tpu.reciprocal %143 {approx = true} : vector<8x1xf32> -> vector<8x1xf32>
    %145 = vector.broadcast %144 : vector<8x1xf32> to vector<8x8xf32>
    %146 = arith.mulf %141, %145 : vector<8x8xf32>
    %cst_67 = arith.constant dense<0.000000e+00> : vector<8x8xf32>
    %147 = tpu.matmul %146, %135, %cst_67 {dimension_numbers = #tpu.dot_dimension_numbers<[1], [0], [0], [1], [0, 0, 1, 1], [], []>} : vector<8x8xf32>, vector<8x8xf32>, vector<8x8xf32> -> vector<8x8xf32>
    %c0_68 = arith.constant 0 : index
    %c16 = arith.constant 16 : index
    %148 = vector.load %arg16[%c0_68, %c16] : memref<16x32xf32, #tpu.memory_space<vmem>>, vector<8x8xf32>
    tpu.vector_store %arg16[%c0_68, %c16], %147 {strides = array<i32>} : memref<16x32xf32, #tpu.memory_space<vmem>>, vector<8x8xf32>,
    %149 = vector.extract_strided_slice %124 {offsets = [8, 0], sizes = [8, 8], strides = [1, 1]} : vector<16x8xf32> to vector<8x8xf32>
    %150 = vector.extract_strided_slice %128 {offsets = [8, 0], sizes = [8, 8], strides = [1, 1]} : vector<16x8xf32> to vector<8x8xf32>
    %151 = vector.extract_strided_slice %132 {offsets = [8, 0], sizes = [8, 8], strides = [1, 1]} : vector<16x8xf32> to vector<8x8xf32>
    %cst_69 = arith.constant dense<0.000000e+00> : vector<8x8xf32>
    %152 = tpu.matmul %149, %150, %cst_69 {dimension_numbers = #tpu.dot_dimension_numbers<[1], [1], [0], [0], [0, 0, 1, 0], [], []>} : vector<8x8xf32>, vector<8x8xf32>, vector<8x8xf32> -> vector<8x8xf32>
    %cst_70 = arith.constant dense<0xFF800000> : vector<8xf32>
    %153 = vector.multi_reduction <maximumf>, %152, %cst_70 [1] : vector<8x8xf32> to vector<8xf32>
    %154 = vector.shape_cast %153 : vector<8xf32> to vector<8x1xf32>
    %155 = vector.broadcast %154 : vector<8x1xf32> to vector<8x8xf32>
    %156 = arith.subf %152, %155 : vector<8x8xf32>
    %157 = math.exp %156 : vector<8x8xf32>
    %cst_71 = arith.constant dense<0.000000e+00> : vector<8xf32>
    %158 = vector.multi_reduction <add>, %157, %cst_71 [1] : vector<8x8xf32> to vector<8xf32>
    %159 = vector.shape_cast %158 : vector<8xf32> to vector<8x1xf32>
    %160 = tpu.reciprocal %159 {approx = true} : vector<8x1xf32> -> vector<8x1xf32>
    %161 = vector.broadcast %160 : vector<8x1xf32> to vector<8x8xf32>
    %162 = arith.mulf %157, %161 : vector<8x8xf32>
    %cst_72 = arith.constant dense<0.000000e+00> : vector<8x8xf32>
    %163 = tpu.matmul %162, %151, %cst_72 {dimension_numbers = #tpu.dot_dimension_numbers<[1], [0], [0], [1], [0, 0, 1, 1], [], []>} : vector<8x8xf32>, vector<8x8xf32>, vector<8x8xf32> -> vector<8x8xf32>
    %c8_73 = arith.constant 8 : index
    %c16_74 = arith.constant 16 : index
    %164 = vector.load %arg16[%c8_73, %c16_74] : memref<16x32xf32, #tpu.memory_space<vmem>>, vector<8x8xf32>
    tpu.vector_store %arg16[%c8_73, %c16_74], %163 {strides = array<i32>} : memref<16x32xf32, #tpu.memory_space<vmem>>, vector<8x8xf32>,
    %c3 = arith.constant 3 : index
    %c0_75 = arith.constant 0 : index
    %c0_76 = arith.constant 0 : index
    %165 = vector.load %arg2[%c3, %c0_75, %c0_76] : memref<12x32x8xf32, #tpu.memory_space<vmem>>, vector<1x32x8xf32>
    %166 = vector.shape_cast %165 : vector<1x32x8xf32> to vector<32x8xf32>
    %c7 = arith.constant 7 : index
    %c0_77 = arith.constant 0 : index
    %c0_78 = arith.constant 0 : index
    %167 = vector.load %arg2[%c7, %c0_77, %c0_78] : memref<12x32x8xf32, #tpu.memory_space<vmem>>, vector<1x32x8xf32>
    %168 = vector.shape_cast %167 : vector<1x32x8xf32> to vector<32x8xf32>
    %c11 = arith.constant 11 : index
    %c0_79 = arith.constant 0 : index
    %c0_80 = arith.constant 0 : index
    %169 = vector.load %arg2[%c11, %c0_79, %c0_80] : memref<12x32x8xf32, #tpu.memory_space<vmem>>, vector<1x32x8xf32>
    %170 = vector.shape_cast %169 : vector<1x32x8xf32> to vector<32x8xf32>
    %cst_81 = arith.constant dense<0.000000e+00> : vector<16x8xf32>
    %171 = tpu.matmul %2, %166, %cst_81 {dimension_numbers = #tpu.dot_dimension_numbers<[1], [0], [0], [1], [0, 0, 1, 1], [], []>} : vector<16x32xf32>, vector<32x8xf32>, vector<16x8xf32> -> vector<16x8xf32>
    %172 = vector.extract_strided_slice %3 {offsets = [3, 0], sizes = [1, 8], strides = [1, 1]} : vector<12x8xf32> to vector<1x8xf32>
    %173 = vector.broadcast %172 : vector<1x8xf32> to vector<16x8xf32>
    %174 = arith.addf %171, %173 : vector<16x8xf32>
    %cst_82 = arith.constant dense<0.000000e+00> : vector<16x8xf32>
    %175 = tpu.matmul %2, %168, %cst_82 {dimension_numbers = #tpu.dot_dimension_numbers<[1], [0], [0], [1], [0, 0, 1, 1], [], []>} : vector<16x32xf32>, vector<32x8xf32>, vector<16x8xf32> -> vector<16x8xf32>
    %176 = vector.extract_strided_slice %3 {offsets = [7, 0], sizes = [1, 8], strides = [1, 1]} : vector<12x8xf32> to vector<1x8xf32>
    %177 = vector.broadcast %176 : vector<1x8xf32> to vector<16x8xf32>
    %178 = arith.addf %175, %177 : vector<16x8xf32>
    %cst_83 = arith.constant dense<0.000000e+00> : vector<16x8xf32>
    %179 = tpu.matmul %2, %170, %cst_83 {dimension_numbers = #tpu.dot_dimension_numbers<[1], [0], [0], [1], [0, 0, 1, 1], [], []>} : vector<16x32xf32>, vector<32x8xf32>, vector<16x8xf32> -> vector<16x8xf32>
    %180 = vector.extract_strided_slice %3 {offsets = [11, 0], sizes = [1, 8], strides = [1, 1]} : vector<12x8xf32> to vector<1x8xf32>
    %181 = vector.broadcast %180 : vector<1x8xf32> to vector<16x8xf32>
    %182 = arith.addf %179, %181 : vector<16x8xf32>
    %183 = vector.extract_strided_slice %174 {offsets = [0, 0], sizes = [8, 8], strides = [1, 1]} : vector<16x8xf32> to vector<8x8xf32>
    %184 = vector.extract_strided_slice %178 {offsets = [0, 0], sizes = [8, 8], strides = [1, 1]} : vector<16x8xf32> to vector<8x8xf32>
    %185 = vector.extract_strided_slice %182 {offsets = [0, 0], sizes = [8, 8], strides = [1, 1]} : vector<16x8xf32> to vector<8x8xf32>
    %cst_84 = arith.constant dense<0.000000e+00> : vector<8x8xf32>
    %186 = tpu.matmul %183, %184, %cst_84 {dimension_numbers = #tpu.dot_dimension_numbers<[1], [1], [0], [0], [0, 0, 1, 0], [], []>} : vector<8x8xf32>, vector<8x8xf32>, vector<8x8xf32> -> vector<8x8xf32>
    %cst_85 = arith.constant dense<0xFF800000> : vector<8xf32>
    %187 = vector.multi_reduction <maximumf>, %186, %cst_85 [1] : vector<8x8xf32> to vector<8xf32>
    %188 = vector.shape_cast %187 : vector<8xf32> to vector<8x1xf32>
    %189 = vector.broadcast %188 : vector<8x1xf32> to vector<8x8xf32>
    %190 = arith.subf %186, %189 : vector<8x8xf32>
    %191 = math.exp %190 : vector<8x8xf32>
    %cst_86 = arith.constant dense<0.000000e+00> : vector<8xf32>
    %192 = vector.multi_reduction <add>, %191, %cst_86 [1] : vector<8x8xf32> to vector<8xf32>
    %193 = vector.shape_cast %192 : vector<8xf32> to vector<8x1xf32>
    %194 = tpu.reciprocal %193 {approx = true} : vector<8x1xf32> -> vector<8x1xf32>
    %195 = vector.broadcast %194 : vector<8x1xf32> to vector<8x8xf32>
    %196 = arith.mulf %191, %195 : vector<8x8xf32>
    %cst_87 = arith.constant dense<0.000000e+00> : vector<8x8xf32>
    %197 = tpu.matmul %196, %185, %cst_87 {dimension_numbers = #tpu.dot_dimension_numbers<[1], [0], [0], [1], [0, 0, 1, 1], [], []>} : vector<8x8xf32>, vector<8x8xf32>, vector<8x8xf32> -> vector<8x8xf32>
    %c0_88 = arith.constant 0 : index
    %c24 = arith.constant 24 : index
    %198 = vector.load %arg16[%c0_88, %c24] : memref<16x32xf32, #tpu.memory_space<vmem>>, vector<8x8xf32>
    tpu.vector_store %arg16[%c0_88, %c24], %197 {strides = array<i32>} : memref<16x32xf32, #tpu.memory_space<vmem>>, vector<8x8xf32>,
    %199 = vector.extract_strided_slice %174 {offsets = [8, 0], sizes = [8, 8], strides = [1, 1]} : vector<16x8xf32> to vector<8x8xf32>
    %200 = vector.extract_strided_slice %178 {offsets = [8, 0], sizes = [8, 8], strides = [1, 1]} : vector<16x8xf32> to vector<8x8xf32>
    %201 = vector.extract_strided_slice %182 {offsets = [8, 0], sizes = [8, 8], strides = [1, 1]} : vector<16x8xf32> to vector<8x8xf32>
    %cst_89 = arith.constant dense<0.000000e+00> : vector<8x8xf32>
    %202 = tpu.matmul %199, %200, %cst_89 {dimension_numbers = #tpu.dot_dimension_numbers<[1], [1], [0], [0], [0, 0, 1, 0], [], []>} : vector<8x8xf32>, vector<8x8xf32>, vector<8x8xf32> -> vector<8x8xf32>
    %cst_90 = arith.constant dense<0xFF800000> : vector<8xf32>
    %203 = vector.multi_reduction <maximumf>, %202, %cst_90 [1] : vector<8x8xf32> to vector<8xf32>
    %204 = vector.shape_cast %203 : vector<8xf32> to vector<8x1xf32>
    %205 = vector.broadcast %204 : vector<8x1xf32> to vector<8x8xf32>
    %206 = arith.subf %202, %205 : vector<8x8xf32>
    %207 = math.exp %206 : vector<8x8xf32>
    %cst_91 = arith.constant dense<0.000000e+00> : vector<8xf32>
    %208 = vector.multi_reduction <add>, %207, %cst_91 [1] : vector<8x8xf32> to vector<8xf32>
    %209 = vector.shape_cast %208 : vector<8xf32> to vector<8x1xf32>
    %210 = tpu.reciprocal %209 {approx = true} : vector<8x1xf32> -> vector<8x1xf32>
    %211 = vector.broadcast %210 : vector<8x1xf32> to vector<8x8xf32>
    %212 = arith.mulf %207, %211 : vector<8x8xf32>
    %cst_92 = arith.constant dense<0.000000e+00> : vector<8x8xf32>
    %213 = tpu.matmul %212, %201, %cst_92 {dimension_numbers = #tpu.dot_dimension_numbers<[1], [0], [0], [1], [0, 0, 1, 1], [], []>} : vector<8x8xf32>, vector<8x8xf32>, vector<8x8xf32> -> vector<8x8xf32>
    %c8_93 = arith.constant 8 : index
    %c24_94 = arith.constant 24 : index
    %214 = vector.load %arg16[%c8_93, %c24_94] : memref<16x32xf32, #tpu.memory_space<vmem>>, vector<8x8xf32>
    tpu.vector_store %arg16[%c8_93, %c24_94], %213 {strides = array<i32>} : memref<16x32xf32, #tpu.memory_space<vmem>>, vector<8x8xf32>,
    %c0_95 = arith.constant 0 : index
    %c0_96 = arith.constant 0 : index
    %215 = vector.load %arg16[%c0_95, %c0_96] : memref<16x32xf32, #tpu.memory_space<vmem>>, vector<16x32xf32>
    %cst_97 = arith.constant dense<0.000000e+00> : vector<16x32xf32>
    %216 = tpu.matmul %215, %4, %cst_97 {dimension_numbers = #tpu.dot_dimension_numbers<[1], [0], [0], [1], [0, 0, 1, 1], [], []>} : vector<16x32xf32>, vector<32x32xf32>, vector<16x32xf32> -> vector<16x32xf32>
    %217 = vector.broadcast %8 : vector<1x32xf32> to vector<16x32xf32>
    %218 = arith.addf %216, %217 : vector<16x32xf32>
    %219 = arith.addf %2, %218 : vector<16x32xf32>
    %cst_98 = arith.constant dense<0.000000e+00> : vector<16xf32>
    %220 = vector.multi_reduction <add>, %219, %cst_98 [1] : vector<16x32xf32> to vector<16xf32>
    %221 = vector.shape_cast %220 : vector<16xf32> to vector<16x1xf32>
    %cst_99 = arith.constant 3.200000e+01 : f32
    %222 = vector.broadcast %cst_99 : f32 to vector<16x1xf32>
    %223 = arith.divf %221, %222 : vector<16x1xf32>
    %224 = vector.broadcast %223 : vector<16x1xf32> to vector<16x32xf32>
    %225 = arith.subf %219, %224 : vector<16x32xf32>
    %226 = arith.mulf %225, %225 : vector<16x32xf32>
    %cst_100 = arith.constant dense<0.000000e+00> : vector<16xf32>
    %227 = vector.multi_reduction <add>, %226, %cst_100 [1] : vector<16x32xf32> to vector<16xf32>
    %228 = vector.shape_cast %227 : vector<16xf32> to vector<16x1xf32>
    %cst_101 = arith.constant 3.200000e+01 : f32
    %229 = vector.broadcast %cst_101 : f32 to vector<16x1xf32>
    %230 = arith.divf %228, %229 : vector<16x1xf32>
    %231 = vector.broadcast %223 : vector<16x1xf32> to vector<16x32xf32>
    %232 = arith.subf %219, %231 : vector<16x32xf32>
    %cst_102 = arith.constant 9.99999974E-6 : f32
    %233 = vector.broadcast %cst_102 : f32 to vector<16x1xf32>
    %234 = arith.addf %230, %233 : vector<16x1xf32>
    %235 = math.rsqrt %234 : vector<16x1xf32>
    %236 = vector.broadcast %235 : vector<16x1xf32> to vector<16x32xf32>
    %237 = arith.mulf %232, %236 : vector<16x32xf32>
    %238 = vector.broadcast %9 : vector<1x32xf32> to vector<16x32xf32>
    %239 = arith.mulf %237, %238 : vector<16x32xf32>
    %240 = vector.broadcast %10 : vector<1x32xf32> to vector<16x32xf32>
    %241 = arith.addf %239, %240 : vector<16x32xf32>
    %cst_103 = arith.constant dense<0.000000e+00> : vector<16x64xf32>
    %242 = tpu.matmul %241, %5, %cst_103 {dimension_numbers = #tpu.dot_dimension_numbers<[1], [0], [0], [1], [0, 0, 1, 1], [], []>} : vector<16x32xf32>, vector<32x64xf32>, vector<16x64xf32> -> vector<16x64xf32>
    %243 = vector.broadcast %11 : vector<1x64xf32> to vector<16x64xf32>
    %244 = arith.addf %242, %243 : vector<16x64xf32>
    %cst_104 = arith.constant 0.000000e+00 : f32
    %245 = vector.broadcast %cst_104 : f32 to vector<16x64xf32>
    %246 = arith.maximumf %244, %245 : vector<16x64xf32>
    %cst_105 = arith.constant dense<0.000000e+00> : vector<16x32xf32>
    %247 = tpu.matmul %246, %6, %cst_105 {dimension_numbers = #tpu.dot_dimension_numbers<[1], [0], [0], [1], [0, 0, 1, 1], [], []>} : vector<16x64xf32>, vector<64x32xf32>, vector<16x32xf32> -> vector<16x32xf32>
    %248 = vector.broadcast %12 : vector<1x32xf32> to vector<16x32xf32>
    %249 = arith.addf %247, %248 : vector<16x32xf32>
    %250 = arith.addf %241, %249 : vector<16x32xf32>
    %cst_106 = arith.constant dense<0.000000e+00> : vector<16xf32>
    %251 = vector.multi_reduction <add>, %250, %cst_106 [1] : vector<16x32xf32> to vector<16xf32>
    %252 = vector.shape_cast %251 : vector<16xf32> to vector<16x1xf32>
    %cst_107 = arith.constant 3.200000e+01 : f32
    %253 = vector.broadcast %cst_107 : f32 to vector<16x1xf32>
    %254 = arith.divf %252, %253 : vector<16x1xf32>
    %255 = vector.broadcast %254 : vector<16x1xf32> to vector<16x32xf32>
    %256 = arith.subf %250, %255 : vector<16x32xf32>
    %257 = arith.mulf %256, %256 : vector<16x32xf32>
    %cst_108 = arith.constant dense<0.000000e+00> : vector<16xf32>
    %258 = vector.multi_reduction <add>, %257, %cst_108 [1] : vector<16x32xf32> to vector<16xf32>
    %259 = vector.shape_cast %258 : vector<16xf32> to vector<16x1xf32>
    %cst_109 = arith.constant 3.200000e+01 : f32
    %260 = vector.broadcast %cst_109 : f32 to vector<16x1xf32>
    %261 = arith.divf %259, %260 : vector<16x1xf32>
    %262 = vector.broadcast %254 : vector<16x1xf32> to vector<16x32xf32>
    %263 = arith.subf %250, %262 : vector<16x32xf32>
    %cst_110 = arith.constant 9.99999974E-6 : f32
    %264 = vector.broadcast %cst_110 : f32 to vector<16x1xf32>
    %265 = arith.addf %261, %264 : vector<16x1xf32>
    %266 = math.rsqrt %265 : vector<16x1xf32>
    %267 = vector.broadcast %266 : vector<16x1xf32> to vector<16x32xf32>
    %268 = arith.mulf %263, %267 : vector<16x32xf32>
    %269 = vector.broadcast %13 : vector<1x32xf32> to vector<16x32xf32>
    %270 = arith.mulf %268, %269 : vector<16x32xf32>
    %271 = vector.broadcast %14 : vector<1x32xf32> to vector<16x32xf32>
    %272 = arith.addf %270, %271 : vector<16x32xf32>
    %c0_111 = arith.constant 0 : index
    %c0_112 = arith.constant 0 : index
    %273 = vector.load %arg9[%c0_111, %c0_112] : memref<12x8xf32, #tpu.memory_space<vmem>>, vector<12x8xf32>
    %c0_113 = arith.constant 0 : index
    %c0_114 = arith.constant 0 : index
    %274 = vector.load %arg10[%c0_113, %c0_114] : memref<32x32xf32, #tpu.memory_space<vmem>>, vector<32x32xf32>
    %c0_115 = arith.constant 0 : index
    %c0_116 = arith.constant 0 : index
    %275 = vector.load %arg11[%c0_115, %c0_116] : memref<32x64xf32, #tpu.memory_space<vmem>>, vector<32x64xf32>
    %c0_117 = arith.constant 0 : index
    %c0_118 = arith.constant 0 : index
    %276 = vector.load %arg12[%c0_117, %c0_118] : memref<64x32xf32, #tpu.memory_space<vmem>>, vector<64x32xf32>
    %c0_119 = arith.constant 0 : index
    %c0_120 = arith.constant 0 : index
    %277 = vector.load %arg13[%c0_119, %c0_120] : memref<7x64xf32, #tpu.memory_space<vmem>>, vector<7x64xf32>
    %278 = vector.extract_strided_slice %277 {offsets = [0, 0], sizes = [1, 32], strides = [1, 1]} : vector<7x64xf32> to vector<1x32xf32>
    %279 = vector.extract_strided_slice %277 {offsets = [1, 0], sizes = [1, 32], strides = [1, 1]} : vector<7x64xf32> to vector<1x32xf32>
    %280 = vector.extract_strided_slice %277 {offsets = [2, 0], sizes = [1, 32], strides = [1, 1]} : vector<7x64xf32> to vector<1x32xf32>
    %281 = vector.extract_strided_slice %277 {offsets = [3, 0], sizes = [1, 64], strides = [1, 1]} : vector<7x64xf32> to vector<1x64xf32>
    %282 = vector.extract_strided_slice %277 {offsets = [4, 0], sizes = [1, 32], strides = [1, 1]} : vector<7x64xf32> to vector<1x32xf32>
    %283 = vector.extract_strided_slice %277 {offsets = [5, 0], sizes = [1, 32], strides = [1, 1]} : vector<7x64xf32> to vector<1x32xf32>
    %284 = vector.extract_strided_slice %277 {offsets = [6, 0], sizes = [1, 32], strides = [1, 1]} : vector<7x64xf32> to vector<1x32xf32>
    %c0_121 = arith.constant 0 : index
    %c0_122 = arith.constant 0 : index
    %c0_123 = arith.constant 0 : index
    %285 = vector.load %arg8[%c0_121, %c0_122, %c0_123] : memref<12x32x8xf32, #tpu.memory_space<vmem>>, vector<1x32x8xf32>
    %286 = vector.shape_cast %285 : vector<1x32x8xf32> to vector<32x8xf32>
    %c4_124 = arith.constant 4 : index
    %c0_125 = arith.constant 0 : index
    %c0_126 = arith.constant 0 : index
    %287 = vector.load %arg8[%c4_124, %c0_125, %c0_126] : memref<12x32x8xf32, #tpu.memory_space<vmem>>, vector<1x32x8xf32>
    %288 = vector.shape_cast %287 : vector<1x32x8xf32> to vector<32x8xf32>
    %c8_127 = arith.constant 8 : index
    %c0_128 = arith.constant 0 : index
    %c0_129 = arith.constant 0 : index
    %289 = vector.load %arg8[%c8_127, %c0_128, %c0_129] : memref<12x32x8xf32, #tpu.memory_space<vmem>>, vector<1x32x8xf32>
    %290 = vector.shape_cast %289 : vector<1x32x8xf32> to vector<32x8xf32>
    %cst_130 = arith.constant dense<0.000000e+00> : vector<16x8xf32>
    %291 = tpu.matmul %272, %286, %cst_130 {dimension_numbers = #tpu.dot_dimension_numbers<[1], [0], [0], [1], [0, 0, 1, 1], [], []>} : vector<16x32xf32>, vector<32x8xf32>, vector<16x8xf32> -> vector<16x8xf32>
    %292 = vector.extract_strided_slice %273 {offsets = [0, 0], sizes = [1, 8], strides = [1, 1]} : vector<12x8xf32> to vector<1x8xf32>
    %293 = vector.broadcast %292 : vector<1x8xf32> to vector<16x8xf32>
    %294 = arith.addf %291, %293 : vector<16x8xf32>
    %cst_131 = arith.constant dense<0.000000e+00> : vector<16x8xf32>
    %295 = tpu.matmul %272, %288, %cst_131 {dimension_numbers = #tpu.dot_dimension_numbers<[1], [0], [0], [1], [0, 0, 1, 1], [], []>} : vector<16x32xf32>, vector<32x8xf32>, vector<16x8xf32> -> vector<16x8xf32>
    %296 = vector.extract_strided_slice %273 {offsets = [4, 0], sizes = [1, 8], strides = [1, 1]} : vector<12x8xf32> to vector<1x8xf32>
    %297 = vector.broadcast %296 : vector<1x8xf32> to vector<16x8xf32>
    %298 = arith.addf %295, %297 : vector<16x8xf32>
    %cst_132 = arith.constant dense<0.000000e+00> : vector<16x8xf32>
    %299 = tpu.matmul %272, %290, %cst_132 {dimension_numbers = #tpu.dot_dimension_numbers<[1], [0], [0], [1], [0, 0, 1, 1], [], []>} : vector<16x32xf32>, vector<32x8xf32>, vector<16x8xf32> -> vector<16x8xf32>
    %300 = vector.extract_strided_slice %273 {offsets = [8, 0], sizes = [1, 8], strides = [1, 1]} : vector<12x8xf32> to vector<1x8xf32>
    %301 = vector.broadcast %300 : vector<1x8xf32> to vector<16x8xf32>
    %302 = arith.addf %299, %301 : vector<16x8xf32>
    %303 = vector.extract_strided_slice %294 {offsets = [0, 0], sizes = [8, 8], strides = [1, 1]} : vector<16x8xf32> to vector<8x8xf32>
    %304 = vector.extract_strided_slice %298 {offsets = [0, 0], sizes = [8, 8], strides = [1, 1]} : vector<16x8xf32> to vector<8x8xf32>
    %305 = vector.extract_strided_slice %302 {offsets = [0, 0], sizes = [8, 8], strides = [1, 1]} : vector<16x8xf32> to vector<8x8xf32>
    %cst_133 = arith.constant dense<0.000000e+00> : vector<8x8xf32>
    %306 = tpu.matmul %303, %304, %cst_133 {dimension_numbers = #tpu.dot_dimension_numbers<[1], [1], [0], [0], [0, 0, 1, 0], [], []>} : vector<8x8xf32>, vector<8x8xf32>, vector<8x8xf32> -> vector<8x8xf32>
    %cst_134 = arith.constant dense<0xFF800000> : vector<8xf32>
    %307 = vector.multi_reduction <maximumf>, %306, %cst_134 [1] : vector<8x8xf32> to vector<8xf32>
    %308 = vector.shape_cast %307 : vector<8xf32> to vector<8x1xf32>
    %309 = vector.broadcast %308 : vector<8x1xf32> to vector<8x8xf32>
    %310 = arith.subf %306, %309 : vector<8x8xf32>
    %311 = math.exp %310 : vector<8x8xf32>
    %cst_135 = arith.constant dense<0.000000e+00> : vector<8xf32>
    %312 = vector.multi_reduction <add>, %311, %cst_135 [1] : vector<8x8xf32> to vector<8xf32>
    %313 = vector.shape_cast %312 : vector<8xf32> to vector<8x1xf32>
    %314 = tpu.reciprocal %313 {approx = true} : vector<8x1xf32> -> vector<8x1xf32>
    %315 = vector.broadcast %314 : vector<8x1xf32> to vector<8x8xf32>
    %316 = arith.mulf %311, %315 : vector<8x8xf32>
    %cst_136 = arith.constant dense<0.000000e+00> : vector<8x8xf32>
    %317 = tpu.matmul %316, %305, %cst_136 {dimension_numbers = #tpu.dot_dimension_numbers<[1], [0], [0], [1], [0, 0, 1, 1], [], []>} : vector<8x8xf32>, vector<8x8xf32>, vector<8x8xf32> -> vector<8x8xf32>
    %c0_137 = arith.constant 0 : index
    %c0_138 = arith.constant 0 : index
    %318 = vector.load %arg16[%c0_137, %c0_138] : memref<16x32xf32, #tpu.memory_space<vmem>>, vector<8x8xf32>
    tpu.vector_store %arg16[%c0_137, %c0_138], %317 {strides = array<i32>} : memref<16x32xf32, #tpu.memory_space<vmem>>, vector<8x8xf32>,
    %319 = vector.extract_strided_slice %294 {offsets = [8, 0], sizes = [8, 8], strides = [1, 1]} : vector<16x8xf32> to vector<8x8xf32>
    %320 = vector.extract_strided_slice %298 {offsets = [8, 0], sizes = [8, 8], strides = [1, 1]} : vector<16x8xf32> to vector<8x8xf32>
    %321 = vector.extract_strided_slice %302 {offsets = [8, 0], sizes = [8, 8], strides = [1, 1]} : vector<16x8xf32> to vector<8x8xf32>
    %cst_139 = arith.constant dense<0.000000e+00> : vector<8x8xf32>
    %322 = tpu.matmul %319, %320, %cst_139 {dimension_numbers = #tpu.dot_dimension_numbers<[1], [1], [0], [0], [0, 0, 1, 0], [], []>} : vector<8x8xf32>, vector<8x8xf32>, vector<8x8xf32> -> vector<8x8xf32>
    %cst_140 = arith.constant dense<0xFF800000> : vector<8xf32>
    %323 = vector.multi_reduction <maximumf>, %322, %cst_140 [1] : vector<8x8xf32> to vector<8xf32>
    %324 = vector.shape_cast %323 : vector<8xf32> to vector<8x1xf32>
    %325 = vector.broadcast %324 : vector<8x1xf32> to vector<8x8xf32>
    %326 = arith.subf %322, %325 : vector<8x8xf32>
    %327 = math.exp %326 : vector<8x8xf32>
    %cst_141 = arith.constant dense<0.000000e+00> : vector<8xf32>
    %328 = vector.multi_reduction <add>, %327, %cst_141 [1] : vector<8x8xf32> to vector<8xf32>
    %329 = vector.shape_cast %328 : vector<8xf32> to vector<8x1xf32>
    %330 = tpu.reciprocal %329 {approx = true} : vector<8x1xf32> -> vector<8x1xf32>
    %331 = vector.broadcast %330 : vector<8x1xf32> to vector<8x8xf32>
    %332 = arith.mulf %327, %331 : vector<8x8xf32>
    %cst_142 = arith.constant dense<0.000000e+00> : vector<8x8xf32>
    %333 = tpu.matmul %332, %321, %cst_142 {dimension_numbers = #tpu.dot_dimension_numbers<[1], [0], [0], [1], [0, 0, 1, 1], [], []>} : vector<8x8xf32>, vector<8x8xf32>, vector<8x8xf32> -> vector<8x8xf32>
    %c8_143 = arith.constant 8 : index
    %c0_144 = arith.constant 0 : index
    %334 = vector.load %arg16[%c8_143, %c0_144] : memref<16x32xf32, #tpu.memory_space<vmem>>, vector<8x8xf32>
    tpu.vector_store %arg16[%c8_143, %c0_144], %333 {strides = array<i32>} : memref<16x32xf32, #tpu.memory_space<vmem>>, vector<8x8xf32>,
    %c1_145 = arith.constant 1 : index
    %c0_146 = arith.constant 0 : index
    %c0_147 = arith.constant 0 : index
    %335 = vector.load %arg8[%c1_145, %c0_146, %c0_147] : memref<12x32x8xf32, #tpu.memory_space<vmem>>, vector<1x32x8xf32>
    %336 = vector.shape_cast %335 : vector<1x32x8xf32> to vector<32x8xf32>
    %c5_148 = arith.constant 5 : index
    %c0_149 = arith.constant 0 : index
    %c0_150 = arith.constant 0 : index
    %337 = vector.load %arg8[%c5_148, %c0_149, %c0_150] : memref<12x32x8xf32, #tpu.memory_space<vmem>>, vector<1x32x8xf32>
    %338 = vector.shape_cast %337 : vector<1x32x8xf32> to vector<32x8xf32>
    %c9_151 = arith.constant 9 : index
    %c0_152 = arith.constant 0 : index
    %c0_153 = arith.constant 0 : index
    %339 = vector.load %arg8[%c9_151, %c0_152, %c0_153] : memref<12x32x8xf32, #tpu.memory_space<vmem>>, vector<1x32x8xf32>
    %340 = vector.shape_cast %339 : vector<1x32x8xf32> to vector<32x8xf32>
    %cst_154 = arith.constant dense<0.000000e+00> : vector<16x8xf32>
    %341 = tpu.matmul %272, %336, %cst_154 {dimension_numbers = #tpu.dot_dimension_numbers<[1], [0], [0], [1], [0, 0, 1, 1], [], []>} : vector<16x32xf32>, vector<32x8xf32>, vector<16x8xf32> -> vector<16x8xf32>
    %342 = vector.extract_strided_slice %273 {offsets = [1, 0], sizes = [1, 8], strides = [1, 1]} : vector<12x8xf32> to vector<1x8xf32>
    %343 = vector.broadcast %342 : vector<1x8xf32> to vector<16x8xf32>
    %344 = arith.addf %341, %343 : vector<16x8xf32>
    %cst_155 = arith.constant dense<0.000000e+00> : vector<16x8xf32>
    %345 = tpu.matmul %272, %338, %cst_155 {dimension_numbers = #tpu.dot_dimension_numbers<[1], [0], [0], [1], [0, 0, 1, 1], [], []>} : vector<16x32xf32>, vector<32x8xf32>, vector<16x8xf32> -> vector<16x8xf32>
    %346 = vector.extract_strided_slice %273 {offsets = [5, 0], sizes = [1, 8], strides = [1, 1]} : vector<12x8xf32> to vector<1x8xf32>
    %347 = vector.broadcast %346 : vector<1x8xf32> to vector<16x8xf32>
    %348 = arith.addf %345, %347 : vector<16x8xf32>
    %cst_156 = arith.constant dense<0.000000e+00> : vector<16x8xf32>
    %349 = tpu.matmul %272, %340, %cst_156 {dimension_numbers = #tpu.dot_dimension_numbers<[1], [0], [0], [1], [0, 0, 1, 1], [], []>} : vector<16x32xf32>, vector<32x8xf32>, vector<16x8xf32> -> vector<16x8xf32>
    %350 = vector.extract_strided_slice %273 {offsets = [9, 0], sizes = [1, 8], strides = [1, 1]} : vector<12x8xf32> to vector<1x8xf32>
    %351 = vector.broadcast %350 : vector<1x8xf32> to vector<16x8xf32>
    %352 = arith.addf %349, %351 : vector<16x8xf32>
    %353 = vector.extract_strided_slice %344 {offsets = [0, 0], sizes = [8, 8], strides = [1, 1]} : vector<16x8xf32> to vector<8x8xf32>
    %354 = vector.extract_strided_slice %348 {offsets = [0, 0], sizes = [8, 8], strides = [1, 1]} : vector<16x8xf32> to vector<8x8xf32>
    %355 = vector.extract_strided_slice %352 {offsets = [0, 0], sizes = [8, 8], strides = [1, 1]} : vector<16x8xf32> to vector<8x8xf32>
    %cst_157 = arith.constant dense<0.000000e+00> : vector<8x8xf32>
    %356 = tpu.matmul %353, %354, %cst_157 {dimension_numbers = #tpu.dot_dimension_numbers<[1], [1], [0], [0], [0, 0, 1, 0], [], []>} : vector<8x8xf32>, vector<8x8xf32>, vector<8x8xf32> -> vector<8x8xf32>
    %cst_158 = arith.constant dense<0xFF800000> : vector<8xf32>
    %357 = vector.multi_reduction <maximumf>, %356, %cst_158 [1] : vector<8x8xf32> to vector<8xf32>
    %358 = vector.shape_cast %357 : vector<8xf32> to vector<8x1xf32>
    %359 = vector.broadcast %358 : vector<8x1xf32> to vector<8x8xf32>
    %360 = arith.subf %356, %359 : vector<8x8xf32>
    %361 = math.exp %360 : vector<8x8xf32>
    %cst_159 = arith.constant dense<0.000000e+00> : vector<8xf32>
    %362 = vector.multi_reduction <add>, %361, %cst_159 [1] : vector<8x8xf32> to vector<8xf32>
    %363 = vector.shape_cast %362 : vector<8xf32> to vector<8x1xf32>
    %364 = tpu.reciprocal %363 {approx = true} : vector<8x1xf32> -> vector<8x1xf32>
    %365 = vector.broadcast %364 : vector<8x1xf32> to vector<8x8xf32>
    %366 = arith.mulf %361, %365 : vector<8x8xf32>
    %cst_160 = arith.constant dense<0.000000e+00> : vector<8x8xf32>
    %367 = tpu.matmul %366, %355, %cst_160 {dimension_numbers = #tpu.dot_dimension_numbers<[1], [0], [0], [1], [0, 0, 1, 1], [], []>} : vector<8x8xf32>, vector<8x8xf32>, vector<8x8xf32> -> vector<8x8xf32>
    %c0_161 = arith.constant 0 : index
    %c8_162 = arith.constant 8 : index
    %368 = vector.load %arg16[%c0_161, %c8_162] : memref<16x32xf32, #tpu.memory_space<vmem>>, vector<8x8xf32>
    tpu.vector_store %arg16[%c0_161, %c8_162], %367 {strides = array<i32>} : memref<16x32xf32, #tpu.memory_space<vmem>>, vector<8x8xf32>,
    %369 = vector.extract_strided_slice %344 {offsets = [8, 0], sizes = [8, 8], strides = [1, 1]} : vector<16x8xf32> to vector<8x8xf32>
    %370 = vector.extract_strided_slice %348 {offsets = [8, 0], sizes = [8, 8], strides = [1, 1]} : vector<16x8xf32> to vector<8x8xf32>
    %371 = vector.extract_strided_slice %352 {offsets = [8, 0], sizes = [8, 8], strides = [1, 1]} : vector<16x8xf32> to vector<8x8xf32>
    %cst_163 = arith.constant dense<0.000000e+00> : vector<8x8xf32>
    %372 = tpu.matmul %369, %370, %cst_163 {dimension_numbers = #tpu.dot_dimension_numbers<[1], [1], [0], [0], [0, 0, 1, 0], [], []>} : vector<8x8xf32>, vector<8x8xf32>, vector<8x8xf32> -> vector<8x8xf32>
    %cst_164 = arith.constant dense<0xFF800000> : vector<8xf32>
    %373 = vector.multi_reduction <maximumf>, %372, %cst_164 [1] : vector<8x8xf32> to vector<8xf32>
    %374 = vector.shape_cast %373 : vector<8xf32> to vector<8x1xf32>
    %375 = vector.broadcast %374 : vector<8x1xf32> to vector<8x8xf32>
    %376 = arith.subf %372, %375 : vector<8x8xf32>
    %377 = math.exp %376 : vector<8x8xf32>
    %cst_165 = arith.constant dense<0.000000e+00> : vector<8xf32>
    %378 = vector.multi_reduction <add>, %377, %cst_165 [1] : vector<8x8xf32> to vector<8xf32>
    %379 = vector.shape_cast %378 : vector<8xf32> to vector<8x1xf32>
    %380 = tpu.reciprocal %379 {approx = true} : vector<8x1xf32> -> vector<8x1xf32>
    %381 = vector.broadcast %380 : vector<8x1xf32> to vector<8x8xf32>
    %382 = arith.mulf %377, %381 : vector<8x8xf32>
    %cst_166 = arith.constant dense<0.000000e+00> : vector<8x8xf32>
    %383 = tpu.matmul %382, %371, %cst_166 {dimension_numbers = #tpu.dot_dimension_numbers<[1], [0], [0], [1], [0, 0, 1, 1], [], []>} : vector<8x8xf32>, vector<8x8xf32>, vector<8x8xf32> -> vector<8x8xf32>
    %c8_167 = arith.constant 8 : index
    %c8_168 = arith.constant 8 : index
    %384 = vector.load %arg16[%c8_167, %c8_168] : memref<16x32xf32, #tpu.memory_space<vmem>>, vector<8x8xf32>
    tpu.vector_store %arg16[%c8_167, %c8_168], %383 {strides = array<i32>} : memref<16x32xf32, #tpu.memory_space<vmem>>, vector<8x8xf32>,
    %c2_169 = arith.constant 2 : index
    %c0_170 = arith.constant 0 : index
    %c0_171 = arith.constant 0 : index
    %385 = vector.load %arg8[%c2_169, %c0_170, %c0_171] : memref<12x32x8xf32, #tpu.memory_space<vmem>>, vector<1x32x8xf32>
    %386 = vector.shape_cast %385 : vector<1x32x8xf32> to vector<32x8xf32>
    %c6_172 = arith.constant 6 : index
    %c0_173 = arith.constant 0 : index
    %c0_174 = arith.constant 0 : index
    %387 = vector.load %arg8[%c6_172, %c0_173, %c0_174] : memref<12x32x8xf32, #tpu.memory_space<vmem>>, vector<1x32x8xf32>
    %388 = vector.shape_cast %387 : vector<1x32x8xf32> to vector<32x8xf32>
    %c10_175 = arith.constant 10 : index
    %c0_176 = arith.constant 0 : index
    %c0_177 = arith.constant 0 : index
    %389 = vector.load %arg8[%c10_175, %c0_176, %c0_177] : memref<12x32x8xf32, #tpu.memory_space<vmem>>, vector<1x32x8xf32>
    %390 = vector.shape_cast %389 : vector<1x32x8xf32> to vector<32x8xf32>
    %cst_178 = arith.constant dense<0.000000e+00> : vector<16x8xf32>
    %391 = tpu.matmul %272, %386, %cst_178 {dimension_numbers = #tpu.dot_dimension_numbers<[1], [0], [0], [1], [0, 0, 1, 1], [], []>} : vector<16x32xf32>, vector<32x8xf32>, vector<16x8xf32> -> vector<16x8xf32>
    %392 = vector.extract_strided_slice %273 {offsets = [2, 0], sizes = [1, 8], strides = [1, 1]} : vector<12x8xf32> to vector<1x8xf32>
    %393 = vector.broadcast %392 : vector<1x8xf32> to vector<16x8xf32>
    %394 = arith.addf %391, %393 : vector<16x8xf32>
    %cst_179 = arith.constant dense<0.000000e+00> : vector<16x8xf32>
    %395 = tpu.matmul %272, %388, %cst_179 {dimension_numbers = #tpu.dot_dimension_numbers<[1], [0], [0], [1], [0, 0, 1, 1], [], []>} : vector<16x32xf32>, vector<32x8xf32>, vector<16x8xf32> -> vector<16x8xf32>
    %396 = vector.extract_strided_slice %273 {offsets = [6, 0], sizes = [1, 8], strides = [1, 1]} : vector<12x8xf32> to vector<1x8xf32>
    %397 = vector.broadcast %396 : vector<1x8xf32> to vector<16x8xf32>
    %398 = arith.addf %395, %397 : vector<16x8xf32>
    %cst_180 = arith.constant dense<0.000000e+00> : vector<16x8xf32>
    %399 = tpu.matmul %272, %390, %cst_180 {dimension_numbers = #tpu.dot_dimension_numbers<[1], [0], [0], [1], [0, 0, 1, 1], [], []>} : vector<16x32xf32>, vector<32x8xf32>, vector<16x8xf32> -> vector<16x8xf32>
    %400 = vector.extract_strided_slice %273 {offsets = [10, 0], sizes = [1, 8], strides = [1, 1]} : vector<12x8xf32> to vector<1x8xf32>
    %401 = vector.broadcast %400 : vector<1x8xf32> to vector<16x8xf32>
    %402 = arith.addf %399, %401 : vector<16x8xf32>
    %403 = vector.extract_strided_slice %394 {offsets = [0, 0], sizes = [8, 8], strides = [1, 1]} : vector<16x8xf32> to vector<8x8xf32>
    %404 = vector.extract_strided_slice %398 {offsets = [0, 0], sizes = [8, 8], strides = [1, 1]} : vector<16x8xf32> to vector<8x8xf32>
    %405 = vector.extract_strided_slice %402 {offsets = [0, 0], sizes = [8, 8], strides = [1, 1]} : vector<16x8xf32> to vector<8x8xf32>
    %cst_181 = arith.constant dense<0.000000e+00> : vector<8x8xf32>
    %406 = tpu.matmul %403, %404, %cst_181 {dimension_numbers = #tpu.dot_dimension_numbers<[1], [1], [0], [0], [0, 0, 1, 0], [], []>} : vector<8x8xf32>, vector<8x8xf32>, vector<8x8xf32> -> vector<8x8xf32>
    %cst_182 = arith.constant dense<0xFF800000> : vector<8xf32>
    %407 = vector.multi_reduction <maximumf>, %406, %cst_182 [1] : vector<8x8xf32> to vector<8xf32>
    %408 = vector.shape_cast %407 : vector<8xf32> to vector<8x1xf32>
    %409 = vector.broadcast %408 : vector<8x1xf32> to vector<8x8xf32>
    %410 = arith.subf %406, %409 : vector<8x8xf32>
    %411 = math.exp %410 : vector<8x8xf32>
    %cst_183 = arith.constant dense<0.000000e+00> : vector<8xf32>
    %412 = vector.multi_reduction <add>, %411, %cst_183 [1] : vector<8x8xf32> to vector<8xf32>
    %413 = vector.shape_cast %412 : vector<8xf32> to vector<8x1xf32>
    %414 = tpu.reciprocal %413 {approx = true} : vector<8x1xf32> -> vector<8x1xf32>
    %415 = vector.broadcast %414 : vector<8x1xf32> to vector<8x8xf32>
    %416 = arith.mulf %411, %415 : vector<8x8xf32>
    %cst_184 = arith.constant dense<0.000000e+00> : vector<8x8xf32>
    %417 = tpu.matmul %416, %405, %cst_184 {dimension_numbers = #tpu.dot_dimension_numbers<[1], [0], [0], [1], [0, 0, 1, 1], [], []>} : vector<8x8xf32>, vector<8x8xf32>, vector<8x8xf32> -> vector<8x8xf32>
    %c0_185 = arith.constant 0 : index
    %c16_186 = arith.constant 16 : index
    %418 = vector.load %arg16[%c0_185, %c16_186] : memref<16x32xf32, #tpu.memory_space<vmem>>, vector<8x8xf32>
    tpu.vector_store %arg16[%c0_185, %c16_186], %417 {strides = array<i32>} : memref<16x32xf32, #tpu.memory_space<vmem>>, vector<8x8xf32>,
    %419 = vector.extract_strided_slice %394 {offsets = [8, 0], sizes = [8, 8], strides = [1, 1]} : vector<16x8xf32> to vector<8x8xf32>
    %420 = vector.extract_strided_slice %398 {offsets = [8, 0], sizes = [8, 8], strides = [1, 1]} : vector<16x8xf32> to vector<8x8xf32>
    %421 = vector.extract_strided_slice %402 {offsets = [8, 0], sizes = [8, 8], strides = [1, 1]} : vector<16x8xf32> to vector<8x8xf32>
    %cst_187 = arith.constant dense<0.000000e+00> : vector<8x8xf32>
    %422 = tpu.matmul %419, %420, %cst_187 {dimension_numbers = #tpu.dot_dimension_numbers<[1], [1], [0], [0], [0, 0, 1, 0], [], []>} : vector<8x8xf32>, vector<8x8xf32>, vector<8x8xf32> -> vector<8x8xf32>
    %cst_188 = arith.constant dense<0xFF800000> : vector<8xf32>
    %423 = vector.multi_reduction <maximumf>, %422, %cst_188 [1] : vector<8x8xf32> to vector<8xf32>
    %424 = vector.shape_cast %423 : vector<8xf32> to vector<8x1xf32>
    %425 = vector.broadcast %424 : vector<8x1xf32> to vector<8x8xf32>
    %426 = arith.subf %422, %425 : vector<8x8xf32>
    %427 = math.exp %426 : vector<8x8xf32>
    %cst_189 = arith.constant dense<0.000000e+00> : vector<8xf32>
    %428 = vector.multi_reduction <add>, %427, %cst_189 [1] : vector<8x8xf32> to vector<8xf32>
    %429 = vector.shape_cast %428 : vector<8xf32> to vector<8x1xf32>
    %430 = tpu.reciprocal %429 {approx = true} : vector<8x1xf32> -> vector<8x1xf32>
    %431 = vector.broadcast %430 : vector<8x1xf32> to vector<8x8xf32>
    %432 = arith.mulf %427, %431 : vector<8x8xf32>
    %cst_190 = arith.constant dense<0.000000e+00> : vector<8x8xf32>
    %433 = tpu.matmul %432, %421, %cst_190 {dimension_numbers = #tpu.dot_dimension_numbers<[1], [0], [0], [1], [0, 0, 1, 1], [], []>} : vector<8x8xf32>, vector<8x8xf32>, vector<8x8xf32> -> vector<8x8xf32>
    %c8_191 = arith.constant 8 : index
    %c16_192 = arith.constant 16 : index
    %434 = vector.load %arg16[%c8_191, %c16_192] : memref<16x32xf32, #tpu.memory_space<vmem>>, vector<8x8xf32>
    tpu.vector_store %arg16[%c8_191, %c16_192], %433 {strides = array<i32>} : memref<16x32xf32, #tpu.memory_space<vmem>>, vector<8x8xf32>,
    %c3_193 = arith.constant 3 : index
    %c0_194 = arith.constant 0 : index
    %c0_195 = arith.constant 0 : index
    %435 = vector.load %arg8[%c3_193, %c0_194, %c0_195] : memref<12x32x8xf32, #tpu.memory_space<vmem>>, vector<1x32x8xf32>
    %436 = vector.shape_cast %435 : vector<1x32x8xf32> to vector<32x8xf32>
    %c7_196 = arith.constant 7 : index
    %c0_197 = arith.constant 0 : index
    %c0_198 = arith.constant 0 : index
    %437 = vector.load %arg8[%c7_196, %c0_197, %c0_198] : memref<12x32x8xf32, #tpu.memory_space<vmem>>, vector<1x32x8xf32>
    %438 = vector.shape_cast %437 : vector<1x32x8xf32> to vector<32x8xf32>
    %c11_199 = arith.constant 11 : index
    %c0_200 = arith.constant 0 : index
    %c0_201 = arith.constant 0 : index
    %439 = vector.load %arg8[%c11_199, %c0_200, %c0_201] : memref<12x32x8xf32, #tpu.memory_space<vmem>>, vector<1x32x8xf32>
    %440 = vector.shape_cast %439 : vector<1x32x8xf32> to vector<32x8xf32>
    %cst_202 = arith.constant dense<0.000000e+00> : vector<16x8xf32>
    %441 = tpu.matmul %272, %436, %cst_202 {dimension_numbers = #tpu.dot_dimension_numbers<[1], [0], [0], [1], [0, 0, 1, 1], [], []>} : vector<16x32xf32>, vector<32x8xf32>, vector<16x8xf32> -> vector<16x8xf32>
    %442 = vector.extract_strided_slice %273 {offsets = [3, 0], sizes = [1, 8], strides = [1, 1]} : vector<12x8xf32> to vector<1x8xf32>
    %443 = vector.broadcast %442 : vector<1x8xf32> to vector<16x8xf32>
    %444 = arith.addf %441, %443 : vector<16x8xf32>
    %cst_203 = arith.constant dense<0.000000e+00> : vector<16x8xf32>
    %445 = tpu.matmul %272, %438, %cst_203 {dimension_numbers = #tpu.dot_dimension_numbers<[1], [0], [0], [1], [0, 0, 1, 1], [], []>} : vector<16x32xf32>, vector<32x8xf32>, vector<16x8xf32> -> vector<16x8xf32>
    %446 = vector.extract_strided_slice %273 {offsets = [7, 0], sizes = [1, 8], strides = [1, 1]} : vector<12x8xf32> to vector<1x8xf32>
    %447 = vector.broadcast %446 : vector<1x8xf32> to vector<16x8xf32>
    %448 = arith.addf %445, %447 : vector<16x8xf32>
    %cst_204 = arith.constant dense<0.000000e+00> : vector<16x8xf32>
    %449 = tpu.matmul %272, %440, %cst_204 {dimension_numbers = #tpu.dot_dimension_numbers<[1], [0], [0], [1], [0, 0, 1, 1], [], []>} : vector<16x32xf32>, vector<32x8xf32>, vector<16x8xf32> -> vector<16x8xf32>
    %450 = vector.extract_strided_slice %273 {offsets = [11, 0], sizes = [1, 8], strides = [1, 1]} : vector<12x8xf32> to vector<1x8xf32>
    %451 = vector.broadcast %450 : vector<1x8xf32> to vector<16x8xf32>
    %452 = arith.addf %449, %451 : vector<16x8xf32>
    %453 = vector.extract_strided_slice %444 {offsets = [0, 0], sizes = [8, 8], strides = [1, 1]} : vector<16x8xf32> to vector<8x8xf32>
    %454 = vector.extract_strided_slice %448 {offsets = [0, 0], sizes = [8, 8], strides = [1, 1]} : vector<16x8xf32> to vector<8x8xf32>
    %455 = vector.extract_strided_slice %452 {offsets = [0, 0], sizes = [8, 8], strides = [1, 1]} : vector<16x8xf32> to vector<8x8xf32>
    %cst_205 = arith.constant dense<0.000000e+00> : vector<8x8xf32>
    %456 = tpu.matmul %453, %454, %cst_205 {dimension_numbers = #tpu.dot_dimension_numbers<[1], [1], [0], [0], [0, 0, 1, 0], [], []>} : vector<8x8xf32>, vector<8x8xf32>, vector<8x8xf32> -> vector<8x8xf32>
    %cst_206 = arith.constant dense<0xFF800000> : vector<8xf32>
    %457 = vector.multi_reduction <maximumf>, %456, %cst_206 [1] : vector<8x8xf32> to vector<8xf32>
    %458 = vector.shape_cast %457 : vector<8xf32> to vector<8x1xf32>
    %459 = vector.broadcast %458 : vector<8x1xf32> to vector<8x8xf32>
    %460 = arith.subf %456, %459 : vector<8x8xf32>
    %461 = math.exp %460 : vector<8x8xf32>
    %cst_207 = arith.constant dense<0.000000e+00> : vector<8xf32>
    %462 = vector.multi_reduction <add>, %461, %cst_207 [1] : vector<8x8xf32> to vector<8xf32>
    %463 = vector.shape_cast %462 : vector<8xf32> to vector<8x1xf32>
    %464 = tpu.reciprocal %463 {approx = true} : vector<8x1xf32> -> vector<8x1xf32>
    %465 = vector.broadcast %464 : vector<8x1xf32> to vector<8x8xf32>
    %466 = arith.mulf %461, %465 : vector<8x8xf32>
    %cst_208 = arith.constant dense<0.000000e+00> : vector<8x8xf32>
    %467 = tpu.matmul %466, %455, %cst_208 {dimension_numbers = #tpu.dot_dimension_numbers<[1], [0], [0], [1], [0, 0, 1, 1], [], []>} : vector<8x8xf32>, vector<8x8xf32>, vector<8x8xf32> -> vector<8x8xf32>
    %c0_209 = arith.constant 0 : index
    %c24_210 = arith.constant 24 : index
    %468 = vector.load %arg16[%c0_209, %c24_210] : memref<16x32xf32, #tpu.memory_space<vmem>>, vector<8x8xf32>
    tpu.vector_store %arg16[%c0_209, %c24_210], %467 {strides = array<i32>} : memref<16x32xf32, #tpu.memory_space<vmem>>, vector<8x8xf32>,
    %469 = vector.extract_strided_slice %444 {offsets = [8, 0], sizes = [8, 8], strides = [1, 1]} : vector<16x8xf32> to vector<8x8xf32>
    %470 = vector.extract_strided_slice %448 {offsets = [8, 0], sizes = [8, 8], strides = [1, 1]} : vector<16x8xf32> to vector<8x8xf32>
    %471 = vector.extract_strided_slice %452 {offsets = [8, 0], sizes = [8, 8], strides = [1, 1]} : vector<16x8xf32> to vector<8x8xf32>
    %cst_211 = arith.constant dense<0.000000e+00> : vector<8x8xf32>
    %472 = tpu.matmul %469, %470, %cst_211 {dimension_numbers = #tpu.dot_dimension_numbers<[1], [1], [0], [0], [0, 0, 1, 0], [], []>} : vector<8x8xf32>, vector<8x8xf32>, vector<8x8xf32> -> vector<8x8xf32>
    %cst_212 = arith.constant dense<0xFF800000> : vector<8xf32>
    %473 = vector.multi_reduction <maximumf>, %472, %cst_212 [1] : vector<8x8xf32> to vector<8xf32>
    %474 = vector.shape_cast %473 : vector<8xf32> to vector<8x1xf32>
    %475 = vector.broadcast %474 : vector<8x1xf32> to vector<8x8xf32>
    %476 = arith.subf %472, %475 : vector<8x8xf32>
    %477 = math.exp %476 : vector<8x8xf32>
    %cst_213 = arith.constant dense<0.000000e+00> : vector<8xf32>
    %478 = vector.multi_reduction <add>, %477, %cst_213 [1] : vector<8x8xf32> to vector<8xf32>
    %479 = vector.shape_cast %478 : vector<8xf32> to vector<8x1xf32>
    %480 = tpu.reciprocal %479 {approx = true} : vector<8x1xf32> -> vector<8x1xf32>
    %481 = vector.broadcast %480 : vector<8x1xf32> to vector<8x8xf32>
    %482 = arith.mulf %477, %481 : vector<8x8xf32>
    %cst_214 = arith.constant dense<0.000000e+00> : vector<8x8xf32>
    %483 = tpu.matmul %482, %471, %cst_214 {dimension_numbers = #tpu.dot_dimension_numbers<[1], [0], [0], [1], [0, 0, 1, 1], [], []>} : vector<8x8xf32>, vector<8x8xf32>, vector<8x8xf32> -> vector<8x8xf32>
    %c8_215 = arith.constant 8 : index
    %c24_216 = arith.constant 24 : index
    %484 = vector.load %arg16[%c8_215, %c24_216] : memref<16x32xf32, #tpu.memory_space<vmem>>, vector<8x8xf32>
    tpu.vector_store %arg16[%c8_215, %c24_216], %483 {strides = array<i32>} : memref<16x32xf32, #tpu.memory_space<vmem>>, vector<8x8xf32>,
    %c0_217 = arith.constant 0 : index
    %c0_218 = arith.constant 0 : index
    %485 = vector.load %arg16[%c0_217, %c0_218] : memref<16x32xf32, #tpu.memory_space<vmem>>, vector<16x32xf32>
    %cst_219 = arith.constant dense<0.000000e+00> : vector<16x32xf32>
    %486 = tpu.matmul %485, %274, %cst_219 {dimension_numbers = #tpu.dot_dimension_numbers<[1], [0], [0], [1], [0, 0, 1, 1], [], []>} : vector<16x32xf32>, vector<32x32xf32>, vector<16x32xf32> -> vector<16x32xf32>
    %487 = vector.broadcast %278 : vector<1x32xf32> to vector<16x32xf32>
    %488 = arith.addf %486, %487 : vector<16x32xf32>
    %489 = arith.addf %272, %488 : vector<16x32xf32>
    %cst_220 = arith.constant dense<0.000000e+00> : vector<16xf32>
    %490 = vector.multi_reduction <add>, %489, %cst_220 [1] : vector<16x32xf32> to vector<16xf32>
    %491 = vector.shape_cast %490 : vector<16xf32> to vector<16x1xf32>
    %cst_221 = arith.constant 3.200000e+01 : f32
    %492 = vector.broadcast %cst_221 : f32 to vector<16x1xf32>
    %493 = arith.divf %491, %492 : vector<16x1xf32>
    %494 = vector.broadcast %493 : vector<16x1xf32> to vector<16x32xf32>
    %495 = arith.subf %489, %494 : vector<16x32xf32>
    %496 = arith.mulf %495, %495 : vector<16x32xf32>
    %cst_222 = arith.constant dense<0.000000e+00> : vector<16xf32>
    %497 = vector.multi_reduction <add>, %496, %cst_222 [1] : vector<16x32xf32> to vector<16xf32>
    %498 = vector.shape_cast %497 : vector<16xf32> to vector<16x1xf32>
    %cst_223 = arith.constant 3.200000e+01 : f32
    %499 = vector.broadcast %cst_223 : f32 to vector<16x1xf32>
    %500 = arith.divf %498, %499 : vector<16x1xf32>
    %501 = vector.broadcast %493 : vector<16x1xf32> to vector<16x32xf32>
    %502 = arith.subf %489, %501 : vector<16x32xf32>
    %cst_224 = arith.constant 9.99999974E-6 : f32
    %503 = vector.broadcast %cst_224 : f32 to vector<16x1xf32>
    %504 = arith.addf %500, %503 : vector<16x1xf32>
    %505 = math.rsqrt %504 : vector<16x1xf32>
    %506 = vector.broadcast %505 : vector<16x1xf32> to vector<16x32xf32>
    %507 = arith.mulf %502, %506 : vector<16x32xf32>
    %508 = vector.broadcast %279 : vector<1x32xf32> to vector<16x32xf32>
    %509 = arith.mulf %507, %508 : vector<16x32xf32>
    %510 = vector.broadcast %280 : vector<1x32xf32> to vector<16x32xf32>
    %511 = arith.addf %509, %510 : vector<16x32xf32>
    %cst_225 = arith.constant dense<0.000000e+00> : vector<16x64xf32>
    %512 = tpu.matmul %511, %275, %cst_225 {dimension_numbers = #tpu.dot_dimension_numbers<[1], [0], [0], [1], [0, 0, 1, 1], [], []>} : vector<16x32xf32>, vector<32x64xf32>, vector<16x64xf32> -> vector<16x64xf32>
    %513 = vector.broadcast %281 : vector<1x64xf32> to vector<16x64xf32>
    %514 = arith.addf %512, %513 : vector<16x64xf32>
    %cst_226 = arith.constant 0.000000e+00 : f32
    %515 = vector.broadcast %cst_226 : f32 to vector<16x64xf32>
    %516 = arith.maximumf %514, %515 : vector<16x64xf32>
    %cst_227 = arith.constant dense<0.000000e+00> : vector<16x32xf32>
    %517 = tpu.matmul %516, %276, %cst_227 {dimension_numbers = #tpu.dot_dimension_numbers<[1], [0], [0], [1], [0, 0, 1, 1], [], []>} : vector<16x64xf32>, vector<64x32xf32>, vector<16x32xf32> -> vector<16x32xf32>
    %518 = vector.broadcast %282 : vector<1x32xf32> to vector<16x32xf32>
    %519 = arith.addf %517, %518 : vector<16x32xf32>
    %520 = arith.addf %511, %519 : vector<16x32xf32>
    %cst_228 = arith.constant dense<0.000000e+00> : vector<16xf32>
    %521 = vector.multi_reduction <add>, %520, %cst_228 [1] : vector<16x32xf32> to vector<16xf32>
    %522 = vector.shape_cast %521 : vector<16xf32> to vector<16x1xf32>
    %cst_229 = arith.constant 3.200000e+01 : f32
    %523 = vector.broadcast %cst_229 : f32 to vector<16x1xf32>
    %524 = arith.divf %522, %523 : vector<16x1xf32>
    %525 = vector.broadcast %524 : vector<16x1xf32> to vector<16x32xf32>
    %526 = arith.subf %520, %525 : vector<16x32xf32>
    %527 = arith.mulf %526, %526 : vector<16x32xf32>
    %cst_230 = arith.constant dense<0.000000e+00> : vector<16xf32>
    %528 = vector.multi_reduction <add>, %527, %cst_230 [1] : vector<16x32xf32> to vector<16xf32>
    %529 = vector.shape_cast %528 : vector<16xf32> to vector<16x1xf32>
    %cst_231 = arith.constant 3.200000e+01 : f32
    %530 = vector.broadcast %cst_231 : f32 to vector<16x1xf32>
    %531 = arith.divf %529, %530 : vector<16x1xf32>
    %532 = vector.broadcast %524 : vector<16x1xf32> to vector<16x32xf32>
    %533 = arith.subf %520, %532 : vector<16x32xf32>
    %cst_232 = arith.constant 9.99999974E-6 : f32
    %534 = vector.broadcast %cst_232 : f32 to vector<16x1xf32>
    %535 = arith.addf %531, %534 : vector<16x1xf32>
    %536 = math.rsqrt %535 : vector<16x1xf32>
    %537 = vector.broadcast %536 : vector<16x1xf32> to vector<16x32xf32>
    %538 = arith.mulf %533, %537 : vector<16x32xf32>
    %539 = vector.broadcast %283 : vector<1x32xf32> to vector<16x32xf32>
    %540 = arith.mulf %538, %539 : vector<16x32xf32>
    %541 = vector.broadcast %284 : vector<1x32xf32> to vector<16x32xf32>
    %542 = arith.addf %540, %541 : vector<16x32xf32>
    %c0_233 = arith.constant 0 : index
    %c0_234 = arith.constant 0 : index
    %543 = vector.load %arg14[%c0_233, %c0_234] : memref<2x32xf32, #tpu.memory_space<vmem>>, vector<2x32xf32>
    %544 = vector.extract_strided_slice %543 {offsets = [0, 0], sizes = [1, 32], strides = [1, 1]} : vector<2x32xf32> to vector<1x32xf32>
    %545 = vector.extract_strided_slice %543 {offsets = [1, 0], sizes = [1, 32], strides = [1, 1]} : vector<2x32xf32> to vector<1x32xf32>
    %cst_235 = arith.constant dense<0.000000e+00> : vector<16xf32>
    %546 = vector.multi_reduction <add>, %542, %cst_235 [1] : vector<16x32xf32> to vector<16xf32>
    %547 = vector.shape_cast %546 : vector<16xf32> to vector<16x1xf32>
    %cst_236 = arith.constant 3.200000e+01 : f32
    %548 = vector.broadcast %cst_236 : f32 to vector<16x1xf32>
    %549 = arith.divf %547, %548 : vector<16x1xf32>
    %550 = vector.broadcast %549 : vector<16x1xf32> to vector<16x32xf32>
    %551 = arith.subf %542, %550 : vector<16x32xf32>
    %552 = arith.mulf %551, %551 : vector<16x32xf32>
    %cst_237 = arith.constant dense<0.000000e+00> : vector<16xf32>
    %553 = vector.multi_reduction <add>, %552, %cst_237 [1] : vector<16x32xf32> to vector<16xf32>
    %554 = vector.shape_cast %553 : vector<16xf32> to vector<16x1xf32>
    %cst_238 = arith.constant 3.200000e+01 : f32
    %555 = vector.broadcast %cst_238 : f32 to vector<16x1xf32>
    %556 = arith.divf %554, %555 : vector<16x1xf32>
    %557 = vector.broadcast %549 : vector<16x1xf32> to vector<16x32xf32>
    %558 = arith.subf %542, %557 : vector<16x32xf32>
    %cst_239 = arith.constant 9.99999974E-6 : f32
    %559 = vector.broadcast %cst_239 : f32 to vector<16x1xf32>
    %560 = arith.addf %556, %559 : vector<16x1xf32>
    %561 = math.rsqrt %560 : vector<16x1xf32>
    %562 = vector.broadcast %561 : vector<16x1xf32> to vector<16x32xf32>
    %563 = arith.mulf %558, %562 : vector<16x32xf32>
    %564 = vector.broadcast %544 : vector<1x32xf32> to vector<16x32xf32>
    %565 = arith.mulf %563, %564 : vector<16x32xf32>
    %566 = vector.broadcast %545 : vector<1x32xf32> to vector<16x32xf32>
    %567 = arith.addf %565, %566 : vector<16x32xf32>
    %c0_240 = arith.constant 0 : index
    %c0_241 = arith.constant 0 : index
    %568 = vector.load %arg15[%c0_240, %c0_241] : memref<16x32xf32, #tpu.memory_space<vmem>>, vector<16x32xf32>
    tpu.vector_store %arg15[%c0_240, %c0_241], %567 {strides = array<i32>} : memref<16x32xf32, #tpu.memory_space<vmem>>, vector<16x32xf32>,
    return
  }
}

</mosaic_0001>

<bundles_post_ra>
// kernel: transformer_layer_forward.1
= control target key start
LH: loop header
LB: loop body
LE: loop exit
PB: predicated region body
PF: predicated region fallthrough
CT: control target
= control target key end

     0   :  { %vm93_vm0 = vcmask 261120   ;;  %v6773_v24 = vmov 0.0   ;;  %vm6774_vm1 = vmmov 0   ;;  %v89_v25 = vlaneseq  ;;  %s7790_s2 = inlined_call_operand.vmem [shape: f32[12,32,8], index: 2, kind: input, shape index: {}]   ;;  %s7791_s0 = inlined_call_operand.vmem [shape: f32[16,32], index: 0, kind: input, shape index: {}]   ;;  %s7792_s1 = inlined_call_operand.vmem [shape: f32[16,32], index: 1, kind: input, shape index: {}]   ;;  %s7793_s3 = inlined_call_operand.vmem [shape: f32[12,8], index: 3, kind: input, shape index: {}]   ;;  %s7794_s4 = inlined_call_operand.vmem [shape: f32[32,32], index: 4, kind: input, shape index: {}]   ;;  %s7795_s7 = inlined_call_operand.vmem [shape: f32[7,64], index: 7, kind: input, shape index: {}]   ;;  %s7796_s5 = inlined_call_operand.vmem [shape: f32[32,64], index: 5, kind: input, shape index: {}]   ;;  %s7797_s6 = inlined_call_operand.vmem [shape: f32[64,32], index: 6, kind: input, shape index: {}]   ;;  %s7798_s8 = inlined_call_operand.vmem [shape: f32[12,32,8], index: 8, kind: input, shape index: {}]   ;;  %s7799_s9 = inlined_call_operand.vmem [shape: f32[12,8], index: 9, kind: input, shape index: {}]   ;;  %s7800_s10 = inlined_call_operand.vmem [shape: f32[32,32], index: 10, kind: input, shape index: {}]   ;;  %s7801_s13 = inlined_call_operand.vmem [shape: f32[7,64], index: 13, kind: input, shape index: {}]   ;;  %s7802_s11 = inlined_call_operand.vmem [shape: f32[32,64], index: 11, kind: input, shape index: {}]   ;;  %s7803_s12 = inlined_call_operand.vmem [shape: f32[64,32], index: 12, kind: input, shape index: {}]   ;;  %s7804_s14 = inlined_call_operand.vmem [shape: f32[2,32], index: 14, kind: input, shape index: {}]   ;;  %s7805_s15 = inlined_call_operand.vmem [shape: f32[16,32], index: 15, kind: output, shape index: {}]  }
   0x1   :  { %v75_v0 = vld [vmem:[%s7790_s2] sm:$0xff]  ;;  %v76_v1 = vld [vmem:[%s7790_s2 + $0x8] sm:$0xff]  ;;  %v77_v2 = vld [vmem:[%s7790_s2 + $0x10] sm:$0xff]  ;;  %vm333_vm2 = vcmask 64512   ;;  %vm1072_vm3 = vcmask 130112   ;;  %vm1655_vm4 = vcmask 195712  }
   0x2   :  { %v6428_v3 = vpack.c.bf16 %v76_v1, %v75_v0  ;;  %v78_v4 = vld [vmem:[%s7790_s2 + $0x18] sm:$0xff]  ;;  %v50_v5 = vld [vmem:[%s7791_s0] sm:$0xff]  ;;  %v51_v10 = vld [vmem:[%s7791_s0 + $0x8] sm:$0xff]  ;;  %v6928_v26 = vshrl.u32 %v89_v25, 7  ;;  %vm2238_vm5 = vcmask 261312   ;;  %vm2624_vm6 = vcmask 523264  }
   0x3   :  { %v52_v6 = vld [vmem:[%s7792_s1] sm:$0xff]  ;;  %v6432_v7 = vpack.c.bf16 %v78_v4, %v77_v2  ;;  %v5475_v11 = vld [vmem:[%s7790_s2 + $0x88] sm:$0xff]  ;;  %v5476_v17 = vld [vmem:[%s7790_s2 + $0x90] sm:$0xff] }
   0x4   :  { %v6876_v8 = vadd.f32 %v52_v6, %v50_v5  ;;  %v5474_v9 = vld [vmem:[%s7790_s2 + $0x80] sm:$0xff]  ;;  %6429 = vmatprep.subr.bf16.mxu1 %v6428_v3  ;;  %v53_v12 = vld [vmem:[%s7792_s1 + $0x8] sm:$0xff]  ;;  %v5477_v18 = vld [vmem:[%s7790_s2 + $0x98] sm:$0xff]  ;;  %v6931_v29 = vsub.s32 4, %v6928_v26  ;;  %v6939_v31 = vsub.s32 0, %v6928_v26  ;;  %s6777_s1 = smov 24  }
   0x5   :  { %6431 = vmatpush3.bf16.msra.mxu1 %v6428_v3  ;;  %v5478_v13 = vld [vmem:[%s7790_s2 + $0x100] sm:$0xff]  ;;  %v5479_v14 = vld [vmem:[%s7790_s2 + $0x108] sm:$0xff]  ;;  %v6436_v15 = vpack.c.bf16 %v5475_v11, %v5474_v9  ;;  %v6906_v19 = vadd.f32 %v53_v12, %v51_v10  ;;  %v6440_v20 = vpack.c.bf16 %v5477_v18, %v5476_v17  ;;  %v5480_v21 = vld [vmem:[%s7790_s2 + $0x110] sm:$0xff] }
   0x6   :  { %5930 = vmatprep.mubr.msk.f32.mxu1 %vm93_vm0, %v6876_v8  ;;  %6433 = vmatprep.subr.bf16.mxu1 %v6432_v7  ;;  %v6444_v16 = vpack.c.bf16 %v5479_v14, %v5478_v13  ;;  %v5481_v22 = vld [vmem:[%s7790_s2 + $0x118] sm:$0xff]  ;;  %v6936_v30 = vld [vmem:[%s7793_s3] sm:$0xff]  ;;  %v6957_v40 = vld [vmem:[%s7793_s3 + $0x8] sm:$0xf]  ;;  %s6776_s3 = smov 16  }
   0x7   :  { %5952 = vmatprep.mubr.msk.f32.mxu0 %vm93_vm0, %v6876_v8  ;;  %v6448_v23 = vpack.c.bf16 %v5481_v22, %v5480_v21  ;;  %v178_v32 = vrot.slane %v6936_v30, %v6931_v29  ;;  %v92_v33 = vrot.slane %v6936_v30, %v6939_v31  ;;  %v257_v41 = vrot.slane %v6957_v40, %v6939_v31  ;;  %v5494_v62 = vld [vmem:[%s7790_s2 + $0x20] sm:$0xff]  ;;  %v5495_v63 = vld [vmem:[%s7790_s2 + $0x28] sm:$0xff]  ;;  %v5496_v1 = vld [vmem:[%s7790_s2 + $0x30] sm:$0xff] }
   0x8   :  { %6445 = vmatprep.subr.bf16.mxu0 %v6444_v16  ;;  %v6452_v0 = vpack.c.bf16 %v5495_v63, %v5494_v62  ;;  %v5497_v2 = vld [vmem:[%s7790_s2 + $0x38] sm:$0xff]  ;;  %v5498_v6 = vld [vmem:[%s7790_s2 + $0xa0] sm:$0xff]  ;;  %v5500_v12 = vld [vmem:[%s7790_s2 + $0xb0] sm:$0xff] }
   0x9   :  { %6435 = vmatpush3.bf16.msra.mxu1 %v6432_v7  ;;  %6447 = vmatpush3.bf16.msra.mxu0 %v6444_v16  ;;  %v6456_v3 = vpack.c.bf16 %v5497_v2, %v5496_v1  ;;  %v5499_v7 = vld [vmem:[%s7790_s2 + $0xa8] sm:$0xff]  ;;  %v5501_v13 = vld [vmem:[%s7790_s2 + $0xb8] sm:$0xff]  ;;  %v5502_v17 = vld [vmem:[%s7790_s2 + $0x120] sm:$0xff] }
   0xa   :  { %6437 = vmatprep.subr.bf16.mxu1 %v6436_v15  ;;  %6449 = vmatprep.subr.bf16.mxu0 %v6448_v23  ;;  %v6460_v11 = vpack.c.bf16 %v5499_v7, %v5498_v6  ;;  %v6464_v16 = vpack.c.bf16 %v5501_v13, %v5500_v12  ;;  %v5503_v18 = vld [vmem:[%s7790_s2 + $0x128] sm:$0xff]  ;;  %v5504_v21 = vld [vmem:[%s7790_s2 + $0x130] sm:$0xff]  ;;  %v5505_v22 = vld [vmem:[%s7790_s2 + $0x138] sm:$0xff] }
   0xb   :  { %v5520_v6 = vld [vmem:[%s7790_s2 + $0x50] sm:$0xff]  ;;  %v5521_v7 = vld [vmem:[%s7790_s2 + $0x58] sm:$0xff]  ;;  %v5522_v12 = vld [vmem:[%s7790_s2 + $0xc0] sm:$0xff] }
   0xc   :  { %5931 = vmatmul.mubr.msk.f32.vlgmr.msra.gmra.mrb[0].mxu1 %vm93_vm0, %v6906_v19  ;;  %v5523_v13 = vld [vmem:[%s7790_s2 + $0xc8] sm:$0xff] }
   0xd   :  { %6439 = vmatpush3.bf16.msra.mxu1 %v6436_v15  ;;  %5941 = vmatprep.mubr.msk.f32.mxu1 %vm93_vm0, %v6876_v8 }
   0xe   :  { %6441 = vmatprep.subr.bf16.mxu1 %v6440_v20  ;;  %6451 = vmatpush3.bf16.msra.mxu0 %v6448_v23  ;;  %v6472_v23 = vpack.c.bf16 %v5505_v22, %v5504_v21 }
   0xf   :  { %5965 = vmatprep.subr.mxu0 %v6773_v24 }
  0x11   :  { %6443 = vmatpush3.bf16.msra.mxu1 %v6440_v20  ;;  %5953 = vmatmul.mubr.msk.f32.vlgmr.msra.gmra.mrb[0].mxu0 %vm93_vm0, %v6906_v19  ;;  %v6468_v20 = vpack.c.bf16 %v5503_v18, %v5502_v17  ;;  %v5524_v18 = vld [vmem:[%s7790_s2 + $0xd0] sm:$0xff] }
  0x12   :  { %5955 = vmatprep.subr.mxu1 %v6773_v24  ;;  %5967 = vmatprep.mubr.msk.f32.mxu0 %vm6774_vm1, %v6773_v24 }
  0x14   :  { %5942 = vmatmul.mubr.msk.f32.vlgmr.msra.gmra.mrb[2].mxu1 %vm93_vm0, %v6906_v19 }
  0x15   :  { %5957 = vmatprep.mubr.msk.f32.mxu1 %vm6774_vm1, %v6773_v24 }
  0xdf   :  { %v5932_v27 = vpop.f32.mrb[0].mxu1 }
  0xe0   :  { %v166_v28 = vpop.f32.mrb[1].mxu1  ;;  %v172_v38 = vadd.f32 %v5932_v27, %v92_v33 }
  0xe1   :  { %v167_v39 = vadd.f32 %v166_v28, %v92_v33 }
  0xe4   :  { %v5954_v42 = vpop.f32.mrb[0].mxu0 }
  0xe5   :  { %v330_v43 = vadd.f32 %v5954_v42, %v257_v41  ;;  %v324_v44 = vpop.f32.mrb[1].mxu0 }
  0xe6   :  { %v325_v45 = vadd.f32 %v324_v44, %v257_v41 }
  0xe7   :  { %v5943_v34 = vpop.f32.mrb[2].mxu1 }
  0xe8   :  { %v251_v35 = vadd.f32 %v5943_v34, %v178_v32  ;;  %v245_v36 = vpop.f32.mrb[3].mxu1 }
  0xe9   :  { %v246_v37 = vadd.f32 %v245_v36, %v178_v32  ;;  %v7028_v36 = vsub.s32 1, %v6928_v26 }
  0xea   :  { %5966 = vmatpush3.xpose.msk.msra.mxu0 %vm333_vm2, %v251_v35  ;;  %v7025_v35 = vsub.s32 5, %v6928_v26 }
  0xeb   :  { %5956 = vmatpush3.xpose.msk.msra.mxu1 %vm333_vm2, %v246_v37  ;;  %6453 = vmatprep.subr.bf16.mxu0 %v6452_v0 }
  0xec   :  { %5960 = vmatprep.subr.mxu1 %v6773_v24  ;;  %v753_v37 = vrot.slane %v6936_v30, %v7025_v35 }
  0xed   :  { %5968 = vmatmul.mubr.msk.f32.vlgmr.msra.gmra.mrb[2].mxu0 %vm333_vm2, %v172_v38  ;;  %v674_v38 = vrot.slane %v6936_v30, %v7028_v36 }
  0xee   :  { %5958 = vmatmul.mubr.msk.f32.vlgmr.msra.gmra.mrb[4].mxu1 %vm333_vm2, %v167_v39  ;;  %5983 = vmatprep.mubr.msk.f32.mxu0 %vm93_vm0, %v6876_v8 }
  0xef   :  { %5962 = vmatprep.mubr.msk.f32.mxu1 %vm6774_vm1, %v6773_v24  ;;  %5961 = vmatpush3.msra.mxu1 %v325_v45 }
  0xf0   :  { %5970 = vmatprep.subr.mxu1 %v6773_v24  ;;  %6455 = vmatpush3.bf16.msra.mxu0 %v6452_v0 }
  0xf1   :  { %6457 = vmatprep.subr.bf16.mxu0 %v6456_v3 }
  0xf4   :  { %6459 = vmatpush3.bf16.msra.mxu0 %v6456_v3  ;;  %v5518_v3 = vld [vmem:[%s7790_s2 + $0x40] sm:$0xff] }
  0xf5   :  { %6469 = vmatprep.subr.bf16.mxu0 %v6468_v20 }
  0xf7   :  { %5984 = vmatmul.mubr.msk.f32.vlgmr.msra.gmra.mrb[4].mxu0 %vm93_vm0, %v6906_v19 }
  0xf8   :  { %6005 = vmatprep.mubr.msk.f32.mxu0 %vm93_vm0, %v6876_v8  ;;  %6471 = vmatpush3.bf16.msra.mxu0 %v6468_v20  ;;  %v5525_v20 = vld [vmem:[%s7790_s2 + $0xd8] sm:$0xff] }
  0xf9   :  { %6473 = vmatprep.subr.bf16.mxu0 %v6472_v23  ;;  %v6488_v22 = vpack.c.bf16 %v5525_v20, %v5524_v18  ;;  %v5546_v20 = vld [vmem:[%s7790_s2 + $0xe0] sm:$0xff] }
  0xfc   :  { %6475 = vmatpush3.bf16.msra.mxu0 %v6472_v23  ;;  %v5526_v23 = vld [vmem:[%s7790_s2 + $0x140] sm:$0xff] }
  0xfd   :  { %6018 = vmatprep.subr.mxu0 %v6773_v24 }
  0xff   :  { %6006 = vmatmul.mubr.msk.f32.vlgmr.msra.gmra.mrb[6].mxu0 %vm93_vm0, %v6906_v19 }
 0x100   :  { %6020 = vmatprep.mubr.msk.f32.mxu0 %vm6774_vm1, %v6773_v24 }
 0x1c0   :  { %v567_v46 = vpop.f32.mrb[2].mxu0 }
 0x1c1   :  { %v406_v47 = vpop.f32.mrb[4].mxu1  ;;  %v5969_v48 = vpop.f32.mrb[3].mxu0  ;;  %v571_v51 = vsel %vm333_vm2, %v567_v46, -inf }
 0x1c2   :  { %v5959_v49 = vpop.f32.mrb[5].mxu1  ;;  %v410_v50 = vsel %vm333_vm2, %v406_v47, -inf }
 0x1c3   :  { %411 = vmax.xlane.f32.xlu0 %v410_v50 }
 0x1c7   :  { %572 = vmax.xlane.f32.xlu0 %v571_v51 }
 0x1ca   :  { %v5985_v25 = vpop.f32.mrb[4].mxu0 }
 0x1cb   :  { %v741_v27 = vpop.f32.mrb[5].mxu0  ;;  %v747_v44 = vadd.f32 %v5985_v25, %v674_v38  ;;  %v5527_v25 = vld [vmem:[%s7790_s2 + $0x148] sm:$0xff] }
 0x1cc   :  { %v742_v45 = vadd.f32 %v741_v27, %v674_v38  ;;  %v6492_v27 = vpack.c.bf16 %v5527_v25, %v5526_v23 }
 0x250   :  { %v412_v52 = vpop.xlane.xlu0 %411 }
 0x251   :  { %v413_v53 = vsub.f32 %v406_v47, %v412_v52  ;;  %v6007_v47 = vpop.f32.mrb[6].mxu0 }
 0x252   :  { %v899_v49 = vpop.f32.mrb[7].mxu0 }
 0x253   :  { %v414_v54 = vmul.f32 1.442695, %v413_v53 }
 0x254   :  { %v573_v55 = vpop.xlane.xlu0 %572 }
 0x255   :  { %6689 = vpow2.f32 %v414_v54  ;;  %v574_v56 = vsub.f32 %v567_v46, %v573_v55  ;;  %v832_v46 = vrot.slane %v6957_v40, %v7028_v36 }
 0x257   :  { %v575_v57 = vmul.f32 1.442695, %v574_v56  ;;  %v905_v48 = vadd.f32 %v6007_v47, %v832_v46  ;;  %v900_v50 = vadd.f32 %v899_v49, %v832_v46 }
 0x259   :  { %6691 = vpow2.f32 %v575_v57 }
 0x25f   :  { %v6690_v58 = vpop.eup %6689 }
 0x260   :  { %v416_v59 = vsel %vm333_vm2, %v6690_v58, 0.0 }
 0x261   :  { %417 = vadd.xlane.f32.xlu1 %v416_v59 }
 0x263   :  { %v6692_v60 = vpop.eup %6691 }
 0x264   :  { %v577_v61 = vsel %vm333_vm2, %v6692_v60, 0.0 }
 0x265   :  { %578 = vadd.xlane.f32.xlu1 %v577_v61 }
 0x2ee   :  { %v418_v4 = vpop.xlane.xlu1 %417 }
 0x2ef   :  { %6693 = vrcp.f32 %v418_v4  ;;  %v5519_v4 = vld [vmem:[%s7790_s2 + $0x48] sm:$0xff] }
 0x2f2   :  { %v579_v5 = vpop.xlane.xlu1 %578 }
 0x2f3   :  { %6695 = vrcp.f32 %v579_v5  ;;  %v6476_v5 = vpack.c.bf16 %v5519_v4, %v5518_v3 }
 0x2f9   :  { %v6694_v9 = vpop.eup %6693 }
 0x2fa   :  { %v420_v10 = vmul.f32 %v6694_v9, %v6690_v58  ;;  %v6480_v9 = vpack.c.bf16 %v5521_v7, %v5520_v6 }
 0x2fc   :  { %5963 = vmatmul.mubr.msk.f32.vlgmr.msra.gmra.mrb[6].mxu1 %vm333_vm2, %v420_v10 }
 0x2fd   :  { %v6696_v14 = vpop.eup %6695  ;;  %5971 = vmatpush3.msra.mxu1 %v330_v43  ;;  %5972 = vmatprep.mubr.msk.f32.mxu1 %vm6774_vm1, %v6773_v24 }
 0x2fe   :  { %v581_v15 = vmul.f32 %v6696_v14, %v6692_v60  ;;  %6461 = vmatprep.subr.bf16.mxu1 %v6460_v11 }
 0x300   :  { %5973 = vmatmul.mubr.msk.f32.vlgmr.msra.gmra.mrb[8].mxu1 %vm333_vm2, %v581_v15 }
 0x301   :  { %6463 = vmatpush3.bf16.msra.mxu1 %v6460_v11  ;;  %5994 = vmatprep.mubr.msk.f32.mxu1 %vm93_vm0, %v6876_v8 }
 0x302   :  { %6465 = vmatprep.subr.bf16.mxu1 %v6464_v16 }
 0x305   :  { %6467 = vmatpush3.bf16.msra.mxu1 %v6464_v16  ;;  %v6484_v16 = vpack.c.bf16 %v5523_v13, %v5522_v12  ;;  %v5543_v12 = vld [vmem:[%s7790_s2 + $0x68] sm:$0xff] }
 0x306   :  { %6008 = vmatprep.subr.mxu1 %v6773_v24 }
 0x308   :  { %5995 = vmatmul.mubr.msk.f32.vlgmr.msra.gmra.mrb[10].mxu1 %vm93_vm0, %v6906_v19 }
 0x309   :  { %6010 = vmatprep.mubr.msk.f32.mxu1 %vm6774_vm1, %v6773_v24 }
 0x3cf   :  { %v490_v28 = vpop.f32.mrb[6].mxu1 }
 0x3d0   :  { %494 = vst.msk [vmem:[#allocation2] sm:$0xff] %vm333_vm2, %v490_v28  ;;  %v5964_v32 = vpop.f32.mrb[7].mxu1  ;;  %v5528_v28 = vld [vmem:[%s7790_s2 + $0x150] sm:$0xff] }
 0x3d1   :  { %v5529_v32 = vld [vmem:[%s7790_s2 + $0x158] sm:$0xff] }
 0x3d3   :  { %v651_v33 = vpop.f32.mrb[8].mxu1 }
 0x3d4   :  { %655 = vst.msk [vmem:[#allocation2 + $0x8] sm:$0xff] %vm333_vm2, %v651_v33  ;;  %v5974_v34 = vpop.f32.mrb[9].mxu1  ;;  %v6496_v33 = vpack.c.bf16 %v5529_v32, %v5528_v28  ;;  %v5548_v28 = vld [vmem:[%s7790_s2 + $0xf0] sm:$0xff]  ;;  %v5549_v32 = vld [vmem:[%s7790_s2 + $0xf8] sm:$0xff] }
 0x3db   :  { %v5996_v39 = vpop.f32.mrb[10].mxu1 }
 0x3dc   :  { %v826_v41 = vadd.f32 %v5996_v39, %v753_v37  ;;  %v820_v42 = vpop.f32.mrb[11].mxu1 }
 0x3dd   :  { %v821_v43 = vadd.f32 %v820_v42, %v753_v37 }
 0x3de   :  { %6019 = vmatpush3.xpose.msk.msra.mxu0 %vm333_vm2, %v826_v41 }
 0x3df   :  { %6009 = vmatpush3.xpose.msk.msra.mxu1 %vm333_vm2, %v821_v43  ;;  %6477 = vmatprep.subr.bf16.mxu0 %v6476_v5  ;;  %v7111_v43 = vsub.s32 6, %v6928_v26 }
 0x3e0   :  { %6013 = vmatprep.subr.mxu1 %v6773_v24 }
 0x3e1   :  { %6021 = vmatmul.mubr.msk.f32.vlgmr.msra.gmra.mrb[8].mxu0 %vm333_vm2, %v747_v44  ;;  %v7114_v44 = vsub.s32 2, %v6928_v26 }
 0x3e2   :  { %6011 = vmatmul.mubr.msk.f32.vlgmr.msra.gmra.mrb[12].mxu1 %vm333_vm2, %v742_v45  ;;  %6036 = vmatprep.mubr.msk.f32.mxu0 %vm93_vm0, %v6876_v8  ;;  %v1336_v45 = vrot.slane %v6936_v30, %v7111_v43 }
 0x3e3   :  { %6015 = vmatprep.mubr.msk.f32.mxu1 %vm6774_vm1, %v6773_v24  ;;  %6014 = vmatpush3.msra.mxu1 %v900_v50  ;;  %v1257_v46 = vrot.slane %v6936_v30, %v7114_v44 }
 0x3e4   :  { %6023 = vmatprep.subr.mxu1 %v6773_v24  ;;  %6479 = vmatpush3.bf16.msra.mxu0 %v6476_v5 }
 0x3e5   :  { %6481 = vmatprep.subr.bf16.mxu0 %v6480_v9 }
 0x3e8   :  { %6483 = vmatpush3.bf16.msra.mxu0 %v6480_v9 }
 0x3e9   :  { %6493 = vmatprep.subr.bf16.mxu0 %v6492_v27 }
 0x3eb   :  { %6037 = vmatmul.mubr.msk.f32.vlgmr.msra.gmra.mrb[10].mxu0 %vm93_vm0, %v6906_v19 }
 0x3ec   :  { %6058 = vmatprep.mubr.msk.f32.mxu0 %vm93_vm0, %v6876_v8  ;;  %6495 = vmatpush3.bf16.msra.mxu0 %v6492_v27 }
 0x3ed   :  { %6497 = vmatprep.subr.bf16.mxu0 %v6496_v33 }
 0x3f0   :  { %6499 = vmatpush3.bf16.msra.mxu0 %v6496_v33 }
 0x3f1   :  { %6071 = vmatprep.subr.mxu0 %v6773_v24 }
 0x3f3   :  { %6059 = vmatmul.mubr.msk.f32.vlgmr.msra.gmra.mrb[12].mxu0 %vm93_vm0, %v6906_v19 }
 0x3f4   :  { %6073 = vmatprep.mubr.msk.f32.mxu0 %vm6774_vm1, %v6773_v24 }
 0x4b4   :  { %v1146_v51 = vpop.f32.mrb[8].mxu0 }
 0x4b5   :  { %v980_v52 = vpop.f32.mrb[12].mxu1  ;;  %v6022_v53 = vpop.f32.mrb[9].mxu0  ;;  %v1150_v54 = vsel %vm333_vm2, %v1146_v51, -inf }
 0x4b6   :  { %1151 = vmax.xlane.f32.xlu1 %v1150_v54  ;;  %v6012_v55 = vpop.f32.mrb[13].mxu1  ;;  %v984_v56 = vsel %vm333_vm2, %v980_v52, -inf  ;;  %v1415_v53 = vrot.slane %v6957_v40, %v7114_v44 }
 0x4b7   :  { %985 = vmax.xlane.f32.xlu0 %v984_v56 }
 0x4be   :  { %v6038_v34 = vpop.f32.mrb[10].mxu0 }
 0x4bf   :  { %v1324_v37 = vpop.f32.mrb[11].mxu0 }
 0x4c6   :  { %v6060_v54 = vpop.f32.mrb[12].mxu0 }
 0x4c7   :  { %v1488_v55 = vadd.f32 %v6060_v54, %v1415_v53  ;;  %v1482_v56 = vpop.f32.mrb[13].mxu0  ;;  %v1918_v54 = vsub.s32 7, %v6928_v26 }
 0x543   :  { %v1152_v57 = vpop.xlane.xlu1 %1151 }
 0x544   :  { %v1153_v58 = vsub.f32 %v1146_v51, %v1152_v57  ;;  %v986_v59 = vpop.xlane.xlu0 %985  ;;  %v1330_v51 = vadd.f32 %v6038_v34, %v1257_v46  ;;  %v1483_v57 = vadd.f32 %v1482_v56, %v1415_v53  ;;  %v6512_v34 = vpack.c.bf16 %v5549_v32, %v5548_v28 }
 0x545   :  { %v987_v60 = vsub.f32 %v980_v52, %v986_v59  ;;  %v1325_v52 = vadd.f32 %v1324_v37, %v1257_v46  ;;  %v5550_v37 = vld [vmem:[%s7790_s2 + $0x160] sm:$0xff]  ;;  %v5553_v46 = vld [vmem:[%s7790_s2 + $0x178] sm:$0xff]  ;;  %v1919_v56 = vrot.slane %v6936_v30, %v1918_v54 }
 0x546   :  { %v1154_v61 = vmul.f32 1.442695, %v1153_v58 }
 0x547   :  { %v988_v62 = vmul.f32 1.442695, %v987_v60 }
 0x548   :  { %6697 = vpow2.f32 %v1154_v61 }
 0x549   :  { %6699 = vpow2.f32 %v988_v62 }
 0x552   :  { %v6698_v63 = vpop.eup %6697 }
 0x553   :  { %v6700_v0 = vpop.eup %6699  ;;  %v1156_v1 = vsel %vm333_vm2, %v6698_v63, 0.0 }
 0x554   :  { %1157 = vadd.xlane.f32.xlu1 %v1156_v1  ;;  %v990_v2 = vsel %vm333_vm2, %v6700_v0, 0.0 }
 0x555   :  { %991 = vadd.xlane.f32.xlu0 %v990_v2 }
 0x5e1   :  { %v1158_v10 = vpop.xlane.xlu1 %1157 }
 0x5e2   :  { %v992_v11 = vpop.xlane.xlu0 %991 }
 0x5e3   :  { %6701 = vrcp.f32 %v992_v11  ;;  %v5542_v11 = vld [vmem:[%s7790_s2 + $0x60] sm:$0xff] }
 0x5e4   :  { %6703 = vrcp.f32 %v1158_v10  ;;  %v6500_v13 = vpack.c.bf16 %v5543_v12, %v5542_v11 }
 0x5ed   :  { %v6702_v14 = vpop.eup %6701 }
 0x5ee   :  { %v994_v15 = vmul.f32 %v6702_v14, %v6700_v0  ;;  %v6704_v17 = vpop.eup %6703  ;;  %v5544_v14 = vld [vmem:[%s7790_s2 + $0x70] sm:$0xff] }
 0x5ef   :  { %v1160_v21 = vmul.f32 %v6704_v17, %v6698_v63 }
 0x5f0   :  { %6016 = vmatmul.mubr.msk.f32.vlgmr.msra.gmra.mrb[14].mxu1 %vm333_vm2, %v994_v15  ;;  %v5545_v15 = vld [vmem:[%s7790_s2 + $0x78] sm:$0xff] }
 0x5f1   :  { %6024 = vmatpush3.msra.mxu1 %v905_v48  ;;  %6025 = vmatprep.mubr.msk.f32.mxu1 %vm6774_vm1, %v6773_v24 }
 0x5f2   :  { %6485 = vmatprep.subr.bf16.mxu1 %v6484_v16 }
 0x5f4   :  { %6026 = vmatmul.mubr.msk.f32.vlgmr.msra.gmra.mrb[16].mxu1 %vm333_vm2, %v1160_v21  ;;  %v5547_v21 = vld [vmem:[%s7790_s2 + $0xe8] sm:$0xff] }
 0x5f5   :  { %6487 = vmatpush3.bf16.msra.mxu1 %v6484_v16  ;;  %6047 = vmatprep.mubr.msk.f32.mxu1 %vm93_vm0, %v6876_v8  ;;  %v6504_v16 = vpack.c.bf16 %v5545_v15, %v5544_v14  ;;  %v6508_v25 = vpack.c.bf16 %v5547_v21, %v5546_v20 }
 0x5f6   :  { %6489 = vmatprep.subr.bf16.mxu1 %v6488_v22 }
 0x5f9   :  { %6491 = vmatpush3.bf16.msra.mxu1 %v6488_v22 }
 0x5fa   :  { %6061 = vmatprep.subr.mxu1 %v6773_v24 }
 0x5fc   :  { %6048 = vmatmul.mubr.msk.f32.vlgmr.msra.gmra.mrb[18].mxu1 %vm93_vm0, %v6906_v19 }
 0x5fd   :  { %6063 = vmatprep.mubr.msk.f32.mxu1 %vm6774_vm1, %v6773_v24 }
 0x6c3   :  { %v7106_v38 = vpop.f32.mrb[14].mxu1 }
 0x6c4   :  { %v6017_v39 = vpop.f32.mrb[15].mxu1 }
 0x6c5   :  { %v5551_v39 = vld [vmem:[%s7790_s2 + $0x168] sm:$0xff] }
 0x6c7   :  { %v7108_v41 = vpop.f32.mrb[16].mxu1 }
 0x6c8   :  { %v6027_v42 = vpop.f32.mrb[17].mxu1 }
 0x6c9   :  { %v6516_v42 = vpack.c.bf16 %v5551_v39, %v5550_v37  ;;  %v59_v37 = vld [vmem:[%s7794_s4 + $0x8] sm:$0xff] }
 0x6cf   :  { %v6049_v47 = vpop.f32.mrb[18].mxu1 }
 0x6d0   :  { %v1409_v48 = vadd.f32 %v6049_v47, %v1336_v45  ;;  %v1403_v49 = vpop.f32.mrb[19].mxu1 }
 0x6d1   :  { %v1404_v50 = vadd.f32 %v1403_v49, %v1336_v45  ;;  %v5552_v45 = vld [vmem:[%s7790_s2 + $0x170] sm:$0xff]  ;;  %s6775_s2 = smov 8  }
 0x6d2   :  { %6072 = vmatpush3.xpose.msk.msra.mxu0 %vm333_vm2, %v1409_v48  ;;  %v6520_v47 = vpack.c.bf16 %v5553_v46, %v5552_v45  ;;  %v61_v45 = vld [vmem:[%s7794_s4 + $0x18] sm:$0xff] }
 0x6d3   :  { %6062 = vmatpush3.xpose.msk.msra.mxu1 %vm333_vm2, %v1404_v50  ;;  %6501 = vmatprep.subr.bf16.mxu0 %v6500_v13 }
 0x6d4   :  { %6066 = vmatprep.subr.mxu1 %v6773_v24 }
 0x6d5   :  { %6074 = vmatmul.mubr.msk.f32.vlgmr.msra.gmra.mrb[14].mxu0 %vm333_vm2, %v1330_v51 }
 0x6d6   :  { %6064 = vmatmul.mubr.msk.f32.vlgmr.msra.gmra.mrb[20].mxu1 %vm333_vm2, %v1325_v52  ;;  %6089 = vmatprep.mubr.msk.f32.mxu0 %vm93_vm0, %v6876_v8 }
 0x6d7   :  { %6068 = vmatprep.mubr.msk.f32.mxu1 %vm6774_vm1, %v6773_v24  ;;  %6067 = vmatpush3.msra.mxu1 %v1483_v57 }
 0x6d8   :  { %6076 = vmatprep.subr.mxu1 %v6773_v24  ;;  %6503 = vmatpush3.bf16.msra.mxu0 %v6500_v13 }
 0x6d9   :  { %6505 = vmatprep.subr.bf16.mxu0 %v6504_v16 }
 0x6dc   :  { %6507 = vmatpush3.bf16.msra.mxu0 %v6504_v16 }
 0x6dd   :  { %6517 = vmatprep.subr.bf16.mxu0 %v6516_v42 }
 0x6df   :  { %6090 = vmatmul.mubr.msk.f32.vlgmr.msra.gmra.mrb[16].mxu0 %vm93_vm0, %v6906_v19 }
 0x6e0   :  { %6111 = vmatprep.mubr.msk.f32.mxu0 %vm93_vm0, %v6876_v8  ;;  %6519 = vmatpush3.bf16.msra.mxu0 %v6516_v42  ;;  %v60_v42 = vld [vmem:[%s7794_s4 + $0x10] sm:$0xff] }
 0x6e1   :  { %6521 = vmatprep.subr.bf16.mxu0 %v6520_v47  ;;  %v6528_v46 = vpack.c.bf16 %v61_v45, %v60_v42 }
 0x6e4   :  { %6523 = vmatpush3.bf16.msra.mxu0 %v6520_v47 }
 0x6e5   :  { %6124 = vmatprep.subr.mxu0 %v6773_v24 }
 0x6e7   :  { %6112 = vmatmul.mubr.msk.f32.vlgmr.msra.gmra.mrb[18].mxu0 %vm93_vm0, %v6906_v19 }
 0x6e8   :  { %6126 = vmatprep.mubr.msk.f32.mxu0 %vm6774_vm1, %v6773_v24 }
 0x7a8   :  { %v1729_v58 = vpop.f32.mrb[14].mxu0 }
 0x7a9   :  { %v1563_v59 = vpop.f32.mrb[20].mxu1  ;;  %v6075_v60 = vpop.f32.mrb[15].mxu0  ;;  %v1733_v61 = vsel %vm333_vm2, %v1729_v58, -inf }
 0x7aa   :  { %1734 = vmax.xlane.f32.xlu1 %v1733_v61  ;;  %v6065_v62 = vpop.f32.mrb[21].mxu1  ;;  %v1567_v63 = vsel %vm333_vm2, %v1563_v59, -inf }
 0x7ab   :  { %1568 = vmax.xlane.f32.xlu0 %v1567_v63 }
 0x7b2   :  { %v6091_v48 = vpop.f32.mrb[16].mxu0 }
 0x7b3   :  { %v1907_v49 = vpop.f32.mrb[17].mxu0 }
 0x837   :  { %v1735_v0 = vpop.xlane.xlu1 %1734 }
 0x838   :  { %v1736_v1 = vsub.f32 %v1729_v58, %v1735_v0  ;;  %v1569_v2 = vpop.xlane.xlu0 %1568  ;;  %v6113_v0 = vpop.f32.mrb[18].mxu0 }
 0x839   :  { %v1570_v3 = vsub.f32 %v1563_v59, %v1569_v2  ;;  %v2065_v2 = vpop.f32.mrb[19].mxu0 }
 0x83a   :  { %v1737_v4 = vmul.f32 1.442695, %v1736_v1 }
 0x83b   :  { %v1571_v5 = vmul.f32 1.442695, %v1570_v3 }
 0x83c   :  { %6705 = vpow2.f32 %v1737_v4 }
 0x83d   :  { %6707 = vpow2.f32 %v1571_v5 }
 0x846   :  { %v6706_v6 = vpop.eup %6705 }
 0x847   :  { %v6708_v7 = vpop.eup %6707  ;;  %v1739_v9 = vsel %vm333_vm2, %v6706_v6, 0.0 }
 0x848   :  { %1740 = vadd.xlane.f32.xlu1 %v1739_v9  ;;  %v1573_v10 = vsel %vm333_vm2, %v6708_v7, 0.0 }
 0x849   :  { %1574 = vadd.xlane.f32.xlu0 %v1573_v10 }
 0x8d5   :  { %v1741_v17 = vpop.xlane.xlu1 %1740 }
 0x8d6   :  { %v1575_v18 = vpop.xlane.xlu0 %1574 }
 0x8d7   :  { %6709 = vrcp.f32 %v1575_v18 }
 0x8d8   :  { %6711 = vrcp.f32 %v1741_v17 }
 0x8e1   :  { %v6710_v22 = vpop.eup %6709 }
 0x8e2   :  { %v1577_v23 = vmul.f32 %v6710_v22, %v6708_v7  ;;  %v6712_v27 = vpop.eup %6711 }
 0x8e3   :  { %v1743_v33 = vmul.f32 %v6712_v27, %v6706_v6 }
 0x8e4   :  { %6069 = vmatmul.mubr.msk.f32.vlgmr.msra.gmra.mrb[22].mxu1 %vm333_vm2, %v1577_v23 }
 0x8e5   :  { %6077 = vmatpush3.msra.mxu1 %v1488_v55  ;;  %6078 = vmatprep.mubr.msk.f32.mxu1 %vm6774_vm1, %v6773_v24  ;;  %v7194_v55 = vsub.s32 3, %v6928_v26 }
 0x8e6   :  { %6509 = vmatprep.subr.bf16.mxu1 %v6508_v25 }
 0x8e7   :  { %v1840_v57 = vrot.slane %v6936_v30, %v7194_v55  ;;  %v1998_v30 = vrot.slane %v6957_v40, %v7194_v55 }
 0x8e8   :  { %6079 = vmatmul.mubr.msk.f32.vlgmr.msra.gmra.mrb[24].mxu1 %vm333_vm2, %v1743_v33 }
 0x8e9   :  { %6511 = vmatpush3.bf16.msra.mxu1 %v6508_v25  ;;  %6100 = vmatprep.mubr.msk.f32.mxu1 %vm93_vm0, %v6876_v8  ;;  %v1913_v62 = vadd.f32 %v6091_v48, %v1840_v57  ;;  %v1908_v63 = vadd.f32 %v1907_v49, %v1840_v57  ;;  %v2071_v1 = vadd.f32 %v6113_v0, %v1998_v30  ;;  %v7250_v57 = vld [vmem:[%s7795_s7] sm:$0x7f] }
 0x8ea   :  { %6513 = vmatprep.subr.bf16.mxu1 %v6512_v34  ;;  %v2066_v3 = vadd.f32 %v2065_v2, %v1998_v30  ;;  %v2530_v45 = vrot.slane %v7250_v57, %v7114_v44 }
 0x8ed   :  { %6515 = vmatpush3.bf16.msra.mxu1 %v6512_v34  ;;  %v58_v34 = vld [vmem:[%s7794_s4] sm:$0xff] }
 0x8ee   :  { %6114 = vmatprep.subr.mxu1 %v6773_v24  ;;  %v6524_v39 = vpack.c.bf16 %v59_v37, %v58_v34  ;;  %v2524_v37 = vrot.slane %v7250_v57, %v7028_v36 }
 0x8f0   :  { %6101 = vmatmul.mubr.msk.f32.vlgmr.msra.gmra.mrb[26].mxu1 %vm93_vm0, %v6906_v19 }
 0x8f1   :  { %6116 = vmatprep.mubr.msk.f32.mxu1 %vm6774_vm1, %v6773_v24 }
 0x9b7   :  { %v1647_v50 = vpop.f32.mrb[22].mxu1 }
 0x9b8   :  { %v6070_v51 = vpop.f32.mrb[23].mxu1 }
 0x9bb   :  { %v1813_v52 = vpop.f32.mrb[24].mxu1 }
 0x9bc   :  { %v6080_v53 = vpop.f32.mrb[25].mxu1 }
 0x9c3   :  { %v6102_v58 = vpop.f32.mrb[26].mxu1 }
 0x9c4   :  { %v1992_v59 = vadd.f32 %v6102_v58, %v1919_v56  ;;  %v1986_v60 = vpop.f32.mrb[27].mxu1  ;;  %v2410_v58 = vrot.slane %v7250_v57, %v6939_v31 }
 0x9c5   :  { %v1987_v61 = vadd.f32 %v1986_v60, %v1919_v56 }
 0x9c6   :  { %6125 = vmatpush3.xpose.msk.msra.mxu0 %vm333_vm2, %v1992_v59 }
 0x9c7   :  { %6115 = vmatpush3.xpose.msk.msra.mxu1 %vm333_vm2, %v1987_v61  ;;  %6525 = vmatprep.subr.bf16.mxu0 %v6524_v39 }
 0x9c8   :  { %6119 = vmatprep.subr.mxu1 %v6773_v24 }
 0x9c9   :  { %6127 = vmatmul.mubr.msk.f32.vlgmr.msra.gmra.mrb[20].mxu0 %vm333_vm2, %v1913_v62 }
 0x9ca   :  { %6117 = vmatmul.mubr.msk.f32.vlgmr.msra.gmra.mrb[28].mxu1 %vm333_vm2, %v1908_v63  ;;  %6527 = vmatpush3.bf16.msra.mxu0 %v6524_v39 }
 0x9cb   :  { %6121 = vmatprep.mubr.msk.f32.mxu1 %vm6774_vm1, %v6773_v24  ;;  %6120 = vmatpush3.msra.mxu1 %v2066_v3 }
 0x9cc   :  { %6129 = vmatprep.subr.mxu1 %v6773_v24  ;;  %6529 = vmatprep.subr.bf16.mxu0 %v6528_v46 }
 0x9ce   :  { %6531 = vmatpush3.bf16.msra.mxu0 %v6528_v46 }
 0xa9c   :  { %v2312_v4 = vpop.f32.mrb[20].mxu0 }
 0xa9d   :  { %v2146_v5 = vpop.f32.mrb[28].mxu1  ;;  %v6128_v6 = vpop.f32.mrb[21].mxu0  ;;  %v2316_v7 = vsel %vm333_vm2, %v2312_v4, -inf }
 0xa9e   :  { %2317 = vmax.xlane.f32.xlu1 %v2316_v7  ;;  %v6118_v9 = vpop.f32.mrb[29].mxu1  ;;  %v2150_v10 = vsel %vm333_vm2, %v2146_v5, -inf }
 0xa9f   :  { %2151 = vmax.xlane.f32.xlu0 %v2150_v10 }
 0xb2b   :  { %v2318_v11 = vpop.xlane.xlu1 %2317 }
 0xb2c   :  { %v2319_v12 = vsub.f32 %v2312_v4, %v2318_v11  ;;  %v2152_v40 = vpop.xlane.xlu0 %2151 }
 0xb2d   :  { %v2153_v13 = vsub.f32 %v2146_v5, %v2152_v40 }
 0xb2e   :  { %v2320_v14 = vmul.f32 1.442695, %v2319_v12  ;;  %v63_v12 = vld [vmem:[%s7796_s5 + $0x8] sm:$0xff] }
 0xb2f   :  { %v2154_v15 = vmul.f32 1.442695, %v2153_v13  ;;  %v64_v13 = vld [vmem:[%s7796_s5 + $0x10] sm:$0xff] }
 0xb30   :  { %6713 = vpow2.f32 %v2320_v14  ;;  %v65_v14 = vld [vmem:[%s7796_s5 + $0x18] sm:$0xff] }
 0xb31   :  { %6715 = vpow2.f32 %v2154_v15  ;;  %v6536_v15 = vpack.c.bf16 %v65_v14, %v64_v13 }
 0xb3a   :  { %v6714_v16 = vpop.eup %6713 }
 0xb3b   :  { %v6716_v17 = vpop.eup %6715  ;;  %v2322_v18 = vsel %vm333_vm2, %v6714_v16, 0.0 }
 0xb3c   :  { %2323 = vadd.xlane.f32.xlu1 %v2322_v18  ;;  %v2156_v20 = vsel %vm333_vm2, %v6716_v17, 0.0  ;;  %v68_v18 = vld [vmem:[%s7797_s6 + $0x10] sm:$0xff] }
 0xb3d   :  { %2157 = vadd.xlane.f32.xlu0 %v2156_v20 }
 0xb4d   :  { %1235 = vrot.lane.b32.xlu1 %v7108_v41, %s6775_s2 }
 0xb51   :  { %1652 = vrot.lane.b32.xlu1 %v1647_v50, %s6776_s3 }
 0xb53   :  { %1069 = vrot.lane.b32.xlu0 %v7106_v38, %s6775_s2 }
 0xb55   :  { %1818 = vrot.lane.b32.xlu1 %v1813_v52, %s6776_s3 }
 0xbc9   :  { %v2324_v21 = vpop.xlane.xlu1 %2323 }
 0xbca   :  { %v2158_v22 = vpop.xlane.xlu0 %2157 }
 0xbcb   :  { %6717 = vrcp.f32 %v2158_v22 }
 0xbcc   :  { %6719 = vrcp.f32 %v2324_v21  ;;  %v69_v21 = vld [vmem:[%s7797_s6 + $0x18] sm:$0xff] }
 0xbcd   :  { %v1236_v23 = vpop.permute.xlu1 %1235  ;;  %v6544_v22 = vpack.c.bf16 %v69_v21, %v68_v18  ;;  %v2766_v18 = vld [vmem:[%s7798_s8 + $0x8] sm:$0xff]  ;;  %v5576_v21 = vld [vmem:[%s7798_s8 + $0x100] sm:$0xff] }
 0xbce   :  { %1238 = vst.msk [vmem:[#allocation2 + $0x8] sm:$0xff] %vm1072_vm3, %v1236_v23  ;;  %v1070_v25 = vpop.permute.xlu0 %1069  ;;  %v70_v23 = vld [vmem:[%s7797_s6 + $0x20] sm:$0xff] }
 0xbcf   :  { %1073 = vst.msk [vmem:[#allocation2] sm:$0xff] %vm1072_vm3, %v1070_v25  ;;  %v71_v25 = vld [vmem:[%s7797_s6 + $0x28] sm:$0xff] }
 0xbd1   :  { %v1653_v41 = vpop.permute.xlu1 %1652 }
 0xbd2   :  { %1656 = vst.msk [vmem:[#allocation2] sm:$0xff] %vm1655_vm4, %v1653_v41  ;;  %v6548_v41 = vpack.c.bf16 %v71_v25, %v70_v23  ;;  %v2767_v25 = vld [vmem:[%s7798_s8 + $0x10] sm:$0xff] }
 0xbd5   :  { %v6718_v27 = vpop.eup %6717  ;;  %v1819_v28 = vpop.permute.xlu1 %1818 }
 0xbd6   :  { %v2160_v38 = vmul.f32 %v6718_v27, %v6716_v17  ;;  %1821 = vst.msk [vmem:[#allocation2 + $0x8] sm:$0xff] %vm1655_vm4, %v1819_v28  ;;  %v6720_v32 = vpop.eup %6719  ;;  %v67_v17 = vld [vmem:[%s7797_s6 + $0x8] sm:$0xff] }
 0xbd7   :  { %v2326_v33 = vmul.f32 %v6720_v32, %v6714_v16  ;;  %v66_v16 = vld [vmem:[%s7797_s6] sm:$0xff] }
 0xbd8   :  { %6122 = vmatmul.mubr.msk.f32.vlgmr.msra.gmra.mrb[30].mxu1 %vm333_vm2, %v2160_v38  ;;  %v6540_v20 = vpack.c.bf16 %v67_v17, %v66_v16  ;;  %v2765_v17 = vld [vmem:[%s7798_s8] sm:$0xff] }
 0xbd9   :  { %6130 = vmatpush3.msra.mxu1 %v2071_v1  ;;  %6131 = vmatprep.mubr.msk.f32.mxu1 %vm6774_vm1, %v6773_v24 }
 0xbda   :  { %6541 = vmatprep.subr.bf16.mxu0 %v6540_v20 }
 0xbdc   :  { %6132 = vmatmul.mubr.msk.f32.vlgmr.msra.gmra.mrb[32].mxu1 %vm333_vm2, %v2326_v33 }
 0xcab   :  { %v2230_v47 = vpop.f32.mrb[30].mxu1 }
 0xcac   :  { %2235 = vrot.lane.b32.xlu0 %v2230_v47, %s6777_s1  ;;  %v6123_v48 = vpop.f32.mrb[31].mxu1 }
 0xcaf   :  { %v2396_v49 = vpop.f32.mrb[32].mxu1 }
 0xcb0   :  { %2401 = vrot.lane.b32.xlu1 %v2396_v49, %s6777_s1  ;;  %v6133_v50 = vpop.f32.mrb[33].mxu1 }
 0xd1e   :  { %v2236_v51 = vpop.permute.xlu0 %2235 }
 0xd1f   :  { %2239 = vst.msk [vmem:[#allocation2] sm:$0xff] %vm2238_vm5, %v2236_v51 }
 0xd22   :  { %v2402_v52 = vpop.permute.xlu1 %2401 }
 0xd23   :  { %2404 = vst.msk [vmem:[#allocation2 + $0x8] sm:$0xff] %vm2238_vm5, %v2402_v52  ;;  %v72_v52 = vld [vmem:[%s7797_s6 + $0x30] sm:$0xff] }
 0xd26   :  { %v2405_v53 = vld [vmem:[#allocation2] sm:$0xff] }
 0xd27   :  { %6142 = vmatprep.mubr.msk.f32.mxu0 %vm93_vm0, %v2405_v53  ;;  %v73_v53 = vld [vmem:[%s7797_s6 + $0x38] sm:$0xff] }
 0xd2a   :  { %v2406_v56 = vld [vmem:[#allocation2 + $0x8] sm:$0xff] }
 0xd2b   :  { %6143 = vmatmul.mubr.msk.f32.vlgmr.msra.gmra.mrb[22].mxu0 %vm93_vm0, %v2406_v56  ;;  %v6552_v56 = vpack.c.bf16 %v73_v53, %v72_v52  ;;  %v2743_v53 = vrot.slane %v7250_v57, %v7111_v43 }
 0xd2c   :  { %6543 = vmatpush3.bf16.msra.mxu0 %v6540_v20  ;;  %v6556_v20 = vpack.c.bf16 %v2766_v18, %v2765_v17 }
 0xd2d   :  { %6545 = vmatprep.subr.bf16.mxu0 %v6544_v22 }
 0xd30   :  { %6547 = vmatpush3.bf16.msra.mxu0 %v6544_v22  ;;  %v5577_v22 = vld [vmem:[%s7798_s8 + $0x108] sm:$0xff] }
 0xd31   :  { %6549 = vmatprep.subr.bf16.mxu0 %v6548_v41  ;;  %v6572_v23 = vpack.c.bf16 %v5577_v22, %v5576_v21  ;;  %v5601_v21 = vld [vmem:[%s7798_s8 + $0x128] sm:$0xff] }
 0xd34   :  { %6551 = vmatpush3.bf16.msra.mxu0 %v6548_v41  ;;  %v2768_v41 = vld [vmem:[%s7798_s8 + $0x18] sm:$0xff] }
 0xd35   :  { %6553 = vmatprep.subr.bf16.mxu0 %v6552_v56 }
 0xd38   :  { %6555 = vmatpush3.bf16.msra.mxu0 %v6552_v56 }
 0xd39   :  { %6573 = vmatprep.subr.bf16.mxu0 %v6572_v23 }
 0xdfe   :  { %v6144_v59 = vpop.f32.mrb[22].mxu0 }
 0xdff   :  { %v2489_v60 = vadd.f32 %v6144_v59, %v2410_v58  ;;  %v2483_v61 = vpop.f32.mrb[23].mxu0 }
 0xe00   :  { %v2484_v62 = vadd.f32 %v2483_v61, %v2410_v58  ;;  %v2536_v58 = vrot.slane %v7250_v57, %v7194_v55 }
 0xe01   :  { %v2493_v63 = vadd.f32 %v2489_v60, %v6906_v19 }
 0xe02   :  { %v2492_v30 = vadd.f32 %v2484_v62, %v6876_v8  ;;  %v62_v8 = vld [vmem:[%s7796_s5] sm:$0xff] }
 0xe03   :  { %v2497_v0 = vsel %vm93_vm0, %v2493_v63, 0.0  ;;  %v6532_v40 = vpack.c.bf16 %v63_v12, %v62_v8 }
 0xe04   :  { %2498 = vadd.xlane.f32.xlu1 %v2497_v0  ;;  %v2494_v1 = vsel %vm93_vm0, %v2492_v30, 0.0  ;;  %v2623_v0 = vrot.slane %v7250_v57, %v6931_v29 }
 0xe05   :  { %2495 = vadd.xlane.f32.xlu0 %v2494_v1  ;;  %6533 = vmatprep.subr.bf16.mxu1 %v6532_v40 }
 0xe06   :  { %6535 = vmatpush3.bf16.msra.mxu1 %v6532_v40 }
 0xe07   :  { %6537 = vmatprep.subr.bf16.mxu1 %v6536_v15 }
 0xe0a   :  { %6539 = vmatpush3.bf16.msra.mxu1 %v6536_v15 }
 0xe0b   :  { %6557 = vmatprep.subr.bf16.mxu1 %v6556_v20 }
 0xe91   :  { %v2499_v2 = vpop.xlane.xlu1 %2498 }
 0xe92   :  { %v2502_v3 = vmul.f32 0.03125, %v2499_v2  ;;  %v2496_v4 = vpop.xlane.xlu0 %2495 }
 0xe93   :  { %v2501_v5 = vmul.f32 0.03125, %v2496_v4 }
 0xe94   :  { %v2504_v6 = vsub.f32 %v2493_v63, %v2502_v3 }
 0xe95   :  { %v2503_v7 = vsub.f32 %v2492_v30, %v2501_v5 }
 0xe96   :  { %v2506_v11 = vmul.f32 %v2504_v6, %v2504_v6 }
 0xe97   :  { %v2505_v9 = vmul.f32 %v2503_v7, %v2503_v7 }
 0xe98   :  { %v2510_v19 = vsel %vm93_vm0, %v2506_v11, 0.0 }
 0xe99   :  { %v2507_v10 = vsel %vm93_vm0, %v2505_v9, 0.0 }
 0xe9a   :  { %2508 = vadd.xlane.f32.xlu0 %v2507_v10 }
 0xe9e   :  { %2511 = vadd.xlane.f32.xlu0 %v2510_v19 }
 0xf27   :  { %v2509_v27 = vpop.xlane.xlu0 %2508 }
 0xf28   :  { %v2513_v28 = vmul.f32 0.03125, %v2509_v27  ;;  %v6560_v27 = vpack.c.bf16 %v2768_v41, %v2767_v25  ;;  %v5602_v25 = vld [vmem:[%s7798_s8 + $0x130] sm:$0xff]  ;;  %v5603_v41 = vld [vmem:[%s7798_s8 + $0x138] sm:$0xff] }
 0xf2a   :  { %v2515_v38 = vadd.f32 1e-05, %v2513_v28  ;;  %v5578_v28 = vld [vmem:[%s7798_s8 + $0x110] sm:$0xff] }
 0xf2b   :  { %v2512_v32 = vpop.xlane.xlu0 %2511 }
 0xf2c   :  { %6721 = vrsqrt.f32 %v2515_v38  ;;  %v2514_v33 = vmul.f32 0.03125, %v2512_v32  ;;  %v5579_v38 = vld [vmem:[%s7798_s8 + $0x118] sm:$0xff] }
 0xf2d   :  { %v6576_v32 = vpack.c.bf16 %v5579_v38, %v5578_v28 }
 0xf2e   :  { %v2516_v34 = vadd.f32 1e-05, %v2514_v33  ;;  %v5572_v33 = vld [vmem:[%s7798_s8 + $0x80] sm:$0xff] }
 0xf30   :  { %6723 = vrsqrt.f32 %v2516_v34  ;;  %v5573_v34 = vld [vmem:[%s7798_s8 + $0x88] sm:$0xff] }
 0xf36   :  { %v6722_v39 = vpop.eup %6721 }
 0xf37   :  { %v2519_v42 = vmul.f32 %v6722_v39, %v2503_v7 }
 0xf39   :  { %v2525_v46 = vmul.f32 %v2524_v37, %v2519_v42 }
 0xf3a   :  { %v6724_v47 = vpop.eup %6723 }
 0xf3b   :  { %v2520_v48 = vmul.f32 %v6724_v47, %v2504_v6  ;;  %v2531_v49 = vadd.f32 %v2530_v45, %v2525_v46 }
 0xf3d   :  { %v2526_v50 = vmul.f32 %v2524_v37, %v2520_v48  ;;  %6153 = vmatprep.mubr.msk.f32.mxu1 %vm93_vm0, %v2531_v49  ;;  %v6564_v37 = vpack.c.bf16 %v5573_v34, %v5572_v33 }
 0xf3f   :  { %v2532_v51 = vadd.f32 %v2530_v45, %v2526_v50 }
 0xf41   :  { %6154 = vmatmul.mubr.msk.f32.vlgmr.msra.gmra.mrb[34].mxu1 %vm93_vm0, %v2532_v51 }
 0xf42   :  { %6559 = vmatpush3.bf16.msra.mxu1 %v6556_v20  ;;  %v5600_v20 = vld [vmem:[%s7798_s8 + $0x120] sm:$0xff] }
 0xf43   :  { %6561 = vmatprep.subr.bf16.mxu1 %v6560_v27 }
 0xf46   :  { %6563 = vmatpush3.bf16.msra.mxu1 %v6560_v27  ;;  %v6600_v27 = vpack.c.bf16 %v5603_v41, %v5602_v25  ;;  %v5618_v25 = vld [vmem:[%s7798_s8 + $0x50] sm:$0xff]  ;;  %v5619_v41 = vld [vmem:[%s7798_s8 + $0x58] sm:$0xff] }
 0xf47   :  { %6565 = vmatprep.subr.bf16.mxu1 %v6564_v37 }
0x1014   :  { %v6155_v59 = vpop.f32.mrb[34].mxu1 }
0x1015   :  { %v2615_v60 = vadd.f32 %v6155_v59, %v2536_v58  ;;  %v2609_v61 = vpop.f32.mrb[35].mxu1 }
0x1016   :  { %v2610_v62 = vadd.f32 %v2609_v61, %v2536_v58  ;;  %v5575_v61 = vld [vmem:[%s7798_s8 + $0x98] sm:$0xff] }
0x1017   :  { %v2619_v30 = vmax.f32 %v2615_v60, 0.0  ;;  %v5574_v60 = vld [vmem:[%s7798_s8 + $0x90] sm:$0xff] }
0x1018   :  { %v2618_v63 = vmax.f32 %v2610_v62, 0.0 }
0x101a   :  { %6172 = vmatprep.mubr.msk.f32.mxu0 %vm2624_vm6, %v2618_v63 }
0x101b   :  { %6173 = vmatmul.mubr.msk.f32.vlgmr.msra.gmra.mrb[24].mxu0 %vm2624_vm6, %v2619_v30  ;;  %v6568_v30 = vpack.c.bf16 %v5575_v61, %v5574_v60 }
0x101c   :  { %6575 = vmatpush3.bf16.msra.mxu0 %v6572_v23  ;;  %v6596_v23 = vpack.c.bf16 %v5601_v21, %v5600_v20 }
0x101d   :  { %6577 = vmatprep.subr.bf16.mxu0 %v6576_v32 }
0x1020   :  { %6579 = vmatpush3.bf16.msra.mxu0 %v6576_v32 }
0x1021   :  { %6218 = vmatprep.subr.mxu0 %v6773_v24 }
0x10ee   :  { %v6174_v1 = vpop.f32.mrb[24].mxu0 }
0x10ef   :  { %v2703_v2 = vadd.f32 %v6174_v1, %v2623_v0  ;;  %v2697_v3 = vpop.f32.mrb[25].mxu0 }
0x10f0   :  { %v2698_v4 = vadd.f32 %v2697_v3, %v2623_v0 }
0x10f1   :  { %v2707_v5 = vadd.f32 %v2703_v2, %v2532_v51 }
0x10f2   :  { %v2706_v6 = vadd.f32 %v2698_v4, %v2531_v49  ;;  %v2737_v49 = vrot.slane %v7250_v57, %v7025_v35  ;;  %v7377_v57 = vld [vmem:[%s7799_s9 + $0x8] sm:$0xf] }
0x10f3   :  { %v2711_v7 = vsel %vm93_vm0, %v2707_v5, 0.0  ;;  %v2946_v0 = vrot.slane %v7377_v57, %v6939_v31 }
0x10f4   :  { %2712 = vadd.xlane.f32.xlu1 %v2711_v7  ;;  %v2708_v9 = vsel %vm93_vm0, %v2706_v6, 0.0 }
0x10f5   :  { %2709 = vadd.xlane.f32.xlu0 %v2708_v9  ;;  %v5592_v9 = vld [vmem:[%s7798_s8 + $0x20] sm:$0xff] }
0x1181   :  { %v2713_v10 = vpop.xlane.xlu1 %2712 }
0x1182   :  { %v2715_v11 = vmul.f32 0.03125, %v2713_v10  ;;  %v2710_v19 = vpop.xlane.xlu0 %2709  ;;  %v5593_v10 = vld [vmem:[%s7798_s8 + $0x28] sm:$0xff] }
0x1183   :  { %v2714_v8 = vmul.f32 0.03125, %v2710_v19 }
0x1184   :  { %v2717_v12 = vsub.f32 %v2707_v5, %v2715_v11 }
0x1185   :  { %v2716_v40 = vsub.f32 %v2706_v6, %v2714_v8  ;;  %v7386_v6 = vld [vmem:[%s7799_s9] sm:$0xff]  ;;  %v6580_v8 = vpack.c.bf16 %v5593_v10, %v5592_v9  ;;  %v5598_v10 = vld [vmem:[%s7798_s8 + $0xb0] sm:$0xff] }
0x1186   :  { %v2719_v13 = vmul.f32 %v2717_v12, %v2717_v12  ;;  %v2867_v7 = vrot.slane %v7386_v6, %v6931_v29  ;;  %v2782_v11 = vrot.slane %v7386_v6, %v6939_v31 }
0x1187   :  { %v2718_v14 = vmul.f32 %v2716_v40, %v2716_v40 }
0x1188   :  { %v2723_v15 = vsel %vm93_vm0, %v2719_v13, 0.0 }
0x1189   :  { %2724 = vadd.xlane.f32.xlu1 %v2723_v15  ;;  %v2720_v16 = vsel %vm93_vm0, %v2718_v14, 0.0  ;;  %v5594_v14 = vld [vmem:[%s7798_s8 + $0x30] sm:$0xff]  ;;  %v5595_v15 = vld [vmem:[%s7798_s8 + $0x38] sm:$0xff] }
0x118a   :  { %2721 = vadd.xlane.f32.xlu0 %v2720_v16  ;;  %v6584_v18 = vpack.c.bf16 %v5595_v15, %v5594_v14  ;;  %v3441_v14 = vrot.slane %v7386_v6, %v7025_v35  ;;  %v5616_v15 = vld [vmem:[%s7798_s8 + $0x40] sm:$0xff] }
0x1216   :  { %v2725_v39 = vpop.xlane.xlu1 %2724 }
0x1217   :  { %v2727_v42 = vmul.f32 0.03125, %v2725_v39  ;;  %v2722_v45 = vpop.xlane.xlu0 %2721 }
0x1218   :  { %v2726_v46 = vmul.f32 0.03125, %v2722_v45  ;;  %v7443_v45 = vrot.slane %v7377_v57, %v7028_v36 }
0x1219   :  { %v2729_v47 = vadd.f32 1e-05, %v2727_v42 }
0x121a   :  { %v2728_v48 = vadd.f32 1e-05, %v2726_v46 }
0x121b   :  { %6725 = vrsqrt.f32 %v2729_v47 }
0x121c   :  { %6727 = vrsqrt.f32 %v2728_v48 }
0x1225   :  { %v6726_v50 = vpop.eup %6725 }
0x1226   :  { %v6728_v51 = vpop.eup %6727  ;;  %v2733_v52 = vmul.f32 %v6726_v50, %v2717_v12 }
0x1227   :  { %v2732_v56 = vmul.f32 %v6728_v51, %v2716_v40 }
0x1228   :  { %v2739_v58 = vmul.f32 %v2737_v49, %v2733_v52 }
0x1229   :  { %v2738_v59 = vmul.f32 %v2737_v49, %v2732_v56 }
0x122a   :  { %v7355_v63 = vadd.f32 %v2743_v53, %v2739_v58 }
0x122b   :  { %v7353_v62 = vadd.f32 %v2743_v53, %v2738_v59 }
0x122d   :  { %6183 = vmatprep.mubr.msk.f32.mxu1 %vm93_vm0, %v7353_v62  ;;  %6205 = vmatprep.mubr.msk.f32.mxu0 %vm93_vm0, %v7353_v62 }
0x122e   :  { %6184 = vmatmul.mubr.msk.f32.vlgmr.msra.gmra.mrb[36].mxu1 %vm93_vm0, %v7355_v63  ;;  %6206 = vmatmul.mubr.msk.f32.vlgmr.msra.gmra.mrb[26].mxu0 %vm93_vm0, %v7355_v63 }
0x122f   :  { %6567 = vmatpush3.bf16.msra.mxu1 %v6564_v37  ;;  %6194 = vmatprep.mubr.msk.f32.mxu1 %vm93_vm0, %v7353_v62 }
0x1230   :  { %6569 = vmatprep.subr.bf16.mxu1 %v6568_v30  ;;  %6220 = vmatprep.mubr.msk.f32.mxu0 %vm6774_vm1, %v6773_v24 }
0x1233   :  { %6571 = vmatpush3.bf16.msra.mxu1 %v6568_v30 }
0x1234   :  { %6208 = vmatprep.subr.mxu1 %v6773_v24 }
0x1236   :  { %6195 = vmatmul.mubr.msk.f32.vlgmr.msra.gmra.mrb[38].mxu1 %vm93_vm0, %v7355_v63 }
0x1237   :  { %6210 = vmatprep.mubr.msk.f32.mxu1 %vm6774_vm1, %v6773_v24 }
0x1301   :  { %v6185_v1 = vpop.f32.mrb[36].mxu1  ;;  %v6207_v2 = vpop.f32.mrb[26].mxu0 }
0x1302   :  { %v7381_v3 = vadd.f32 %v6207_v2, %v2946_v0  ;;  %v2855_v4 = vpop.f32.mrb[37].mxu1  ;;  %v3013_v5 = vpop.f32.mrb[27].mxu0  ;;  %v2861_v16 = vadd.f32 %v6185_v1, %v2782_v11  ;;  %v5596_v1 = vld [vmem:[%s7798_s8 + $0xa0] sm:$0xff]  ;;  %v5597_v2 = vld [vmem:[%s7798_s8 + $0xa8] sm:$0xff] }
0x1303   :  { %v2856_v17 = vadd.f32 %v2855_v4, %v2782_v11  ;;  %v3014_v22 = vadd.f32 %v3013_v5, %v2946_v0  ;;  %v5599_v11 = vld [vmem:[%s7798_s8 + $0xb8] sm:$0xff] }
0x1309   :  { %v6196_v19 = vpop.f32.mrb[38].mxu1 }
0x130a   :  { %v2940_v12 = vadd.f32 %v6196_v19, %v2867_v7  ;;  %v2934_v40 = vpop.f32.mrb[39].mxu1 }
0x130b   :  { %v2935_v13 = vadd.f32 %v2934_v40, %v2867_v7  ;;  %v6588_v7 = vpack.c.bf16 %v5597_v2, %v5596_v1 }
0x130c   :  { %6219 = vmatpush3.xpose.msk.msra.mxu0 %vm333_vm2, %v2940_v12 }
0x130d   :  { %6209 = vmatpush3.xpose.msk.msra.mxu1 %vm333_vm2, %v2935_v13  ;;  %6581 = vmatprep.subr.bf16.mxu0 %v6580_v8 }
0x130e   :  { %6213 = vmatprep.subr.mxu1 %v6773_v24 }
0x130f   :  { %6221 = vmatmul.mubr.msk.f32.vlgmr.msra.gmra.mrb[28].mxu0 %vm333_vm2, %v2861_v16  ;;  %v5617_v16 = vld [vmem:[%s7798_s8 + $0x48] sm:$0xff] }
0x1310   :  { %6211 = vmatmul.mubr.msk.f32.vlgmr.msra.gmra.mrb[40].mxu1 %vm333_vm2, %v2856_v17  ;;  %6583 = vmatpush3.bf16.msra.mxu0 %v6580_v8  ;;  %v6592_v8 = vpack.c.bf16 %v5599_v11, %v5598_v10  ;;  %v3362_v17 = vrot.slane %v7386_v6, %v7028_v36  ;;  %v6604_v20 = vpack.c.bf16 %v5617_v16, %v5616_v15  ;;  %v5622_v16 = vld [vmem:[%s7798_s8 + $0xd0] sm:$0xff] }
0x1311   :  { %6236 = vmatprep.mubr.msk.f32.mxu0 %vm93_vm0, %v7353_v62  ;;  %6214 = vmatpush3.msra.mxu1 %v3014_v22 }
0x1312   :  { %6585 = vmatprep.subr.bf16.mxu0 %v6584_v18  ;;  %6215 = vmatprep.mubr.msk.f32.mxu1 %vm6774_vm1, %v6773_v24 }
0x1313   :  { %6223 = vmatprep.subr.mxu1 %v6773_v24 }
0x1314   :  { %6587 = vmatpush3.bf16.msra.mxu0 %v6584_v18 }
0x1315   :  { %6597 = vmatprep.subr.bf16.mxu0 %v6596_v23 }
0x1317   :  { %6237 = vmatmul.mubr.msk.f32.vlgmr.msra.gmra.mrb[30].mxu0 %vm93_vm0, %v7355_v63 }
0x1318   :  { %6599 = vmatpush3.bf16.msra.mxu0 %v6596_v23  ;;  %6258 = vmatprep.mubr.msk.f32.mxu0 %vm93_vm0, %v7353_v62 }
0x1319   :  { %6601 = vmatprep.subr.bf16.mxu0 %v6600_v27 }
0x131c   :  { %6603 = vmatpush3.bf16.msra.mxu0 %v6600_v27 }
0x131d   :  { %6271 = vmatprep.subr.mxu0 %v6773_v24 }
0x131f   :  { %6259 = vmatmul.mubr.msk.f32.vlgmr.msra.gmra.mrb[32].mxu0 %vm93_vm0, %v7355_v63 }
0x1320   :  { %6273 = vmatprep.mubr.msk.f32.mxu0 %vm6774_vm1, %v6773_v24 }
0x13e2   :  { %v3255_v28 = vpop.f32.mrb[28].mxu0 }
0x13e3   :  { %v3094_v38 = vpop.f32.mrb[40].mxu1  ;;  %v6222_v32 = vpop.f32.mrb[29].mxu0  ;;  %v3259_v33 = vsel %vm333_vm2, %v3255_v28, -inf }
0x13e4   :  { %3260 = vmax.xlane.f32.xlu1 %v3259_v33  ;;  %v6212_v34 = vpop.f32.mrb[41].mxu1  ;;  %v3098_v37 = vsel %vm333_vm2, %v3094_v38, -inf  ;;  %v5624_v32 = vld [vmem:[%s7798_s8 + $0x140] sm:$0xff]  ;;  %v5625_v33 = vld [vmem:[%s7798_s8 + $0x148] sm:$0xff] }
0x13e5   :  { %3099 = vmax.xlane.f32.xlu0 %v3098_v37  ;;  %v6620_v37 = vpack.c.bf16 %v5625_v33, %v5624_v32 }
0x13ea   :  { %v7437_v39 = vpop.f32.mrb[30].mxu0 }
0x13eb   :  { %v7439_v42 = vpop.f32.mrb[31].mxu0  ;;  %v3435_v27 = vadd.f32 %v7437_v39, %v3362_v17  ;;  %v5626_v39 = vld [vmem:[%s7798_s8 + $0x150] sm:$0xff] }
0x13f2   :  { %v6260_v46 = vpop.f32.mrb[32].mxu0 }
0x13f3   :  { %v7446_v47 = vadd.f32 %v6260_v46, %v7443_v45  ;;  %v7448_v48 = vpop.f32.mrb[33].mxu0 }
0x13f4   :  { %v3588_v34 = vadd.f32 %v7448_v48, %v7443_v45 }
0x1471   :  { %v3261_v49 = vpop.xlane.xlu1 %3260 }
0x1472   :  { %v3262_v50 = vsub.f32 %v3255_v28, %v3261_v49  ;;  %v3100_v51 = vpop.xlane.xlu0 %3099  ;;  %v3430_v28 = vadd.f32 %v7439_v42, %v3362_v17  ;;  %v5627_v42 = vld [vmem:[%s7798_s8 + $0x158] sm:$0xff] }
0x1473   :  { %v3101_v52 = vsub.f32 %v3094_v38, %v3100_v51  ;;  %v6608_v38 = vpack.c.bf16 %v5619_v41, %v5618_v25  ;;  %v6624_v45 = vpack.c.bf16 %v5627_v42, %v5626_v39  ;;  %v5623_v17 = vld [vmem:[%s7798_s8 + $0xd8] sm:$0xff]  ;;  %v4023_v25 = vrot.slane %v7386_v6, %v7111_v43  ;;  %v5640_v41 = vld [vmem:[%s7798_s8 + $0x60] sm:$0xff]  ;;  %v5642_v39 = vld [vmem:[%s7798_s8 + $0x70] sm:$0xff] }
0x1474   :  { %v3263_v53 = vmul.f32 1.442695, %v3262_v50  ;;  %v5643_v42 = vld [vmem:[%s7798_s8 + $0x78] sm:$0xff] }
0x1475   :  { %v3102_v56 = vmul.f32 1.442695, %v3101_v52 }
0x1476   :  { %6729 = vpow2.f32 %v3263_v53 }
0x1477   :  { %6731 = vpow2.f32 %v3102_v56 }
0x1480   :  { %v6730_v58 = vpop.eup %6729 }
0x1481   :  { %v6732_v59 = vpop.eup %6731  ;;  %v3265_v60 = vsel %vm333_vm2, %v6730_v58, 0.0 }
0x1482   :  { %3266 = vadd.xlane.f32.xlu1 %v3265_v60  ;;  %v3104_v61 = vsel %vm333_vm2, %v6732_v59, 0.0 }
0x1483   :  { %3105 = vadd.xlane.f32.xlu0 %v3104_v61 }
0x150f   :  { %v3267_v30 = vpop.xlane.xlu1 %3266 }
0x1510   :  { %v3106_v0 = vpop.xlane.xlu0 %3105 }
0x1511   :  { %6733 = vrcp.f32 %v3106_v0 }
0x1512   :  { %6735 = vrcp.f32 %v3267_v30 }
0x151b   :  { %v6734_v4 = vpop.eup %6733 }
0x151c   :  { %v3108_v5 = vmul.f32 %v6734_v4, %v6732_v59  ;;  %v6736_v9 = vpop.eup %6735 }
0x151d   :  { %v3269_v19 = vmul.f32 %v6736_v9, %v6730_v58  ;;  %v7535_v58 = vrot.slane %v7377_v57, %v7114_v44 }
0x151e   :  { %6216 = vmatmul.mubr.msk.f32.vlgmr.msra.gmra.mrb[42].mxu1 %vm333_vm2, %v3108_v5 }
0x151f   :  { %6224 = vmatpush3.msra.mxu1 %v7381_v3  ;;  %6225 = vmatprep.mubr.msk.f32.mxu1 %vm6774_vm1, %v6773_v24 }
0x1520   :  { %6589 = vmatprep.subr.bf16.mxu1 %v6588_v7 }
0x1522   :  { %6226 = vmatmul.mubr.msk.f32.vlgmr.msra.gmra.mrb[44].mxu1 %vm333_vm2, %v3269_v19 }
0x1523   :  { %6591 = vmatpush3.bf16.msra.mxu1 %v6588_v7  ;;  %6247 = vmatprep.mubr.msk.f32.mxu1 %vm93_vm0, %v7353_v62 }
0x1524   :  { %6593 = vmatprep.subr.bf16.mxu1 %v6592_v8 }
0x1527   :  { %6595 = vmatpush3.bf16.msra.mxu1 %v6592_v8 }
0x1528   :  { %6261 = vmatprep.subr.mxu1 %v6773_v24 }
0x152a   :  { %6248 = vmatmul.mubr.msk.f32.vlgmr.msra.gmra.mrb[46].mxu1 %vm93_vm0, %v7355_v63 }
0x152b   :  { %6263 = vmatprep.mubr.msk.f32.mxu1 %vm6774_vm1, %v6773_v24 }
0x15f1   :  { %v3178_v3 = vpop.f32.mrb[42].mxu1 }
0x15f2   :  { %3182 = vst.msk [vmem:[#allocation2] sm:$0xff] %vm333_vm2, %v3178_v3  ;;  %v6217_v12 = vpop.f32.mrb[43].mxu1  ;;  %v5620_v3 = vld [vmem:[%s7798_s8 + $0xc0] sm:$0xff] }
0x15f3   :  { %v5621_v12 = vld [vmem:[%s7798_s8 + $0xc8] sm:$0xff] }
0x15f5   :  { %v3339_v40 = vpop.f32.mrb[44].mxu1 }
0x15f6   :  { %3343 = vst.msk [vmem:[#allocation2 + $0x8] sm:$0xff] %vm333_vm2, %v3339_v40  ;;  %v6227_v13 = vpop.f32.mrb[45].mxu1 }
0x15fd   :  { %v6249_v18 = vpop.f32.mrb[46].mxu1 }
0x15fe   :  { %v3514_v21 = vadd.f32 %v6249_v18, %v3441_v14  ;;  %v3508_v22 = vpop.f32.mrb[47].mxu1 }
0x15ff   :  { %v3509_v23 = vadd.f32 %v3508_v22, %v3441_v14  ;;  %v6612_v14 = vpack.c.bf16 %v5621_v12, %v5620_v3 }
0x1600   :  { %6272 = vmatpush3.xpose.msk.msra.mxu0 %vm333_vm2, %v3514_v21 }
0x1601   :  { %6262 = vmatpush3.xpose.msk.msra.mxu1 %vm333_vm2, %v3509_v23  ;;  %6605 = vmatprep.subr.bf16.mxu0 %v6604_v20 }
0x1602   :  { %6266 = vmatprep.subr.mxu1 %v6773_v24 }
0x1603   :  { %6274 = vmatmul.mubr.msk.f32.vlgmr.msra.gmra.mrb[34].mxu0 %vm333_vm2, %v3435_v27  ;;  %v5641_v27 = vld [vmem:[%s7798_s8 + $0x68] sm:$0xff] }
0x1604   :  { %6264 = vmatmul.mubr.msk.f32.vlgmr.msra.gmra.mrb[48].mxu1 %vm333_vm2, %v3430_v28  ;;  %6607 = vmatpush3.bf16.msra.mxu0 %v6604_v20  ;;  %v6616_v20 = vpack.c.bf16 %v5623_v17, %v5622_v16  ;;  %v3944_v28 = vrot.slane %v7386_v6, %v7114_v44  ;;  %v6628_v32 = vpack.c.bf16 %v5641_v27, %v5640_v41 }
0x1605   :  { %6289 = vmatprep.mubr.msk.f32.mxu0 %vm93_vm0, %v7353_v62  ;;  %6267 = vmatpush3.msra.mxu1 %v3588_v34 }
0x1606   :  { %6609 = vmatprep.subr.bf16.mxu0 %v6608_v38  ;;  %6268 = vmatprep.mubr.msk.f32.mxu1 %vm6774_vm1, %v6773_v24 }
0x1607   :  { %6276 = vmatprep.subr.mxu1 %v6773_v24 }
0x1608   :  { %6611 = vmatpush3.bf16.msra.mxu0 %v6608_v38 }
0x1609   :  { %6621 = vmatprep.subr.bf16.mxu0 %v6620_v37 }
0x160b   :  { %6290 = vmatmul.mubr.msk.f32.vlgmr.msra.gmra.mrb[36].mxu0 %vm93_vm0, %v7355_v63 }
0x160c   :  { %6623 = vmatpush3.bf16.msra.mxu0 %v6620_v37  ;;  %6311 = vmatprep.mubr.msk.f32.mxu0 %vm93_vm0, %v7353_v62 }
0x160d   :  { %6625 = vmatprep.subr.bf16.mxu0 %v6624_v45 }
0x1610   :  { %6627 = vmatpush3.bf16.msra.mxu0 %v6624_v45 }
0x1611   :  { %6324 = vmatprep.subr.mxu0 %v6773_v24 }
0x1613   :  { %6312 = vmatmul.mubr.msk.f32.vlgmr.msra.gmra.mrb[38].mxu0 %vm93_vm0, %v7355_v63 }
0x1614   :  { %6326 = vmatprep.mubr.msk.f32.mxu0 %vm6774_vm1, %v6773_v24 }
0x16d6   :  { %v3833_v46 = vpop.f32.mrb[34].mxu0 }
0x16d7   :  { %v3668_v48 = vpop.f32.mrb[48].mxu1  ;;  %v6275_v49 = vpop.f32.mrb[35].mxu0  ;;  %v3837_v50 = vsel %vm333_vm2, %v3833_v46, -inf }
0x16d8   :  { %3838 = vmax.xlane.f32.xlu1 %v3837_v50  ;;  %v6265_v51 = vpop.f32.mrb[49].mxu1  ;;  %v3672_v52 = vsel %vm333_vm2, %v3668_v48, -inf  ;;  %v5648_v49 = vld [vmem:[%s7798_s8 + $0x160] sm:$0xff]  ;;  %v5649_v50 = vld [vmem:[%s7798_s8 + $0x168] sm:$0xff] }
0x16d9   :  { %3673 = vmax.xlane.f32.xlu0 %v3672_v52  ;;  %v6644_v52 = vpack.c.bf16 %v5649_v50, %v5648_v49 }
0x16de   :  { %v6291_v53 = vpop.f32.mrb[36].mxu0 }
0x16df   :  { %v7531_v56 = vpop.f32.mrb[37].mxu0  ;;  %v4017_v45 = vadd.f32 %v6291_v53, %v3944_v28  ;;  %v5650_v53 = vld [vmem:[%s7798_s8 + $0x170] sm:$0xff] }
0x16e6   :  { %v6313_v59 = vpop.f32.mrb[38].mxu0 }
0x16e7   :  { %v7538_v60 = vadd.f32 %v6313_v59, %v7535_v58  ;;  %v7540_v61 = vpop.f32.mrb[39].mxu0 }
0x16e8   :  { %v4170_v51 = vadd.f32 %v7540_v61, %v7535_v58 }
0x1765   :  { %v3839_v30 = vpop.xlane.xlu1 %3838 }
0x1766   :  { %v3840_v0 = vsub.f32 %v3833_v46, %v3839_v30  ;;  %v3674_v1 = vpop.xlane.xlu0 %3673  ;;  %v4012_v46 = vadd.f32 %v7531_v56, %v3944_v28  ;;  %v5651_v56 = vld [vmem:[%s7798_s8 + $0x178] sm:$0xff]  ;;  %v5646_v28 = vld [vmem:[%s7798_s8 + $0xf0] sm:$0xff] }
0x1767   :  { %v3675_v2 = vsub.f32 %v3668_v48, %v3674_v1  ;;  %v6632_v48 = vpack.c.bf16 %v5643_v42, %v5642_v39  ;;  %v6648_v58 = vpack.c.bf16 %v5651_v56, %v5650_v53  ;;  %v4605_v42 = vrot.slane %v7386_v6, %v1918_v54 }
0x1768   :  { %v3841_v4 = vmul.f32 1.442695, %v3840_v0 }
0x1769   :  { %v3676_v5 = vmul.f32 1.442695, %v3675_v2 }
0x176a   :  { %6737 = vpow2.f32 %v3841_v4 }
0x176b   :  { %6739 = vpow2.f32 %v3676_v5 }
0x1774   :  { %v6738_v7 = vpop.eup %6737 }
0x1775   :  { %v6740_v9 = vpop.eup %6739  ;;  %v3843_v10 = vsel %vm333_vm2, %v6738_v7, 0.0 }
0x1776   :  { %3844 = vadd.xlane.f32.xlu1 %v3843_v10  ;;  %v3678_v11 = vsel %vm333_vm2, %v6740_v9, 0.0 }
0x1777   :  { %3679 = vadd.xlane.f32.xlu0 %v3678_v11 }
0x1803   :  { %v3845_v19 = vpop.xlane.xlu1 %3844 }
0x1804   :  { %v3680_v8 = vpop.xlane.xlu0 %3679 }
0x1805   :  { %6741 = vrcp.f32 %v3680_v8 }
0x1806   :  { %6743 = vrcp.f32 %v3845_v19 }
0x180f   :  { %v6742_v40 = vpop.eup %6741 }
0x1810   :  { %v3682_v13 = vmul.f32 %v6742_v40, %v6740_v9  ;;  %v6744_v15 = vpop.eup %6743 }
0x1811   :  { %v3847_v18 = vmul.f32 %v6744_v15, %v6738_v7  ;;  %v4684_v7 = vrot.slane %v7377_v57, %v7194_v55 }
0x1812   :  { %6269 = vmatmul.mubr.msk.f32.vlgmr.msra.gmra.mrb[50].mxu1 %vm333_vm2, %v3682_v13 }
0x1813   :  { %6277 = vmatpush3.msra.mxu1 %v7446_v47  ;;  %6278 = vmatprep.mubr.msk.f32.mxu1 %vm6774_vm1, %v6773_v24 }
0x1814   :  { %6613 = vmatprep.subr.bf16.mxu1 %v6612_v14 }
0x1816   :  { %6279 = vmatmul.mubr.msk.f32.vlgmr.msra.gmra.mrb[52].mxu1 %vm333_vm2, %v3847_v18 }
0x1817   :  { %6615 = vmatpush3.bf16.msra.mxu1 %v6612_v14  ;;  %6300 = vmatprep.mubr.msk.f32.mxu1 %vm93_vm0, %v7353_v62 }
0x1818   :  { %6617 = vmatprep.subr.bf16.mxu1 %v6616_v20 }
0x181b   :  { %6619 = vmatpush3.bf16.msra.mxu1 %v6616_v20  ;;  %v5644_v20 = vld [vmem:[%s7798_s8 + $0xe0] sm:$0xff] }
0x181c   :  { %6314 = vmatprep.subr.mxu1 %v6773_v24 }
0x181e   :  { %6301 = vmatmul.mubr.msk.f32.vlgmr.msra.gmra.mrb[54].mxu1 %vm93_vm0, %v7355_v63 }
0x181f   :  { %6316 = vmatprep.mubr.msk.f32.mxu1 %vm6774_vm1, %v6773_v24 }
0x18e5   :  { %v7568_v47 = vpop.f32.mrb[50].mxu1 }
0x18e6   :  { %v6270_v21 = vpop.f32.mrb[51].mxu1 }
0x18e7   :  { %v5645_v21 = vld [vmem:[%s7798_s8 + $0xe8] sm:$0xff] }
0x18e8   :  { %v6636_v41 = vpack.c.bf16 %v5645_v21, %v5644_v20 }
0x18e9   :  { %v7570_v22 = vpop.f32.mrb[52].mxu1 }
0x18ea   :  { %v6280_v23 = vpop.f32.mrb[53].mxu1 }
0x18f1   :  { %v6302_v38 = vpop.f32.mrb[54].mxu1 }
0x18f2   :  { %v4096_v33 = vadd.f32 %v6302_v38, %v4023_v25  ;;  %v4090_v34 = vpop.f32.mrb[55].mxu1  ;;  %v5647_v38 = vld [vmem:[%s7798_s8 + $0xf8] sm:$0xff] }
0x18f3   :  { %v4091_v37 = vadd.f32 %v4090_v34, %v4023_v25 }
0x18f4   :  { %6325 = vmatpush3.xpose.msk.msra.mxu0 %vm333_vm2, %v4096_v33  ;;  %v6640_v33 = vpack.c.bf16 %v5647_v38, %v5646_v28 }
0x18f5   :  { %6315 = vmatpush3.xpose.msk.msra.mxu1 %vm333_vm2, %v4091_v37  ;;  %6629 = vmatprep.subr.bf16.mxu0 %v6628_v32 }
0x18f6   :  { %6319 = vmatprep.subr.mxu1 %v6773_v24 }
0x18f7   :  { %6327 = vmatmul.mubr.msk.f32.vlgmr.msra.gmra.mrb[40].mxu0 %vm333_vm2, %v4017_v45  ;;  %v4526_v45 = vrot.slane %v7386_v6, %v7194_v55 }
0x18f8   :  { %6317 = vmatmul.mubr.msk.f32.vlgmr.msra.gmra.mrb[56].mxu1 %vm333_vm2, %v4012_v46  ;;  %6631 = vmatpush3.bf16.msra.mxu0 %v6628_v32 }
0x18f9   :  { %6342 = vmatprep.mubr.msk.f32.mxu0 %vm93_vm0, %v7353_v62  ;;  %6320 = vmatpush3.msra.mxu1 %v4170_v51 }
0x18fa   :  { %6633 = vmatprep.subr.bf16.mxu0 %v6632_v48  ;;  %6321 = vmatprep.mubr.msk.f32.mxu1 %vm6774_vm1, %v6773_v24 }
0x18fb   :  { %6329 = vmatprep.subr.mxu1 %v6773_v24 }
0x18fc   :  { %6635 = vmatpush3.bf16.msra.mxu0 %v6632_v48 }
0x18fd   :  { %6645 = vmatprep.subr.bf16.mxu0 %v6644_v52 }
0x18ff   :  { %6343 = vmatmul.mubr.msk.f32.vlgmr.msra.gmra.mrb[42].mxu0 %vm93_vm0, %v7355_v63 }
0x1900   :  { %6647 = vmatpush3.bf16.msra.mxu0 %v6644_v52  ;;  %6364 = vmatprep.mubr.msk.f32.mxu0 %vm93_vm0, %v7353_v62 }
0x1901   :  { %6649 = vmatprep.subr.bf16.mxu0 %v6648_v58 }
0x1904   :  { %6651 = vmatpush3.bf16.msra.mxu0 %v6648_v58 }
0x1905   :  { %6377 = vmatprep.subr.mxu0 %v6773_v24 }
0x1907   :  { %6365 = vmatmul.mubr.msk.f32.vlgmr.msra.gmra.mrb[44].mxu0 %vm93_vm0, %v7355_v63 }
0x1908   :  { %6379 = vmatprep.mubr.msk.f32.mxu0 %vm6774_vm1, %v6773_v24 }
0x19ca   :  { %v4415_v59 = vpop.f32.mrb[40].mxu0 }
0x19cb   :  { %v4250_v61 = vpop.f32.mrb[56].mxu1  ;;  %v6328_v30 = vpop.f32.mrb[41].mxu0  ;;  %v4419_v0 = vsel %vm333_vm2, %v4415_v59, -inf }
0x19cc   :  { %4420 = vmax.xlane.f32.xlu1 %v4419_v0  ;;  %v6318_v1 = vpop.f32.mrb[57].mxu1  ;;  %v4254_v2 = vsel %vm333_vm2, %v4250_v61, -inf }
0x19cd   :  { %4255 = vmax.xlane.f32.xlu0 %v4254_v2 }
0x19d2   :  { %v6344_v4 = vpop.f32.mrb[42].mxu0 }
0x19d3   :  { %v4593_v5 = vpop.f32.mrb[43].mxu0  ;;  %v4599_v51 = vadd.f32 %v6344_v4, %v4526_v45 }
0x19d4   :  { %v4594_v52 = vadd.f32 %v4593_v5, %v4526_v45 }
0x19da   :  { %v6366_v9 = vpop.f32.mrb[44].mxu0 }
0x19db   :  { %v7626_v10 = vadd.f32 %v6366_v9, %v4684_v7  ;;  %v4751_v11 = vpop.f32.mrb[45].mxu0 }
0x19dc   :  { %v4752_v53 = vadd.f32 %v4751_v11, %v4684_v7 }
0x1a59   :  { %v4421_v19 = vpop.xlane.xlu1 %4420 }
0x1a5a   :  { %v4422_v8 = vsub.f32 %v4415_v59, %v4421_v19  ;;  %v4256_v3 = vpop.xlane.xlu0 %4255 }
0x1a5b   :  { %v4257_v12 = vsub.f32 %v4250_v61, %v4256_v3 }
0x1a5c   :  { %v4423_v40 = vmul.f32 1.442695, %v4422_v8 }
0x1a5d   :  { %v4258_v13 = vmul.f32 1.442695, %v4257_v12 }
0x1a5e   :  { %6745 = vpow2.f32 %v4423_v40 }
0x1a5f   :  { %6747 = vpow2.f32 %v4258_v13 }
0x1a68   :  { %v6746_v14 = vpop.eup %6745 }
0x1a69   :  { %v6748_v15 = vpop.eup %6747  ;;  %v4425_v16 = vsel %vm333_vm2, %v6746_v14, 0.0 }
0x1a6a   :  { %4426 = vadd.xlane.f32.xlu1 %v4425_v16  ;;  %v4260_v17 = vsel %vm333_vm2, %v6748_v15, 0.0  ;;  %v2748_v16 = vld [vmem:[%s7800_s10] sm:$0xff] }
0x1a6b   :  { %4261 = vadd.xlane.f32.xlu0 %v4260_v17  ;;  %v2749_v17 = vld [vmem:[%s7800_s10 + $0x8] sm:$0xff] }
0x1af7   :  { %v4427_v57 = vpop.xlane.xlu1 %4426 }
0x1af8   :  { %v4262_v18 = vpop.xlane.xlu0 %4261 }
0x1af9   :  { %6749 = vrcp.f32 %v4262_v18  ;;  %v2750_v18 = vld [vmem:[%s7800_s10 + $0x10] sm:$0xff] }
0x1afa   :  { %6751 = vrcp.f32 %v4427_v57  ;;  %v6652_v57 = vpack.c.bf16 %v2749_v17, %v2748_v16 }
0x1b03   :  { %v6750_v23 = vpop.eup %6749 }
0x1b04   :  { %v4264_v25 = vmul.f32 %v6750_v23, %v6748_v15  ;;  %v6752_v27 = vpop.eup %6751 }
0x1b05   :  { %v4429_v32 = vmul.f32 %v6752_v27, %v6746_v14 }
0x1b06   :  { %6322 = vmatmul.mubr.msk.f32.vlgmr.msra.gmra.mrb[58].mxu1 %vm333_vm2, %v4264_v25 }
0x1b07   :  { %6330 = vmatpush3.msra.mxu1 %v7538_v60  ;;  %6331 = vmatprep.mubr.msk.f32.mxu1 %vm6774_vm1, %v6773_v24 }
0x1b08   :  { %6637 = vmatprep.subr.bf16.mxu1 %v6636_v41 }
0x1b0a   :  { %6332 = vmatmul.mubr.msk.f32.vlgmr.msra.gmra.mrb[60].mxu1 %vm333_vm2, %v4429_v32  ;;  %v7707_v32 = vld [vmem:[%s7801_s13] sm:$0x7f] }
0x1b0b   :  { %6639 = vmatpush3.bf16.msra.mxu1 %v6636_v41  ;;  %6353 = vmatprep.mubr.msk.f32.mxu1 %vm93_vm0, %v7353_v62  ;;  %v5214_v17 = vrot.slane %v7707_v32, %v7114_v44  ;;  %v5220_v44 = vrot.slane %v7707_v32, %v7194_v55 }
0x1b0c   :  { %6641 = vmatprep.subr.bf16.mxu1 %v6640_v33 }
0x1b0f   :  { %6643 = vmatpush3.bf16.msra.mxu1 %v6640_v33  ;;  %v5095_v33 = vrot.slane %v7707_v32, %v6939_v31 }
0x1b10   :  { %6367 = vmatprep.subr.mxu1 %v6773_v24 }
0x1b12   :  { %6354 = vmatmul.mubr.msk.f32.vlgmr.msra.gmra.mrb[62].mxu1 %vm93_vm0, %v7355_v63 }
0x1b13   :  { %6369 = vmatprep.mubr.msk.f32.mxu1 %vm6774_vm1, %v6773_v24 }
0x1bd9   :  { %v4334_v60 = vpop.f32.mrb[58].mxu1 }
0x1bda   :  { %v6323_v34 = vpop.f32.mrb[59].mxu1 }
0x1bdd   :  { %v4499_v37 = vpop.f32.mrb[60].mxu1 }
0x1bde   :  { %v6333_v39 = vpop.f32.mrb[61].mxu1 }
0x1be5   :  { %v6355_v46 = vpop.f32.mrb[62].mxu1 }
0x1be6   :  { %v4678_v48 = vadd.f32 %v6355_v46, %v4605_v42  ;;  %v4672_v49 = vpop.f32.mrb[63].mxu1 }
0x1be7   :  { %v4673_v50 = vadd.f32 %v4672_v49, %v4605_v42 }
0x1be8   :  { %6378 = vmatpush3.xpose.msk.msra.mxu0 %vm333_vm2, %v4678_v48 }
0x1be9   :  { %6368 = vmatpush3.xpose.msk.msra.mxu1 %vm333_vm2, %v4673_v50  ;;  %6653 = vmatprep.subr.bf16.mxu0 %v6652_v57 }
0x1bea   :  { %6372 = vmatprep.subr.mxu1 %v6773_v24 }
0x1beb   :  { %6380 = vmatmul.mubr.msk.f32.vlgmr.msra.gmra.mrb[46].mxu0 %vm333_vm2, %v4599_v51 }
0x1bec   :  { %6370 = vmatmul.mubr.msk.f32.vlgmr.msra.gmra.mrb[64].mxu1 %vm333_vm2, %v4594_v52  ;;  %6655 = vmatpush3.bf16.msra.mxu0 %v6652_v57 }
0x1bed   :  { %6373 = vmatpush3.msra.mxu1 %v4752_v53  ;;  %6374 = vmatprep.mubr.msk.f32.mxu1 %vm6774_vm1, %v6773_v24 }
0x1bee   :  { %6382 = vmatprep.subr.mxu1 %v6773_v24 }
0x1cbe   :  { %v4997_v26 = vpop.f32.mrb[46].mxu0 }
0x1cbf   :  { %v4832_v54 = vpop.f32.mrb[64].mxu1  ;;  %v6381_v6 = vpop.f32.mrb[47].mxu0  ;;  %v5001_v56 = vsel %vm333_vm2, %v4997_v26, -inf }
0x1cc0   :  { %5002 = vmax.xlane.f32.xlu1 %v5001_v56  ;;  %v6371_v58 = vpop.f32.mrb[65].mxu1  ;;  %v4836_v59 = vsel %vm333_vm2, %v4832_v54, -inf }
0x1cc1   :  { %4837 = vmax.xlane.f32.xlu0 %v4836_v59  ;;  %v2753_v58 = vld [vmem:[%s7802_s11 + $0x8] sm:$0xff] }
0x1d4d   :  { %v5003_v61 = vpop.xlane.xlu1 %5002 }
0x1d4e   :  { %v5004_v30 = vsub.f32 %v4997_v26, %v5003_v61  ;;  %v4838_v0 = vpop.xlane.xlu0 %4837  ;;  %v2754_v61 = vld [vmem:[%s7802_s11 + $0x10] sm:$0xff] }
0x1d4f   :  { %v4839_v1 = vsub.f32 %v4832_v54, %v4838_v0 }
0x1d50   :  { %v5005_v2 = vmul.f32 1.442695, %v5004_v30  ;;  %v2755_v30 = vld [vmem:[%s7802_s11 + $0x18] sm:$0xff] }
0x1d51   :  { %v4840_v4 = vmul.f32 1.442695, %v4839_v1  ;;  %v6664_v0 = vpack.c.bf16 %v2755_v30, %v2754_v61  ;;  %v2756_v1 = vld [vmem:[%s7803_s12] sm:$0xff] }
0x1d52   :  { %6753 = vpow2.f32 %v5005_v2  ;;  %v2757_v2 = vld [vmem:[%s7803_s12 + $0x8] sm:$0xff] }
0x1d53   :  { %6755 = vpow2.f32 %v4840_v4  ;;  %v2758_v4 = vld [vmem:[%s7803_s12 + $0x10] sm:$0xff] }
0x1d5c   :  { %v6754_v5 = vpop.eup %6753 }
0x1d5d   :  { %v6756_v7 = vpop.eup %6755  ;;  %v5007_v9 = vsel %vm333_vm2, %v6754_v5, 0.0 }
0x1d5e   :  { %5008 = vadd.xlane.f32.xlu1 %v5007_v9  ;;  %v4842_v11 = vsel %vm333_vm2, %v6756_v7, 0.0 }
0x1d5f   :  { %4843 = vadd.xlane.f32.xlu0 %v4842_v11  ;;  %v2760_v11 = vld [vmem:[%s7803_s12 + $0x20] sm:$0xff] }
0x1d6f   :  { %3922 = vrot.lane.b32.xlu1 %v7570_v22, %s6775_s2 }
0x1d73   :  { %4339 = vrot.lane.b32.xlu1 %v4334_v60, %s6776_s3 }
0x1d75   :  { %3757 = vrot.lane.b32.xlu0 %v7568_v47, %s6775_s2 }
0x1d77   :  { %4504 = vrot.lane.b32.xlu1 %v4499_v37, %s6776_s3 }
0x1deb   :  { %v5009_v19 = vpop.xlane.xlu1 %5008 }
0x1dec   :  { %v4844_v8 = vpop.xlane.xlu0 %4843 }
0x1ded   :  { %6757 = vrcp.f32 %v4844_v8 }
0x1dee   :  { %6759 = vrcp.f32 %v5009_v19  ;;  %v2761_v19 = vld [vmem:[%s7803_s12 + $0x28] sm:$0xff] }
0x1def   :  { %v3923_v3 = vpop.permute.xlu1 %3922  ;;  %v6676_v8 = vpack.c.bf16 %v2761_v19, %v2760_v11 }
0x1df0   :  { %3925 = vst.msk [vmem:[#allocation2 + $0x8] sm:$0xff] %vm1072_vm3, %v3923_v3  ;;  %v3758_v12 = vpop.permute.xlu0 %3757 }
0x1df1   :  { %3760 = vst.msk [vmem:[#allocation2] sm:$0xff] %vm1072_vm3, %v3758_v12 }
0x1df3   :  { %v4340_v40 = vpop.permute.xlu1 %4339 }
0x1df4   :  { %4342 = vst.msk [vmem:[#allocation2] sm:$0xff] %vm1655_vm4, %v4340_v40 }
0x1df7   :  { %v6758_v22 = vpop.eup %6757  ;;  %v4505_v13 = vpop.permute.xlu1 %4504 }
0x1df8   :  { %v4846_v14 = vmul.f32 %v6758_v22, %v6756_v7  ;;  %4507 = vst.msk [vmem:[#allocation2 + $0x8] sm:$0xff] %vm1655_vm4, %v4505_v13  ;;  %v6760_v47 = vpop.eup %6759  ;;  %v2759_v7 = vld [vmem:[%s7803_s12 + $0x18] sm:$0xff] }
0x1df9   :  { %v5011_v15 = vmul.f32 %v6760_v47, %v6754_v5  ;;  %v6668_v5 = vpack.c.bf16 %v2757_v2, %v2756_v1  ;;  %v6672_v9 = vpack.c.bf16 %v2759_v7, %v2758_v4  ;;  %v5208_v47 = vrot.slane %v7707_v32, %v7028_v36 }
0x1dfa   :  { %6375 = vmatmul.mubr.msk.f32.vlgmr.msra.gmra.mrb[66].mxu1 %vm333_vm2, %v4846_v14  ;;  %v5420_v2 = vrot.slane %v7707_v32, %v7025_v35 }
0x1dfb   :  { %6383 = vmatpush3.msra.mxu1 %v7626_v10  ;;  %6384 = vmatprep.mubr.msk.f32.mxu1 %vm6774_vm1, %v6773_v24  ;;  %v2751_v24 = vld [vmem:[%s7800_s10 + $0x18] sm:$0xff] }
0x1dfc   :  { %v6656_v10 = vpack.c.bf16 %v2751_v24, %v2750_v18 }
0x1dfe   :  { %6385 = vmatmul.mubr.msk.f32.vlgmr.msra.gmra.mrb[68].mxu1 %vm333_vm2, %v5011_v15  ;;  %6657 = vmatprep.subr.bf16.mxu0 %v6656_v10 }
0x1dff   :  { %6659 = vmatpush3.bf16.msra.mxu0 %v6656_v10 }
0x1e00   :  { %6669 = vmatprep.subr.bf16.mxu0 %v6668_v5 }
0x1ecd   :  { %v4916_v20 = vpop.f32.mrb[66].mxu1 }
0x1ece   :  { %4921 = vrot.lane.b32.xlu0 %v4916_v20, %s6777_s1  ;;  %v6376_v21 = vpop.f32.mrb[67].mxu1 }
0x1ed1   :  { %v5081_v23 = vpop.f32.mrb[68].mxu1 }
0x1ed2   :  { %5086 = vrot.lane.b32.xlu1 %v5081_v23, %s6777_s1  ;;  %v6386_v25 = vpop.f32.mrb[69].mxu1  ;;  %v2762_v23 = vld [vmem:[%s7803_s12 + $0x30] sm:$0xff] }
0x1ed3   :  { %v2763_v25 = vld [vmem:[%s7803_s12 + $0x38] sm:$0xff] }
0x1f40   :  { %v4922_v41 = vpop.permute.xlu0 %4921 }
0x1f41   :  { %4924 = vst.msk [vmem:[#allocation2] sm:$0xff] %vm2238_vm5, %v4922_v41  ;;  %v6680_v41 = vpack.c.bf16 %v2763_v25, %v2762_v23  ;;  %v5429_v25 = vld [vmem:[%s7804_s14] sm:$0x3] }
0x1f44   :  { %v5087_v27 = vpop.permute.xlu1 %5086 }
0x1f45   :  { %5089 = vst.msk [vmem:[#allocation2 + $0x8] sm:$0xff] %vm2238_vm5, %v5087_v27 }
0x1f48   :  { %v5090_v28 = vld [vmem:[#allocation2] sm:$0xff] }
0x1f49   :  { %6395 = vmatprep.mubr.msk.f32.mxu0 %vm93_vm0, %v5090_v28 }
0x1f4c   :  { %v5091_v38 = vld [vmem:[#allocation2 + $0x8] sm:$0xff] }
0x1f4d   :  { %6396 = vmatmul.mubr.msk.f32.vlgmr.msra.gmra.mrb[48].mxu0 %vm93_vm0, %v5091_v38 }
0x1f4e   :  { %6671 = vmatpush3.bf16.msra.mxu0 %v6668_v5 }
0x1f4f   :  { %6673 = vmatprep.subr.bf16.mxu0 %v6672_v9 }
0x1f52   :  { %6675 = vmatpush3.bf16.msra.mxu0 %v6672_v9  ;;  %v5426_v9 = vrot.slane %v7707_v32, %v7111_v43 }
0x1f53   :  { %6677 = vmatprep.subr.bf16.mxu0 %v6676_v8 }
0x1f56   :  { %6679 = vmatpush3.bf16.msra.mxu0 %v6676_v8 }
0x1f57   :  { %6681 = vmatprep.subr.bf16.mxu0 %v6680_v41 }
0x1f5a   :  { %6683 = vmatpush3.bf16.msra.mxu0 %v6680_v41  ;;  %v5459_v41 = vrot.slane %v5429_v25, %v6939_v31 }
0x2020   :  { %v6397_v60 = vpop.f32.mrb[48].mxu0 }
0x2021   :  { %v5174_v34 = vadd.f32 %v6397_v60, %v5095_v33  ;;  %v5168_v37 = vpop.f32.mrb[49].mxu0 }
0x2022   :  { %v5169_v39 = vadd.f32 %v5168_v37, %v5095_v33  ;;  %v5307_v37 = vrot.slane %v7707_v32, %v6931_v29 }
0x2023   :  { %v5178_v42 = vadd.f32 %v5174_v34, %v7355_v63 }
0x2024   :  { %v5177_v45 = vadd.f32 %v5169_v39, %v7353_v62  ;;  %v2752_v62 = vld [vmem:[%s7802_s11] sm:$0xff] }
0x2025   :  { %v5182_v46 = vsel %vm93_vm0, %v5178_v42, 0.0  ;;  %v6660_v59 = vpack.c.bf16 %v2753_v58, %v2752_v62 }
0x2026   :  { %5183 = vadd.xlane.f32.xlu1 %v5182_v46  ;;  %v5179_v48 = vsel %vm93_vm0, %v5177_v45, 0.0 }
0x2027   :  { %5180 = vadd.xlane.f32.xlu0 %v5179_v48  ;;  %6661 = vmatprep.subr.bf16.mxu1 %v6660_v59 }
0x2028   :  { %6663 = vmatpush3.bf16.msra.mxu1 %v6660_v59 }
0x2029   :  { %6665 = vmatprep.subr.bf16.mxu1 %v6664_v0 }
0x202c   :  { %6667 = vmatpush3.bf16.msra.mxu1 %v6664_v0 }
0x20b3   :  { %v5184_v49 = vpop.xlane.xlu1 %5183 }
0x20b4   :  { %v5186_v50 = vmul.f32 0.03125, %v5184_v49  ;;  %v5181_v51 = vpop.xlane.xlu0 %5180 }
0x20b5   :  { %v5185_v52 = vmul.f32 0.03125, %v5181_v51 }
0x20b6   :  { %v5188_v53 = vsub.f32 %v5178_v42, %v5186_v50 }
0x20b7   :  { %v5187_v26 = vsub.f32 %v5177_v45, %v5185_v52 }
0x20b8   :  { %v5190_v56 = vmul.f32 %v5188_v53, %v5188_v53 }
0x20b9   :  { %v5189_v54 = vmul.f32 %v5187_v26, %v5187_v26 }
0x20ba   :  { %v5194_v63 = vsel %vm93_vm0, %v5190_v56, 0.0 }
0x20bb   :  { %v5191_v6 = vsel %vm93_vm0, %v5189_v54, 0.0 }
0x20bc   :  { %5192 = vadd.xlane.f32.xlu0 %v5191_v6 }
0x20c0   :  { %5195 = vadd.xlane.f32.xlu0 %v5194_v63 }
0x2149   :  { %v5193_v3 = vpop.xlane.xlu0 %5192 }
0x214a   :  { %v5197_v12 = vmul.f32 0.03125, %v5193_v3 }
0x214c   :  { %v5199_v40 = vadd.f32 1e-05, %v5197_v12 }
0x214d   :  { %v5196_v22 = vpop.xlane.xlu0 %5195 }
0x214e   :  { %6761 = vrsqrt.f32 %v5199_v40  ;;  %v5198_v13 = vmul.f32 0.03125, %v5196_v22 }
0x2150   :  { %v5200_v14 = vadd.f32 1e-05, %v5198_v13 }
0x2152   :  { %6763 = vrsqrt.f32 %v5200_v14 }
0x2158   :  { %v6762_v15 = vpop.eup %6761 }
0x2159   :  { %v5203_v16 = vmul.f32 %v6762_v15, %v5187_v26 }
0x215b   :  { %v5209_v57 = vmul.f32 %v5208_v47, %v5203_v16 }
0x215c   :  { %v6764_v18 = vpop.eup %6763 }
0x215d   :  { %v5204_v24 = vmul.f32 %v6764_v18, %v5188_v53  ;;  %v5215_v10 = vadd.f32 %v5214_v17, %v5209_v57 }
0x215f   :  { %v5210_v20 = vmul.f32 %v5208_v47, %v5204_v24  ;;  %6406 = vmatprep.mubr.msk.f32.mxu1 %vm93_vm0, %v5215_v10 }
0x2161   :  { %v5216_v21 = vadd.f32 %v5214_v17, %v5210_v20 }
0x2163   :  { %6407 = vmatmul.mubr.msk.f32.vlgmr.msra.gmra.mrb[70].mxu1 %vm93_vm0, %v5216_v21 }
0x2236   :  { %v6408_v27 = vpop.f32.mrb[70].mxu1 }
0x2237   :  { %v5299_v28 = vadd.f32 %v6408_v27, %v5220_v44  ;;  %v5293_v38 = vpop.f32.mrb[71].mxu1 }
0x2238   :  { %v5294_v33 = vadd.f32 %v5293_v38, %v5220_v44 }
0x2239   :  { %v5303_v34 = vmax.f32 %v5299_v28, 0.0  ;;  %v5465_v28 = vrot.slane %v5429_v25, %v7028_v36 }
0x223a   :  { %v5302_v60 = vmax.f32 %v5294_v33, 0.0 }
0x223c   :  { %6425 = vmatprep.mubr.msk.f32.mxu0 %vm2624_vm6, %v5302_v60 }
0x223d   :  { %6426 = vmatmul.mubr.msk.f32.vlgmr.msra.gmra.mrb[50].mxu0 %vm2624_vm6, %v5303_v34 }
0x2310   :  { %v6427_v39 = vpop.f32.mrb[50].mxu0 }
0x2311   :  { %v5386_v42 = vadd.f32 %v6427_v39, %v5307_v37  ;;  %v5380_v45 = vpop.f32.mrb[51].mxu0 }
0x2312   :  { %v5381_v46 = vadd.f32 %v5380_v45, %v5307_v37 }
0x2313   :  { %v5390_v48 = vadd.f32 %v5386_v42, %v5216_v21 }
0x2314   :  { %v5389_v49 = vadd.f32 %v5381_v46, %v5215_v10 }
0x2315   :  { %v5394_v55 = vsel %vm93_vm0, %v5390_v48, 0.0 }
0x2316   :  { %5395 = vadd.xlane.f32.xlu1 %v5394_v55  ;;  %v5391_v50 = vsel %vm93_vm0, %v5389_v49, 0.0 }
0x2317   :  { %5392 = vadd.xlane.f32.xlu0 %v5391_v50 }
0x23a3   :  { %v5396_v51 = vpop.xlane.xlu1 %5395 }
0x23a4   :  { %v5398_v52 = vmul.f32 0.03125, %v5396_v51  ;;  %v5393_v53 = vpop.xlane.xlu0 %5392 }
0x23a5   :  { %v5397_v26 = vmul.f32 0.03125, %v5393_v53 }
0x23a6   :  { %v5400_v54 = vsub.f32 %v5390_v48, %v5398_v52 }
0x23a7   :  { %v5399_v6 = vsub.f32 %v5389_v49, %v5397_v26 }
0x23a8   :  { %v5402_v56 = vmul.f32 %v5400_v54, %v5400_v54 }
0x23a9   :  { %v5401_v29 = vmul.f32 %v5399_v6, %v5399_v6 }
0x23aa   :  { %v5406_v63 = vsel %vm93_vm0, %v5402_v56, 0.0 }
0x23ab   :  { %5407 = vadd.xlane.f32.xlu1 %v5406_v63  ;;  %v5403_v62 = vsel %vm93_vm0, %v5401_v29, 0.0 }
0x23ac   :  { %5404 = vadd.xlane.f32.xlu0 %v5403_v62 }
0x2438   :  { %v5408_v58 = vpop.xlane.xlu1 %5407 }
0x2439   :  { %v5410_v59 = vmul.f32 0.03125, %v5408_v58  ;;  %v5405_v61 = vpop.xlane.xlu0 %5404 }
0x243a   :  { %v5409_v30 = vmul.f32 0.03125, %v5405_v61 }
0x243b   :  { %v5412_v0 = vadd.f32 1e-05, %v5410_v59 }
0x243c   :  { %v5411_v1 = vadd.f32 1e-05, %v5409_v30 }
0x243d   :  { %6765 = vrsqrt.f32 %v5412_v0 }
0x243e   :  { %6767 = vrsqrt.f32 %v5411_v1 }
0x2447   :  { %v6766_v4 = vpop.eup %6765 }
0x2448   :  { %v6768_v5 = vpop.eup %6767  ;;  %v5416_v7 = vmul.f32 %v6766_v4, %v5400_v54 }
0x2449   :  { %v5415_v11 = vmul.f32 %v6768_v5, %v5399_v6 }
0x244a   :  { %v5422_v19 = vmul.f32 %v5420_v2, %v5416_v7 }
0x244b   :  { %v5421_v8 = vmul.f32 %v5420_v2, %v5415_v11 }
0x244c   :  { %v5428_v3 = vadd.f32 %v5426_v9, %v5422_v19 }
0x244d   :  { %v5427_v12 = vadd.f32 %v5426_v9, %v5421_v8 }
0x244e   :  { %v5433_v40 = vsel %vm93_vm0, %v5428_v3, 0.0 }
0x244f   :  { %5434 = vadd.xlane.f32.xlu1 %v5433_v40  ;;  %v5430_v22 = vsel %vm93_vm0, %v5427_v12, 0.0 }
0x2450   :  { %5431 = vadd.xlane.f32.xlu0 %v5430_v22 }
0x24dc   :  { %v5435_v13 = vpop.xlane.xlu1 %5434 }
0x24dd   :  { %v5437_v14 = vmul.f32 0.03125, %v5435_v13  ;;  %v5432_v35 = vpop.xlane.xlu0 %5431 }
0x24de   :  { %v5436_v47 = vmul.f32 0.03125, %v5432_v35 }
0x24df   :  { %v5439_v15 = vsub.f32 %v5428_v3, %v5437_v14 }
0x24e0   :  { %v5438_v16 = vsub.f32 %v5427_v12, %v5436_v47 }
0x24e1   :  { %v5441_v17 = vmul.f32 %v5439_v15, %v5439_v15 }
0x24e2   :  { %v5440_v57 = vmul.f32 %v5438_v16, %v5438_v16 }
0x24e3   :  { %v5445_v43 = vsel %vm93_vm0, %v5441_v17, 0.0 }
0x24e4   :  { %5446 = vadd.xlane.f32.xlu1 %v5445_v43  ;;  %v5442_v32 = vsel %vm93_vm0, %v5440_v57, 0.0 }
0x24e5   :  { %5443 = vadd.xlane.f32.xlu0 %v5442_v32 }
0x2571   :  { %v5447_v18 = vpop.xlane.xlu1 %5446 }
0x2572   :  { %v5449_v24 = vmul.f32 0.03125, %v5447_v18  ;;  %v5444_v10 = vpop.xlane.xlu0 %5443 }
0x2573   :  { %v5448_v20 = vmul.f32 0.03125, %v5444_v10 }
0x2574   :  { %v5451_v21 = vadd.f32 1e-05, %v5449_v24 }
0x2575   :  { %v5450_v23 = vadd.f32 1e-05, %v5448_v20 }
0x2576   :  { %6769 = vrsqrt.f32 %v5451_v21 }
0x2577   :  { %6771 = vrsqrt.f32 %v5450_v23 }
0x2580   :  { %v6770_v44 = vpop.eup %6769 }
0x2581   :  { %v6772_v27 = vpop.eup %6771  ;;  %v5455_v38 = vmul.f32 %v6770_v44, %v5439_v15 }
0x2582   :  { %v5454_v33 = vmul.f32 %v6772_v27, %v5438_v16 }
0x2583   :  { %v5461_v60 = vmul.f32 %v5459_v41, %v5455_v38 }
0x2584   :  { %v5460_v34 = vmul.f32 %v5459_v41, %v5454_v33 }
0x2585   :  { %v5467_v37 = vadd.f32 %v5465_v28, %v5461_v60 }
0x2586   :  { %v5466_v39 = vadd.f32 %v5465_v28, %v5460_v34 }
0x2587   :  { %5469 = vst.msk [vmem:[%s7805_s15 + $0x8] sm:$0xff] %vm93_vm0, %v5467_v37 }
0x2588   :  { %5468 = vst.msk [vmem:[%s7805_s15] sm:$0xff] %vm93_vm0, %v5466_v39 }

</bundles_post_ra>
